<compile_context>
chip_gen: v7x
topology: tpu7x:2x2x1
jax: 0.10.0
libtpu: 0.0.40
codegen_flags: <defaults>
</compile_context>

<pallas_src>
import functools

import jax
import jax.numpy as jnp
from jax.experimental import pallas as pl
from jax.experimental.pallas import tpu as pltpu


def _codebook_kernel(z_ref, e_ref, et_ref, e2_ref, zq_ref, idx_ref, sse_ref,
                     *, n_total):
    """Quantize one (D, TN) column-tile of latents against the full codebook.

    z_ref:   (D, TN)     f32  latent tile, transposed (lane-dense)
    e_ref:   (K, D)      f32  full codebook (resident)
    et_ref:  (D, K)      f32  codebook transposed (resident)
    e2_ref:  (K, 1)      f32  per-code squared norms (resident)
    zq_ref:  (D, TN)     f32  quantized latents (transposed)
    idx_ref: (1, 1, TN)  i32  argmin indices for this tile (lane-dense)
    sse_ref: (1, 1, 128) f32  per-tile sum((z_q - z)^2), scalar broadcast
    """
    i = pl.program_id(0)
    TN = z_ref.shape[1]
    K = e_ref.shape[0]

    z_t = z_ref[...]                                   # (D, TN)
    e = e_ref[...]                                     # (K, D)
    e_t = et_ref[...]                                  # (D, K)
    e2 = e2_ref[...]                                   # (K, 1)

    # Scores s[k, n] = e_k . z_n  (standard-form MXU matmul).
    s = jnp.dot(e, z_t, preferred_element_type=jnp.float32)        # (K, TN)
    # Distance up to a per-column constant (argmin-invariant): ||e||^2 - 2 e.z
    d = e2 - 2.0 * s                                                # (K, TN)

    # argmin over the codebook axis; first index on ties (matches torch/jnp).
    min_val = jnp.min(d, axis=0, keepdims=True)                     # (1, TN)
    row = jax.lax.broadcasted_iota(jnp.int32, (K, TN), 0)           # (K, TN)
    idx = jnp.min(jnp.where(d == min_val, row, K), axis=0,
                  keepdims=True)                                    # (1, TN)

    # Gather codebook rows via one-hot matmul: (D, K) @ (K, TN) -> (D, TN).
    onehot_t = (row == idx).astype(jnp.float32)                     # (K, TN)
    zq_t = jnp.dot(e_t, onehot_t, preferred_element_type=jnp.float32)

    zq_ref[...] = zq_t.astype(zq_ref.dtype)
    idx_ref[...] = idx.reshape(idx_ref.shape)

    # Per-tile SSE partial sum; padded (out-of-range) columns are masked out.
    col = i * TN + jax.lax.broadcasted_iota(jnp.int32, (1, TN), 1)  # (1, TN)
    valid = col < n_total
    diff = zq_t - z_t
    sse = jnp.sum(jnp.where(valid, diff * diff, 0.0))
    sse_ref[...] = jnp.full(sse_ref.shape, sse, dtype=jnp.float32)


@functools.partial(jax.jit, static_argnames=("beta",))
def codebook_forward(z_nchw, embedding, beta):
    """Pallas implementation of Codebook.forward.

    z_nchw:    (B, C, H, W) with C == latent_dim
    embedding: (K, D) codebook weights
    Returns (z_q in NCHW, min_encoding_indices (B*H*W,), loss scalar).
    """
    B, C, H, W = z_nchw.shape
    D = C
    K = embedding.shape[0]
    N = B * H * W

    # Transposed, lane-dense layout; columns indexed by (B, H, W) row-major,
    # matching the reference's permute(0,2,3,1).reshape(-1, D) row order.
    z_t = jnp.transpose(z_nchw, (1, 0, 2, 3)).reshape(D, N).astype(jnp.float32)

    # Column tile along N (sweepable; 512+ amortizes per-step overhead while
    # keeping the (K, TN) intermediates comfortably inside VMEM).
    TN = min(512, ((N + 127) // 128) * 128)
    num_tiles = (N + TN - 1) // TN
    N_pad = num_tiles * TN
    if N_pad != N:
        z_t = jnp.pad(z_t, ((0, 0), (0, N_pad - N)))

    # Grid-invariant precompute, hoisted out of the kernel.
    e = embedding.astype(jnp.float32)                  # (K, D)
    e_t = e.T                                          # (D, K)
    e2 = jnp.sum(e * e, axis=1, keepdims=True)         # (K, 1)

    kernel = functools.partial(_codebook_kernel, n_total=N)

    zq_t, idx3d, sse_part = pl.pallas_call(
        kernel,
        out_shape=(
            jax.ShapeDtypeStruct((D, N_pad), jnp.float32),
            jax.ShapeDtypeStruct((num_tiles, 1, TN), jnp.int32),
            jax.ShapeDtypeStruct((num_tiles, 1, 128), jnp.float32),
        ),
        grid_spec=pltpu.PrefetchScalarGridSpec(
            num_scalar_prefetch=0,
            grid=(num_tiles,),
            in_specs=[
                pl.BlockSpec((D, TN), lambda i: (0, i)),    # latent tile
                pl.BlockSpec((K, D), lambda i: (0, 0)),     # codebook (resident)
                pl.BlockSpec((D, K), lambda i: (0, 0)),     # codebook^T (resident)
                pl.BlockSpec((K, 1), lambda i: (0, 0)),     # ||e||^2 (resident)
            ],
            out_specs=[
                pl.BlockSpec((D, TN), lambda i: (0, i)),        # z_q^T, lane-dense
                pl.BlockSpec((1, 1, TN), lambda i: (i, 0, 0)),  # indices, lane-dense
                pl.BlockSpec((1, 1, 128), lambda i: (i, 0, 0)), # SSE partials
            ],
        ),
        compiler_params=pltpu.CompilerParams(
            dimension_semantics=("parallel",)),  # independent tiles -> v7x 2-TC split
    )(z_t, e, e_t, e2)

    sse = jnp.sum(sse_part[:, 0, 0])
    mean_sq = sse / jnp.float32(N * D)
    # loss = mean((zq.detach()-z)^2) + beta*mean((zq-z.detach())^2); forward
    # value of both terms is identical -> (1 + beta) * mean_sq.
    loss = mean_sq + jnp.float32(beta) * mean_sq

    # straight-through estimator z + (zq - z).detach() has forward value zq.
    zq_nchw = jnp.transpose(zq_t[:, :N].reshape(D, B, H, W), (1, 0, 2, 3))
    indices = idx3d.reshape(-1)[:N]
    return zq_nchw, indices, loss


def _reference_forward(z_nchw, embedding, beta):
    """Pure-JAX reference mirroring the PyTorch forward (values only)."""
    B, C, H, W = z_nchw.shape
    D = C
    z = jnp.transpose(z_nchw, (0, 2, 3, 1)).reshape(-1, D)
    d = (jnp.sum(z ** 2, axis=1, keepdims=True)
         + jnp.sum(embedding ** 2, axis=1)
         - 2.0 * z @ embedding.T)
    idx = jnp.argmin(d, axis=1)
    zq = embedding[idx]
    mean_sq = jnp.mean((zq - z) ** 2)
    loss = mean_sq + beta * mean_sq
    zq = zq.reshape(B, H, W, D)
    return jnp.transpose(zq, (0, 3, 1, 2)), idx.astype(jnp.int32), loss


if __name__ == "__main__":
    # args: num_codebook_vectors=256, latent_dim=32, beta=0.25
    num_codebook_vectors = 256
    latent_dim = 32
    beta = 0.25

    B, H, W = 2, 16, 16  # N = B*H*W = 512 rows -> one 512-wide tile

    key = jax.random.PRNGKey(0)
    k_emb, k_z = jax.random.split(key)
    # nn.Embedding weight uniform_(-1/K, 1/K), deterministic init
    embedding = jax.random.uniform(
        k_emb, (num_codebook_vectors, latent_dim), jnp.float32,
        minval=-1.0 / num_codebook_vectors, maxval=1.0 / num_codebook_vectors)
    z = jax.random.normal(k_z, (B, latent_dim, H, W), jnp.float32)

    zq, indices, loss = codebook_forward(z, embedding, beta)
    jax.block_until_ready((zq, indices, loss))

    zq_ref, idx_ref, loss_ref = _reference_forward(z, embedding, beta)
    assert zq.shape == (B, latent_dim, H, W)
    assert indices.shape == (B * H * W,)
    assert jnp.array_equal(indices, idx_ref)
    assert jnp.allclose(zq, zq_ref, rtol=1e-5, atol=1e-5)
    assert jnp.allclose(loss, loss_ref, rtol=1e-4, atol=1e-5)

    print("KERNEL_OK")
</pallas_src>

<mosaic_0001>
module attributes {stable_mosaic.version = 11 : i64} {
  func.func @_codebook_kernel(%arg0: i32, %arg1: memref<32x512xf32, #tpu.memory_space<vmem>>, %arg2: memref<256x32xf32, #tpu.memory_space<vmem>>, %arg3: memref<32x256xf32, #tpu.memory_space<vmem>>, %arg4: memref<256x1xf32, #tpu.memory_space<vmem>>, %arg5: memref<32x512xf32, #tpu.memory_space<vmem>>, %arg6: memref<1x1x512xi32, #tpu.memory_space<vmem>>, %arg7: memref<1x1x128xf32, #tpu.memory_space<vmem>>) attributes {dimension_semantics = [#tpu.dimension_semantics<parallel>], iteration_bounds = array<i64: 1>, scalar_prefetch = 0 : i64, scratch_operands = 0 : i64, tpu.core_type = #tpu.core_type<tc>, window_params = [{transform_indices = @transform_0, window_bounds = array<i64: 32, 512>}, {pipeline_mode = #tpu.pipeline_mode<synchronous>, transform_indices = @transform_1, window_bounds = array<i64: 256, 32>}, {pipeline_mode = #tpu.pipeline_mode<synchronous>, transform_indices = @transform_2, window_bounds = array<i64: 32, 256>}, {pipeline_mode = #tpu.pipeline_mode<synchronous>, transform_indices = @transform_3, window_bounds = array<i64: 256, 1>}, {transform_indices = @transform_4, window_bounds = array<i64: 32, 512>}, {transform_indices = @transform_5, window_bounds = array<i64: 1, 1, 512>}, {transform_indices = @transform_6, window_bounds = array<i64: 1, 1, 128>}]} {
    %c0 = arith.constant 0 : index
    %c0_0 = arith.constant 0 : index
    %0 = vector.load %arg1[%c0, %c0_0] : memref<32x512xf32, #tpu.memory_space<vmem>>, vector<32x512xf32>
    %c0_1 = arith.constant 0 : index
    %c0_2 = arith.constant 0 : index
    %1 = vector.load %arg2[%c0_1, %c0_2] : memref<256x32xf32, #tpu.memory_space<vmem>>, vector<256x32xf32>
    %c0_3 = arith.constant 0 : index
    %c0_4 = arith.constant 0 : index
    %2 = vector.load %arg3[%c0_3, %c0_4] : memref<32x256xf32, #tpu.memory_space<vmem>>, vector<32x256xf32>
    %c0_5 = arith.constant 0 : index
    %c0_6 = arith.constant 0 : index
    %3 = vector.load %arg4[%c0_5, %c0_6] : memref<256x1xf32, #tpu.memory_space<vmem>>, vector<256x1xf32>
    %cst = arith.constant dense<0.000000e+00> : vector<256x512xf32>
    %4 = tpu.matmul %1, %0, %cst {dimension_numbers = #tpu.dot_dimension_numbers<[1], [0], [0], [1], [0, 0, 1, 1], [], []>} : vector<256x32xf32>, vector<32x512xf32>, vector<256x512xf32> -> vector<256x512xf32>
    %cst_7 = arith.constant 2.000000e+00 : f32
    %5 = vector.broadcast %cst_7 : f32 to vector<256x512xf32>
    %6 = arith.mulf %5, %4 : vector<256x512xf32>
    %7 = vector.broadcast %3 : vector<256x1xf32> to vector<256x512xf32>
    %8 = arith.subf %7, %6 : vector<256x512xf32>
    %cst_8 = arith.constant dense<0x7F800000> : vector<512xf32>
    %9 = vector.multi_reduction <minimumf>, %8, %cst_8 [0] : vector<256x512xf32> to vector<512xf32>
    %10 = vector.shape_cast %9 : vector<512xf32> to vector<1x512xf32>
    %11 = tpu.iota {dimensions = array<i32: 0>} : vector<256x512xi32>
    %12 = vector.broadcast %10 : vector<1x512xf32> to vector<256x512xf32>
    %13 = arith.cmpf oeq, %8, %12 : vector<256x512xf32>
    %c256_i32 = arith.constant 256 : i32
    %14 = vector.broadcast %c256_i32 : i32 to vector<256x512xi32>
    %15 = arith.select %13, %11, %14 : vector<256x512xi1>, vector<256x512xi32>
    %cst_9 = arith.constant dense<2147483647> : vector<512xi32>
    %16 = vector.multi_reduction <minsi>, %15, %cst_9 [0] : vector<256x512xi32> to vector<512xi32>
    %17 = vector.shape_cast %16 : vector<512xi32> to vector<1x512xi32>
    %18 = vector.broadcast %17 : vector<1x512xi32> to vector<256x512xi32>
    %19 = arith.cmpi eq, %11, %18 : vector<256x512xi32>
    %20 = arith.extui %19 : vector<256x512xi1> to vector<256x512xi32>
    %21 = arith.sitofp %20 : vector<256x512xi32> to vector<256x512xf32>
    %cst_10 = arith.constant dense<0.000000e+00> : vector<32x512xf32>
    %22 = tpu.matmul %2, %21, %cst_10 {dimension_numbers = #tpu.dot_dimension_numbers<[1], [0], [0], [1], [0, 0, 1, 1], [], []>} : vector<32x256xf32>, vector<256x512xf32>, vector<32x512xf32> -> vector<32x512xf32>
    %c0_11 = arith.constant 0 : index
    %c0_12 = arith.constant 0 : index
    %23 = vector.load %arg5[%c0_11, %c0_12] : memref<32x512xf32, #tpu.memory_space<vmem>>, vector<32x512xf32>
    tpu.vector_store %arg5[%c0_11, %c0_12], %22 {strides = array<i32>} : memref<32x512xf32, #tpu.memory_space<vmem>>, vector<32x512xf32>,
    %24 = vector.shape_cast %17 : vector<1x512xi32> to vector<1x1x512xi32>
    %c0_13 = arith.constant 0 : index
    %c0_14 = arith.constant 0 : index
    %c0_15 = arith.constant 0 : index
    %25 = vector.load %arg6[%c0_13, %c0_14, %c0_15] : memref<1x1x512xi32, #tpu.memory_space<vmem>>, vector<1x1x512xi32>
    tpu.vector_store %arg6[%c0_13, %c0_14, %c0_15], %24 {strides = array<i32>} : memref<1x1x512xi32, #tpu.memory_space<vmem>>, vector<1x1x512xi32>,
    %c512_i32 = arith.constant 512 : i32
    %26 = arith.muli %arg0, %c512_i32 : i32
    %27 = tpu.iota {dimensions = array<i32: 1>} : vector<1x512xi32>
    %28 = vector.broadcast %26 : i32 to vector<1x512xi32>
    %29 = arith.addi %28, %27 : vector<1x512xi32>
    %c512_i32_16 = arith.constant 512 : i32
    %30 = vector.broadcast %c512_i32_16 : i32 to vector<1x512xi32>
    %31 = arith.cmpi slt, %29, %30 : vector<1x512xi32>
    %32 = arith.subf %22, %0 : vector<32x512xf32>
    %33 = arith.mulf %32, %32 : vector<32x512xf32>
    %cst_17 = arith.constant 0.000000e+00 : f32
    %34 = vector.shape_cast %31 : vector<1x512xi1> to vector<1x512xi1>
    %35 = vector.broadcast %34 : vector<1x512xi1> to vector<32x512xi1>
    %36 = vector.broadcast %cst_17 : f32 to vector<32x512xf32>
    %37 = arith.select %35, %33, %36 : vector<32x512xi1>, vector<32x512xf32>
    %38 = vector.shape_cast %37 : vector<32x512xf32> to vector<1x32x512xf32>
    %cst_18 = arith.constant dense<0.000000e+00> : vector<1xf32>
    %39 = vector.multi_reduction <add>, %38, %cst_18 [1, 2] : vector<1x32x512xf32> to vector<1xf32>
    %40 = vector.shape_cast %39 : vector<1xf32> to vector<1x1x1xf32>
    %41 = vector.extract %40[0, 0, 0] : f32 from vector<1x1x1xf32>
    %42 = vector.broadcast %41 : f32 to vector<1x1x128xf32>
    %c0_19 = arith.constant 0 : index
    %c0_20 = arith.constant 0 : index
    %c0_21 = arith.constant 0 : index
    %43 = vector.load %arg7[%c0_19, %c0_20, %c0_21] : memref<1x1x128xf32, #tpu.memory_space<vmem>>, vector<1x1x128xf32>
    tpu.vector_store %arg7[%c0_19, %c0_20, %c0_21], %42 {strides = array<i32>} : memref<1x1x128xf32, #tpu.memory_space<vmem>>, vector<1x1x128xf32>,
    return
  }
  func.func @transform_0(%arg0: i32) -> (i32, i32) {
    %c0_i32 = arith.constant 0 : i32
    %c0_i32_0 = arith.constant 0 : i32
    return %c0_i32, %arg0 : i32, i32
  }
  func.func @transform_1(%arg0: i32) -> (i32, i32) {
    %c0_i32 = arith.constant 0 : i32
    %c0_i32_0 = arith.constant 0 : i32
    %c0_i32_1 = arith.constant 0 : i32
    return %c0_i32, %c0_i32_0 : i32, i32
  }
  func.func @transform_2(%arg0: i32) -> (i32, i32) {
    %c0_i32 = arith.constant 0 : i32
    %c0_i32_0 = arith.constant 0 : i32
    %c0_i32_1 = arith.constant 0 : i32
    return %c0_i32, %c0_i32_0 : i32, i32
  }
  func.func @transform_3(%arg0: i32) -> (i32, i32) {
    %c0_i32 = arith.constant 0 : i32
    %c0_i32_0 = arith.constant 0 : i32
    %c0_i32_1 = arith.constant 0 : i32
    return %c0_i32, %c0_i32_0 : i32, i32
  }
  func.func @transform_4(%arg0: i32) -> (i32, i32) {
    %c0_i32 = arith.constant 0 : i32
    %c0_i32_0 = arith.constant 0 : i32
    return %c0_i32, %arg0 : i32, i32
  }
  func.func @transform_5(%arg0: i32) -> (i32, i32, i32) {
    %c0_i32 = arith.constant 0 : i32
    %c0_i32_0 = arith.constant 0 : i32
    %c0_i32_1 = arith.constant 0 : i32
    return %arg0, %c0_i32, %c0_i32_0 : i32, i32, i32
  }
  func.func @transform_6(%arg0: i32) -> (i32, i32, i32) {
    %c0_i32 = arith.constant 0 : i32
    %c0_i32_0 = arith.constant 0 : i32
    %c0_i32_1 = arith.constant 0 : i32
    return %arg0, %c0_i32, %c0_i32_0 : i32, i32, i32
  }
}

</mosaic_0001>

<bundles_post_ra>
// kernel: codebook_forward.1
= control target key start
LH: loop header
LB: loop body
LE: loop exit
PB: predicated region body
PF: predicated region fallthrough
CT: control target
= control target key end

     0   :  { %v3096_v7 = vmov 0.0   ;;  %v3097_v13 = vmov 0   ;;  %vm109_vm0 = vcmask 261120   ;;  %s5539_s0 = inlined_call_operand.vmem [shape: f32[32,512], index: 0, kind: input, shape index: {}]   ;;  %s5540_s1 = inlined_call_operand.vmem [shape: f32[256,32], index: 1, kind: input, shape index: {}]   ;;  %s5541_s2 = inlined_call_operand.vmem [shape: f32[32,256], index: 2, kind: input, shape index: {}]   ;;  %s5542_s3 = inlined_call_operand.vmem [shape: f32[256,1], index: 3, kind: input, shape index: {}]   ;;  %s5543_s4 = inlined_call_operand.vmem [shape: f32[32,512], index: 4, kind: output, shape index: {0}]   ;;  %s5544_s5 = inlined_call_operand.hbm [shape: s32[1,1,512], index: 5, kind: output, shape index: {1}]   ;;  %s5545_s6 = inlined_call_operand.vmem [shape: f32[1,1,128], index: 6, kind: output, shape index: {2}]  }
   0x1   :  { %v22_v0 = vld [vmem:[%s5539_s0 + $0x8] sm:$0xff]  ;;  %v24_v2 = vld [vmem:[%s5539_s0 + $0x18] sm:$0xff]  ;;  %v21_v5 = vld [vmem:[%s5539_s0] sm:$0xff]  ;;  %270 = vmatprep.mubr.f32.mxu0 %v3096_v7  ;;  %527 = vmatprep.mubr.f32.mxu1 %v3096_v7 }
   0x2   :  { %v26_v1 = vld [vmem:[%s5539_s0 + $0x28] sm:$0xff]  ;;  %v28_v4 = vld [vmem:[%s5539_s0 + $0x38] sm:$0xff]  ;;  %v25_v6 = vld [vmem:[%s5539_s0 + $0x20] sm:$0xff]  ;;  %3054 = vset.pattern.permute.xlu0 %v3097_v13  ;;  %3055 = vset.pattern.permute.xlu1 %v3097_v13 }
   0x3   :  { %v2903_v3 = vpack.c.bf16 %v26_v1, %v22_v0  ;;  %v2911_v8 = vpack.c.bf16 %v28_v4, %v24_v2  ;;  %v2905_v9 = vpack.c.bf16 %v25_v6, %v21_v5  ;;  %v23_v10 = vld [vmem:[%s5539_s0 + $0x10] sm:$0xff]  ;;  %v30_v12 = vld [vmem:[%s5539_s0 + $0x48] sm:$0xff]  ;;  %v32_v16 = vld [vmem:[%s5539_s0 + $0x58] sm:$0xff] }
   0x4   :  { %v27_v11 = vld [vmem:[%s5539_s0 + $0x30] sm:$0xff]  ;;  %v34_v15 = vld [vmem:[%s5539_s0 + $0x68] sm:$0xff]  ;;  %v36_v17 = vld [vmem:[%s5539_s0 + $0x78] sm:$0xff] }
   0x5   :  { %2904 = vmatprep.subr.bf16.mxu0 %v2903_v3  ;;  %v2913_v14 = vpack.c.bf16 %v27_v11, %v23_v10  ;;  %2912 = vmatprep.subr.bf16.mxu1 %v2911_v8  ;;  %v2907_v18 = vpack.c.bf16 %v34_v15, %v30_v12  ;;  %v2915_v19 = vpack.c.bf16 %v36_v17, %v32_v16  ;;  %v29_v20 = vld [vmem:[%s5539_s0 + $0x40] sm:$0xff]  ;;  %v31_v22 = vld [vmem:[%s5539_s0 + $0x50] sm:$0xff]  ;;  %v38_v27 = vld [vmem:[%s5540_s1 + $0x8] sm:$0xff] }
   0x6   :  { %2906 = vmatpush1.bf16.msra.mxu0 %v2905_v9  ;;  %v33_v21 = vld [vmem:[%s5539_s0 + $0x60] sm:$0xff]  ;;  %v35_v24 = vld [vmem:[%s5539_s0 + $0x70] sm:$0xff]  ;;  %v78_v30 = vld [vmem:[%s5542_s3 + $0x8] sm:$0xff] }
   0x7   :  { %2914 = vmatpush1.bf16.msra.mxu1 %v2913_v14  ;;  %v2909_v23 = vpack.c.bf16 %v33_v21, %v29_v20  ;;  %2908 = vmatprep.subr.bf16.mxu0 %v2907_v18  ;;  %v2917_v25 = vpack.c.bf16 %v35_v24, %v31_v22  ;;  %v37_v26 = vld [vmem:[%s5540_s1] sm:$0xff]  ;;  %v79_v29 = vld [vmem:[%s5542_s3 + $0x10] sm:$0xff]  ;;  %v80_v31 = vld [vmem:[%s5542_s3 + $0x18] sm:$0xff] }
   0x8   :  { %2916 = vmatprep.subr.bf16.mxu1 %v2915_v19  ;;  %v77_v28 = vld [vmem:[%s5542_s3] sm:$0xff]  ;;  %860 = vperm.xlu1 %3055, %v79_v29   ;;  %v39_v32 = vld [vmem:[%s5540_s1 + $0x10] sm:$0xff]  ;;  %v82_v34 = vld [vmem:[%s5542_s3 + $0x28] sm:$0xff] }
   0x9   :  { %850 = vperm.xlu0 %3054, %v77_v28   ;;  %v81_v33 = vld [vmem:[%s5542_s3 + $0x20] sm:$0xff]  ;;  %v40_v35 = vld [vmem:[%s5540_s1 + $0x18] sm:$0xff]  ;;  %v83_v36 = vld [vmem:[%s5542_s3 + $0x30] sm:$0xff] }
   0xa   :  { %2910 = vmatpush1.bf16.msra.mxu0 %v2909_v23  ;;  %v84_v37 = vld [vmem:[%s5542_s3 + $0x38] sm:$0xff]  ;;  %v41_v38 = vld [vmem:[%s5540_s1 + $0x20] sm:$0xff] }
   0xb   :  { %2918 = vmatpush1.bf16.msra.mxu1 %v2917_v25  ;;  %v85_v39 = vld [vmem:[%s5542_s3 + $0x40] sm:$0xff] }
   0xc   :  { %865 = vperm.xlu1 %3055, %v80_v31  }
   0xd   :  { %2583 = vmatmul.mubr.msk.f32.vlgmr.msra.gmra.mrb[0].mxu0 %vm109_vm0, %v37_v26  ;;  %855 = vperm.xlu0 %3054, %v78_v30  }
   0xe   :  { %2615 = vmatmul.mubr.msk.f32.vlgmr.msra.gmra.mrb[0].mxu1 %vm109_vm0, %v37_v26  ;;  %276 = vmatprep.mubr.f32.mxu0 %v3096_v7 }
   0xf   :  { %533 = vmatprep.mubr.f32.mxu1 %v3096_v7 }
  0x10   :  { %875 = vperm.xlu1 %3055, %v82_v34  }
  0x11   :  { %2584 = vmatmul.mubr.msk.f32.gmra.mrb[2].mxu0 %vm109_vm0, %v38_v27  ;;  %870 = vperm.xlu0 %3054, %v81_v33  }
  0x12   :  { %2616 = vmatmul.mubr.msk.f32.gmra.mrb[2].mxu1 %vm109_vm0, %v38_v27  ;;  %282 = vmatprep.mubr.f32.mxu0 %v3096_v7 }
  0x13   :  { %539 = vmatprep.mubr.f32.mxu1 %v3096_v7 }
  0x14   :  { %885 = vperm.xlu1 %3055, %v84_v37  }
  0x15   :  { %2585 = vmatmul.mubr.msk.f32.gmra.mrb[4].mxu0 %vm109_vm0, %v39_v32  ;;  %880 = vperm.xlu0 %3054, %v83_v36  }
  0x16   :  { %2617 = vmatmul.mubr.msk.f32.gmra.mrb[4].mxu1 %vm109_vm0, %v39_v32  ;;  %288 = vmatprep.mubr.f32.mxu0 %v3096_v7 }
  0x17   :  { %545 = vmatprep.mubr.f32.mxu1 %v3096_v7 }
  0x19   :  { %2586 = vmatmul.mubr.msk.f32.gmra.mrb[6].mxu0 %vm109_vm0, %v40_v35 }
  0x1a   :  { %2618 = vmatmul.mubr.msk.f32.gmra.mrb[6].mxu1 %vm109_vm0, %v40_v35  ;;  %294 = vmatprep.mubr.f32.mxu0 %v3096_v7 }
  0x1b   :  { %551 = vmatprep.mubr.f32.mxu1 %v3096_v7 }
  0x1c   :  { %12 = vsyncpa [#allocation3], 0  ;;  %v86_v40 = vld [vmem:[%s5542_s3 + $0x48] sm:$0xff]  ;;  %890 = vperm.xlu0 %3054, %v85_v39   ;;  %v87_v42 = vld [vmem:[%s5542_s3 + $0x50] sm:$0xff]  ;;  %s3100_s9 = smov [#allocation2]  }
  0x1d   :  { %2587 = vmatmul.mubr.msk.f32.gmra.mrb[8].mxu0 %vm109_vm0, %v41_v38  ;;  %v42_v41 = vld [vmem:[%s5540_s1 + $0x28] sm:$0xff]  ;;  %895 = vperm.xlu1 %3055, %v86_v40   ;;  %v88_v43 = vld [vmem:[%s5542_s3 + $0x58] sm:$0xff]  ;;  %v43_v44 = vld [vmem:[%s5540_s1 + $0x30] sm:$0xff]  ;;  %s2569_s10 = sshll.u32 %s3100_s9, 4  ;;  %s2570_s10 = int_to_ptr.vmem [resolvable:$true] %s2569_s10 }
  0x1e   :  { %2619 = vmatmul.mubr.msk.f32.gmra.mrb[8].mxu1 %vm109_vm0, %v41_v38  ;;  %300 = vmatprep.mubr.f32.mxu0 %v3096_v7  ;;  %v89_v45 = vld [vmem:[%s5542_s3 + $0x60] sm:$0xff]  ;;  %v90_v46 = vld [vmem:[%s5542_s3 + $0x68] sm:$0xff]  ;;  %v44_v47 = vld [vmem:[%s5540_s1 + $0x38] sm:$0xff]  ;;  %p3077_p1 = scmp.lt.s32.totalorder %s2570_s10, %s2570_s10 }
  0x1f   :  { %557 = vmatprep.mubr.f32.mxu1 %v3096_v7  ;;  %v91_v48 = vld [vmem:[%s5542_s3 + $0x70] sm:$0xff]  ;;  %v92_v49 = vld [vmem:[%s5542_s3 + $0x78] sm:$0xff]  ;;  %v45_v50 = vld [vmem:[%s5540_s1 + $0x40] sm:$0xff] }
  0x20   :  { %900 = vperm.xlu0 %3054, %v87_v42   ;;  %v93_v51 = vld [vmem:[%s5542_s3 + $0x80] sm:$0xff]  ;;  %v94_v52 = vld [vmem:[%s5542_s3 + $0x88] sm:$0xff]  ;;  %v95_v54 = vld [vmem:[%s5542_s3 + $0x90] sm:$0xff] }
  0x21   :  { %2588 = vmatmul.mubr.msk.f32.gmra.mrb[10].mxu0 %vm109_vm0, %v42_v41  ;;  %905 = vperm.xlu1 %3055, %v88_v43   ;;  %v46_v53 = vld [vmem:[%s5540_s1 + $0x48] sm:$0xff]  ;;  %v96_v55 = vld [vmem:[%s5542_s3 + $0x98] sm:$0xff]  ;;  %v47_v56 = vld [vmem:[%s5540_s1 + $0x50] sm:$0xff] }
  0x22   :  { %2620 = vmatmul.mubr.msk.f32.gmra.mrb[10].mxu1 %vm109_vm0, %v42_v41  ;;  %306 = vmatprep.mubr.f32.mxu0 %v3096_v7  ;;  %v97_v57 = vld [vmem:[%s5542_s3 + $0xa0] sm:$0xff]  ;;  %v98_v58 = vld [vmem:[%s5542_s3 + $0xa8] sm:$0xff]  ;;  %v48_v59 = vld [vmem:[%s5540_s1 + $0x58] sm:$0xff] }
  0x23   :  { %563 = vmatprep.mubr.f32.mxu1 %v3096_v7  ;;  %v99_v60 = vld [vmem:[%s5542_s3 + $0xb0] sm:$0xff]  ;;  %v100_v61 = vld [vmem:[%s5542_s3 + $0xb8] sm:$0xff]  ;;  %v49_v62 = vld [vmem:[%s5540_s1 + $0x60] sm:$0xff] }
  0x24   :  { %910 = vperm.xlu0 %3054, %v89_v45   ;;  %v101_v63 = vld [vmem:[%s5542_s3 + $0xc0] sm:$0xff]  ;;  %v102_v0 = vld [vmem:[%s5542_s3 + $0xc8] sm:$0xff]  ;;  %v103_v2 = vld [vmem:[%s5542_s3 + $0xd0] sm:$0xff] }
  0x25   :  { %2589 = vmatmul.mubr.msk.f32.gmra.mrb[12].mxu0 %vm109_vm0, %v43_v44  ;;  %915 = vperm.xlu1 %3055, %v90_v46   ;;  %v50_v1 = vld [vmem:[%s5540_s1 + $0x68] sm:$0xff]  ;;  %v104_v3 = vld [vmem:[%s5542_s3 + $0xd8] sm:$0xff]  ;;  %v51_v4 = vld [vmem:[%s5540_s1 + $0x70] sm:$0xff] }
  0x26   :  { %2621 = vmatmul.mubr.msk.f32.gmra.mrb[12].mxu1 %vm109_vm0, %v43_v44  ;;  %312 = vmatprep.mubr.f32.mxu0 %v3096_v7  ;;  %v105_v5 = vld [vmem:[%s5542_s3 + $0xe0] sm:$0xff]  ;;  %v106_v6 = vld [vmem:[%s5542_s3 + $0xe8] sm:$0xff]  ;;  %v52_v8 = vld [vmem:[%s5540_s1 + $0x78] sm:$0xff] }
  0x27   :  { %569 = vmatprep.mubr.f32.mxu1 %v3096_v7  ;;  %v107_v9 = vld [vmem:[%s5542_s3 + $0xf0] sm:$0xff]  ;;  %v108_v10 = vld [vmem:[%s5542_s3 + $0xf8] sm:$0xff]  ;;  %v53_v11 = vld [vmem:[%s5540_s1 + $0x80] sm:$0xff] }
  0x28   :  { %920 = vperm.xlu0 %3054, %v91_v48   ;;  %v54_v12 = vld [vmem:[%s5540_s1 + $0x88] sm:$0xff]  ;;  %v55_v13 = vld [vmem:[%s5540_s1 + $0x90] sm:$0xff]  ;;  %v56_v14 = vld [vmem:[%s5540_s1 + $0x98] sm:$0xff] }
  0x29   :  { %2590 = vmatmul.mubr.msk.f32.gmra.mrb[14].mxu0 %vm109_vm0, %v44_v47  ;;  %925 = vperm.xlu1 %3055, %v92_v49   ;;  %v57_v15 = vld [vmem:[%s5540_s1 + $0xa0] sm:$0xff]  ;;  %v58_v16 = vld [vmem:[%s5540_s1 + $0xa8] sm:$0xff]  ;;  %v59_v17 = vld [vmem:[%s5540_s1 + $0xb0] sm:$0xff] }
  0x2a   :  { %2622 = vmatmul.mubr.msk.f32.gmra.mrb[14].mxu1 %vm109_vm0, %v44_v47  ;;  %318 = vmatprep.mubr.f32.mxu0 %v3096_v7  ;;  %v60_v18 = vld [vmem:[%s5540_s1 + $0xb8] sm:$0xff]  ;;  %v61_v19 = vld [vmem:[%s5540_s1 + $0xc0] sm:$0xff]  ;;  %v62_v20 = vld [vmem:[%s5540_s1 + $0xc8] sm:$0xff] }
  0x2b   :  { %575 = vmatprep.mubr.f32.mxu1 %v3096_v7  ;;  %v63_v21 = vld [vmem:[%s5540_s1 + $0xd0] sm:$0xff]  ;;  %v64_v22 = vld [vmem:[%s5540_s1 + $0xd8] sm:$0xff]  ;;  %v65_v23 = vld [vmem:[%s5540_s1 + $0xe0] sm:$0xff] }
  0x2c   :  { %930 = vperm.xlu0 %3054, %v93_v51   ;;  %v66_v24 = vld [vmem:[%s5540_s1 + $0xe8] sm:$0xff]  ;;  %v67_v25 = vld [vmem:[%s5540_s1 + $0xf0] sm:$0xff]  ;;  %v68_v26 = vld [vmem:[%s5540_s1 + $0xf8] sm:$0xff]  ;;  %s3072_s1 = scalar_lea.vmem %s2570_s10, 64 }
  0x2d   :  { %2591 = vmatmul.mubr.msk.f32.gmra.mrb[16].mxu0 %vm109_vm0, %v45_v50  ;;  %935 = vperm.xlu1 %3055, %v94_v52   ;;  %p3073_p0 = scmp.ne.s32.totalorder %s2570_s10, %s3072_s1  ;;  %p3078_p2 = scmp.lt.s32.totalorder %s3072_s1, %s3072_s1 }
  0x2e   :  { %2623 = vmatmul.mubr.msk.f32.gmra.mrb[16].mxu1 %vm109_vm0, %v45_v50  ;;  %324 = vmatprep.mubr.f32.mxu0 %v3096_v7 }
  0x2f   :  { %581 = vmatprep.mubr.f32.mxu1 %v3096_v7  ;;  %p3079_p3 = por %p3078_p2, %p3077_p1 }
  0x30   :  { %940 = vperm.xlu0 %3054, %v95_v54  }
  0x31   :  { %2592 = vmatmul.mubr.msk.f32.gmra.mrb[18].mxu0 %vm109_vm0, %v46_v53  ;;  %945 = vperm.xlu1 %3055, %v96_v55   ;;  %p3080_p4 = pnand %p3079_p3, %p3073_p0 }
  0x32   :  { %2624 = vmatmul.mubr.msk.f32.gmra.mrb[18].mxu1 %vm109_vm0, %v46_v53  ;;  %330 = vmatprep.mubr.f32.mxu0 %v3096_v7 }
  0x33   :  { %587 = vmatprep.mubr.f32.mxu1 %v3096_v7 }
  0x34   :  { %950 = vperm.xlu0 %3054, %v97_v57  }
  0x35   :  { %2593 = vmatmul.mubr.msk.f32.gmra.mrb[20].mxu0 %vm109_vm0, %v47_v56  ;;  %955 = vperm.xlu1 %3055, %v98_v58  }
  0x36   :  { %2625 = vmatmul.mubr.msk.f32.gmra.mrb[20].mxu1 %vm109_vm0, %v47_v56  ;;  %336 = vmatprep.mubr.f32.mxu0 %v3096_v7 }
  0x37   :  { %593 = vmatprep.mubr.f32.mxu1 %v3096_v7 }
  0x38   :  { %960 = vperm.xlu0 %3054, %v99_v60  }
  0x39   :  { %2594 = vmatmul.mubr.msk.f32.gmra.mrb[22].mxu0 %vm109_vm0, %v48_v59  ;;  %965 = vperm.xlu1 %3055, %v100_v61  }
  0x3a   :  { %2626 = vmatmul.mubr.msk.f32.gmra.mrb[22].mxu1 %vm109_vm0, %v48_v59  ;;  %342 = vmatprep.mubr.f32.mxu0 %v3096_v7 }
  0x3b   :  { %599 = vmatprep.mubr.f32.mxu1 %v3096_v7 }
  0x3c   :  { %970 = vperm.xlu0 %3054, %v101_v63  }
  0x3d   :  { %2595 = vmatmul.mubr.msk.f32.gmra.mrb[24].mxu0 %vm109_vm0, %v49_v62  ;;  %975 = vperm.xlu1 %3055, %v102_v0  }
  0x3e   :  { %2627 = vmatmul.mubr.msk.f32.gmra.mrb[24].mxu1 %vm109_vm0, %v49_v62  ;;  %348 = vmatprep.mubr.f32.mxu0 %v3096_v7 }
  0x3f   :  { %605 = vmatprep.mubr.f32.mxu1 %v3096_v7 }
  0x40   :  { %980 = vperm.xlu0 %3054, %v103_v2  }
  0x41   :  { %2596 = vmatmul.mubr.msk.f32.gmra.mrb[26].mxu0 %vm109_vm0, %v50_v1  ;;  %985 = vperm.xlu1 %3055, %v104_v3  }
  0x42   :  { %2628 = vmatmul.mubr.msk.f32.gmra.mrb[26].mxu1 %vm109_vm0, %v50_v1  ;;  %354 = vmatprep.mubr.f32.mxu0 %v3096_v7 }
  0x43   :  { %611 = vmatprep.mubr.f32.mxu1 %v3096_v7 }
  0x44   :  { %990 = vperm.xlu0 %3054, %v105_v5  }
  0x45   :  { %2597 = vmatmul.mubr.msk.f32.gmra.mrb[28].mxu0 %vm109_vm0, %v51_v4  ;;  %995 = vperm.xlu1 %3055, %v106_v6  }
  0x46   :  { %2629 = vmatmul.mubr.msk.f32.gmra.mrb[28].mxu1 %vm109_vm0, %v51_v4  ;;  %360 = vmatprep.mubr.f32.mxu0 %v3096_v7 }
  0x47   :  { %617 = vmatprep.mubr.f32.mxu1 %v3096_v7 }
  0x48   :  { %1000 = vperm.xlu0 %3054, %v107_v9  }
  0x49   :  { %2598 = vmatmul.mubr.msk.f32.gmra.mrb[30].mxu0 %vm109_vm0, %v52_v8  ;;  %1005 = vperm.xlu1 %3055, %v108_v10  }
  0x4a   :  { %2630 = vmatmul.mubr.msk.f32.gmra.mrb[30].mxu1 %vm109_vm0, %v52_v8  ;;  %366 = vmatprep.mubr.f32.mxu0 %v3096_v7 }
  0x4b   :  { %623 = vmatprep.mubr.f32.mxu1 %v3096_v7 }
  0x4d   :  { %2599 = vmatmul.mubr.msk.f32.gmra.mrb[32].mxu0 %vm109_vm0, %v53_v11 }
  0x4e   :  { %2631 = vmatmul.mubr.msk.f32.gmra.mrb[32].mxu1 %vm109_vm0, %v53_v11  ;;  %372 = vmatprep.mubr.f32.mxu0 %v3096_v7 }
  0x4f   :  { %629 = vmatprep.mubr.f32.mxu1 %v3096_v7 }
  0x51   :  { %2600 = vmatmul.mubr.msk.f32.gmra.mrb[34].mxu0 %vm109_vm0, %v54_v12 }
  0x52   :  { %2632 = vmatmul.mubr.msk.f32.gmra.mrb[34].mxu1 %vm109_vm0, %v54_v12  ;;  %378 = vmatprep.mubr.f32.mxu0 %v3096_v7 }
  0x53   :  { %635 = vmatprep.mubr.f32.mxu1 %v3096_v7 }
  0x55   :  { %2601 = vmatmul.mubr.msk.f32.gmra.mrb[36].mxu0 %vm109_vm0, %v55_v13 }
  0x56   :  { %2633 = vmatmul.mubr.msk.f32.gmra.mrb[36].mxu1 %vm109_vm0, %v55_v13  ;;  %384 = vmatprep.mubr.f32.mxu0 %v3096_v7 }
  0x57   :  { %641 = vmatprep.mubr.f32.mxu1 %v3096_v7 }
  0x59   :  { %2602 = vmatmul.mubr.msk.f32.gmra.mrb[38].mxu0 %vm109_vm0, %v56_v14 }
  0x5a   :  { %2634 = vmatmul.mubr.msk.f32.gmra.mrb[38].mxu1 %vm109_vm0, %v56_v14  ;;  %390 = vmatprep.mubr.f32.mxu0 %v3096_v7 }
  0x5b   :  { %647 = vmatprep.mubr.f32.mxu1 %v3096_v7 }
  0x5d   :  { %2603 = vmatmul.mubr.msk.f32.gmra.mrb[40].mxu0 %vm109_vm0, %v57_v15 }
  0x5e   :  { %2635 = vmatmul.mubr.msk.f32.gmra.mrb[40].mxu1 %vm109_vm0, %v57_v15  ;;  %396 = vmatprep.mubr.f32.mxu0 %v3096_v7 }
  0x5f   :  { %653 = vmatprep.mubr.f32.mxu1 %v3096_v7 }
  0x61   :  { %2604 = vmatmul.mubr.msk.f32.gmra.mrb[42].mxu0 %vm109_vm0, %v58_v16 }
  0x62   :  { %2636 = vmatmul.mubr.msk.f32.gmra.mrb[42].mxu1 %vm109_vm0, %v58_v16  ;;  %402 = vmatprep.mubr.f32.mxu0 %v3096_v7 }
  0x63   :  { %659 = vmatprep.mubr.f32.mxu1 %v3096_v7 }
  0x65   :  { %2605 = vmatmul.mubr.msk.f32.gmra.mrb[44].mxu0 %vm109_vm0, %v59_v17 }
  0x66   :  { %2637 = vmatmul.mubr.msk.f32.gmra.mrb[44].mxu1 %vm109_vm0, %v59_v17  ;;  %408 = vmatprep.mubr.f32.mxu0 %v3096_v7 }
  0x67   :  { %665 = vmatprep.mubr.f32.mxu1 %v3096_v7 }
  0x69   :  { %2606 = vmatmul.mubr.msk.f32.gmra.mrb[46].mxu0 %vm109_vm0, %v60_v18 }
  0x6a   :  { %2638 = vmatmul.mubr.msk.f32.gmra.mrb[46].mxu1 %vm109_vm0, %v60_v18  ;;  %414 = vmatprep.mubr.f32.mxu0 %v3096_v7 }
  0x6b   :  { %671 = vmatprep.mubr.f32.mxu1 %v3096_v7 }
  0x6d   :  { %2607 = vmatmul.mubr.msk.f32.gmra.mrb[48].mxu0 %vm109_vm0, %v61_v19 }
  0x6e   :  { %2639 = vmatmul.mubr.msk.f32.gmra.mrb[48].mxu1 %vm109_vm0, %v61_v19  ;;  %420 = vmatprep.mubr.f32.mxu0 %v3096_v7 }
  0x6f   :  { %677 = vmatprep.mubr.f32.mxu1 %v3096_v7 }
  0x71   :  { %2608 = vmatmul.mubr.msk.f32.gmra.mrb[50].mxu0 %vm109_vm0, %v62_v20 }
  0x72   :  { %2640 = vmatmul.mubr.msk.f32.gmra.mrb[50].mxu1 %vm109_vm0, %v62_v20  ;;  %426 = vmatprep.mubr.f32.mxu0 %v3096_v7 }
  0x73   :  { %683 = vmatprep.mubr.f32.mxu1 %v3096_v7 }
  0x75   :  { %2609 = vmatmul.mubr.msk.f32.gmra.mrb[52].mxu0 %vm109_vm0, %v63_v21 }
  0x76   :  { %2641 = vmatmul.mubr.msk.f32.gmra.mrb[52].mxu1 %vm109_vm0, %v63_v21  ;;  %432 = vmatprep.mubr.f32.mxu0 %v3096_v7 }
  0x77   :  { %689 = vmatprep.mubr.f32.mxu1 %v3096_v7 }
  0x79   :  { %2610 = vmatmul.mubr.msk.f32.gmra.mrb[54].mxu0 %vm109_vm0, %v64_v22 }
  0x7a   :  { %2642 = vmatmul.mubr.msk.f32.gmra.mrb[54].mxu1 %vm109_vm0, %v64_v22  ;;  %438 = vmatprep.mubr.f32.mxu0 %v3096_v7 }
  0x7b   :  { %695 = vmatprep.mubr.f32.mxu1 %v3096_v7 }
  0x7d   :  { %2611 = vmatmul.mubr.msk.f32.gmra.mrb[56].mxu0 %vm109_vm0, %v65_v23 }
  0x7e   :  { %2643 = vmatmul.mubr.msk.f32.gmra.mrb[56].mxu1 %vm109_vm0, %v65_v23  ;;  %444 = vmatprep.mubr.f32.mxu0 %v3096_v7 }
  0x7f   :  { %701 = vmatprep.mubr.f32.mxu1 %v3096_v7 }
  0x81   :  { %2612 = vmatmul.mubr.msk.f32.gmra.mrb[58].mxu0 %vm109_vm0, %v66_v24 }
  0x82   :  { %2644 = vmatmul.mubr.msk.f32.gmra.mrb[58].mxu1 %vm109_vm0, %v66_v24  ;;  %450 = vmatprep.mubr.f32.mxu0 %v3096_v7 }
  0x83   :  { %707 = vmatprep.mubr.f32.mxu1 %v3096_v7 }
  0x85   :  { %2613 = vmatmul.mubr.msk.f32.gmra.mrb[60].mxu0 %vm109_vm0, %v67_v25 }
  0x86   :  { %2645 = vmatmul.mubr.msk.f32.gmra.mrb[60].mxu1 %vm109_vm0, %v67_v25  ;;  %456 = vmatprep.mubr.f32.mxu0 %v3096_v7 }
  0x87   :  { %713 = vmatprep.mubr.f32.mxu1 %v3096_v7  ;;  %v3546_v54 = vpop.permute.xlu1 %860 }
  0x88   :  { %v3538_v49 = vpop.permute.xlu0 %850 }
  0x89   :  { %2614 = vmatmul.mubr.msk.f32.gmra.mrb[62].mxu0 %vm109_vm0, %v68_v26 }
  0x8a   :  { %2646 = vmatmul.mubr.msk.f32.gmra.mrb[62].mxu1 %vm109_vm0, %v68_v26 }
  0x8b   :  { %v3558_v61 = vpop.permute.xlu1 %865 }
  0x8c   :  { %v3550_v56 = vpop.permute.xlu0 %855 }
  0x8f   :  { %v3572_v6 = vpop.permute.xlu1 %875 }
  0x90   :  { %v3564_v1 = vpop.permute.xlu0 %870 }
  0x93   :  { %v3584_v17 = vpop.permute.xlu1 %885 }
  0x94   :  { %v3576_v9 = vpop.permute.xlu0 %880 }
  0x9b   :  { %v3595_v23 = vpop.permute.xlu0 %890 }
  0xe0   :  { %v272_v27 = vpop.f32.mrb[0].mxu0 }
  0xe1   :  { %v3504_v28 = vpop.f32.mrb[1].mxu0  ;;  %v3506_v29 = vpop.f32.mrb[0].mxu1  ;;  %v720_v15 = vmul.f32 2.0, %v272_v27 }
  0xe2   :  { %v3508_v30 = vpop.f32.mrb[1].mxu1 }
  0xe3   :  { %v3600_v25 = vsub.f32 %v3538_v49, %v720_v15 }
  0xe4   :  { %v278_v31 = vpop.f32.mrb[2].mxu0 }
  0xe5   :  { %v3510_v32 = vpop.f32.mrb[2].mxu1  ;;  %v3512_v33 = vpop.f32.mrb[3].mxu0  ;;  %v724_v11 = vmul.f32 2.0, %v278_v31  ;;  %5731 = vst [vmem:[#allocation13_spill] sm:$0xff] %v3600_v25 }
  0xe6   :  { %v3514_v34 = vpop.f32.mrb[3].mxu1 }
  0xe7   :  { %v3589_v19 = vsub.f32 %v3550_v56, %v724_v11 }
  0xe8   :  { %v284_v35 = vpop.f32.mrb[4].mxu0 }
  0xe9   :  { %v3516_v7 = vpop.f32.mrb[4].mxu1  ;;  %v3518_v36 = vpop.f32.mrb[5].mxu0  ;;  %v728_v16 = vmul.f32 2.0, %v284_v35  ;;  %5728 = vst [vmem:[#allocation10_spill] sm:$0xff] %v3589_v19  ;;  %v1136_v35 = vmin.f32 %v3600_v25, %v3589_v19  ;;  %v722_v19 = vmul.f32 2.0, %v3506_v29 }
  0xea   :  { %v3520_v37 = vpop.f32.mrb[5].mxu1  ;;  %v3626_v25 = vpop.permute.xlu0 %900 }
  0xeb   :  { %v3603_v26 = vsub.f32 %v3546_v54, %v728_v16 }
  0xec   :  { %v290_v38 = vpop.f32.mrb[6].mxu0 }
  0xed   :  { %v3522_v39 = vpop.f32.mrb[6].mxu1  ;;  %v3524_v40 = vpop.f32.mrb[7].mxu0  ;;  %v732_v20 = vmul.f32 2.0, %v290_v38  ;;  %5732 = vst [vmem:[#allocation14_spill] sm:$0xff] %v3603_v26  ;;  %v1137_v16 = vmin.f32 %v1136_v35, %v3603_v26 }
  0xee   :  { %v3526_v41 = vpop.f32.mrb[7].mxu1 }
  0xef   :  { %v3610_v38 = vsub.f32 %v3558_v61, %v732_v20  ;;  %v726_v20 = vmul.f32 2.0, %v3510_v32 }
  0xf0   :  { %v296_v42 = vpop.f32.mrb[8].mxu0 }
  0xf1   :  { %v3528_v43 = vpop.f32.mrb[8].mxu1  ;;  %v3530_v44 = vpop.f32.mrb[9].mxu0  ;;  %v736_v27 = vmul.f32 2.0, %v296_v42  ;;  %5733 = vst [vmem:[#allocation15_spill] sm:$0xff] %v3610_v38 }
  0xf2   :  { %v3532_v45 = vpop.f32.mrb[9].mxu1 }
  0xf3   :  { %v3622_v42 = vsub.f32 %v3564_v1, %v736_v27  ;;  %v730_v27 = vmul.f32 2.0, %v3516_v7 }
  0xf4   :  { %v302_v46 = vpop.f32.mrb[10].mxu0 }
  0xf5   :  { %v3534_v47 = vpop.f32.mrb[10].mxu1  ;;  %v3536_v48 = vpop.f32.mrb[11].mxu0  ;;  %v740_v11 = vmul.f32 2.0, %v302_v46  ;;  %5736 = vst [vmem:[#allocation18_spill] sm:$0xff] %v3622_v42 }
  0xf6   :  { %v3540_v50 = vpop.f32.mrb[11].mxu1 }
  0xf8   :  { %v308_v51 = vpop.f32.mrb[12].mxu0 }
  0xf9   :  { %v3542_v52 = vpop.f32.mrb[12].mxu1  ;;  %v3544_v53 = vpop.f32.mrb[13].mxu0 }
  0xfa   :  { %v3548_v55 = vpop.f32.mrb[13].mxu1 }
  0xfc   :  { %v314_v57 = vpop.f32.mrb[14].mxu0 }
  0xfd   :  { %v3552_v58 = vpop.f32.mrb[14].mxu1  ;;  %v3554_v59 = vpop.f32.mrb[15].mxu0 }
  0xfe   :  { %v3556_v60 = vpop.f32.mrb[15].mxu1 }
  0xff   :  { %5723 = vst [vmem:[#allocation5_spill] sm:$0xff] %v3556_v60 }
 0x100   :  { %v320_v62 = vpop.f32.mrb[16].mxu0 }
 0x101   :  { %v3560_v63 = vpop.f32.mrb[16].mxu1  ;;  %v3562_v0 = vpop.f32.mrb[17].mxu0  ;;  %v752_v26 = vmul.f32 2.0, %v320_v62 }
 0x102   :  { %v3566_v2 = vpop.f32.mrb[17].mxu1 }
 0x103   :  { %5724 = vst [vmem:[#allocation6_spill] sm:$0xff] %v3566_v2  ;;  %v1138_v2 = vmin.f32 %v1137_v16, %v3610_v38  ;;  %v721_v16 = vmul.f32 2.0, %v3504_v28  ;;  %v734_v38 = vmul.f32 2.0, %v3522_v39  ;;  %v738_v39 = vmul.f32 2.0, %v3528_v43 }
 0x104   :  { %v326_v3 = vpop.f32.mrb[18].mxu0 }
 0x105   :  { %v3568_v4 = vpop.f32.mrb[18].mxu1  ;;  %v3570_v5 = vpop.f32.mrb[19].mxu0  ;;  %v1139_v29 = vmin.f32 %v1138_v2, %v3622_v42  ;;  %v3681_v43 = vsub.f32 %v3558_v61, %v734_v38 }
 0x106   :  { %v3574_v8 = vpop.f32.mrb[19].mxu1  ;;  %v3666_v42 = vpop.permute.xlu0 %910 }
 0x107   :  { %5725 = vst [vmem:[#allocation7_spill] sm:$0xff] %v3574_v8  ;;  %5749 = vst [vmem:[#allocation31_spill] sm:$0xff] %v3681_v43 }
 0x108   :  { %v332_v10 = vpop.f32.mrb[20].mxu0 }
 0x109   :  { %v3578_v12 = vpop.f32.mrb[20].mxu1  ;;  %v3580_v13 = vpop.f32.mrb[21].mxu0 }
 0x10a   :  { %5726 = vst [vmem:[#allocation8_spill] sm:$0xff] %v3580_v13  ;;  %v3582_v14 = vpop.f32.mrb[21].mxu1  ;;  %v748_v13 = vmul.f32 2.0, %v314_v57  ;;  %v3648_v57 = vsub.f32 %v3550_v56, %v726_v20  ;;  %v3663_v20 = vsub.f32 %v3546_v54, %v730_v27  ;;  %v742_v27 = vmul.f32 2.0, %v3534_v47 }
 0x10b   :  { %5727 = vst [vmem:[#allocation9_spill] sm:$0xff] %v3582_v14  ;;  %v3699_v47 = vsub.f32 %v3564_v1, %v738_v39 }
 0x10c   :  { %v3586_v18 = vpop.f32.mrb[22].mxu0  ;;  %5742 = vst [vmem:[#allocation24_spill] sm:$0xff] %v3648_v57  ;;  %v3655_v2 = vsub.f32 %v3584_v17, %v748_v13  ;;  %5745 = vst [vmem:[#allocation27_spill] sm:$0xff] %v3663_v20 }
 0x10d   :  { %v3591_v21 = vpop.f32.mrb[22].mxu1  ;;  %v3593_v22 = vpop.f32.mrb[23].mxu0  ;;  %5752 = vst [vmem:[#allocation34_spill] sm:$0xff] %v3699_v47 }
 0x10e   :  { %5729 = vst [vmem:[#allocation11_spill] sm:$0xff] %v3593_v22  ;;  %v3597_v24 = vpop.f32.mrb[23].mxu1  ;;  %v744_v22 = vmul.f32 2.0, %v308_v51  ;;  %5743 = vst [vmem:[#allocation25_spill] sm:$0xff] %v3655_v2 }
 0x10f   :  { %5730 = vst [vmem:[#allocation12_spill] sm:$0xff] %v3597_v24  ;;  %v3616_v24 = vpop.permute.xlu1 %895 }
 0x110   :  { %v3605_v31 = vpop.f32.mrb[24].mxu0  ;;  %v3641_v32 = vsub.f32 %v3576_v9, %v744_v22  ;;  %v756_v22 = vmul.f32 2.0, %v326_v3  ;;  %v3673_v3 = vsub.f32 %v3595_v23, %v752_v26 }
 0x111   :  { %v3612_v14 = vpop.f32.mrb[24].mxu1  ;;  %v3614_v8 = vpop.f32.mrb[25].mxu0 }
 0x112   :  { %5734 = vst [vmem:[#allocation16_spill] sm:$0xff] %v3614_v8  ;;  %v3618_v15 = vpop.f32.mrb[25].mxu1  ;;  %v3630_v8 = vsub.f32 %v3572_v6, %v740_v11  ;;  %5740 = vst [vmem:[#allocation22_spill] sm:$0xff] %v3641_v32  ;;  %v3645_v11 = vsub.f32 %v3538_v49, %v722_v19  ;;  %v725_v19 = vmul.f32 2.0, %v3512_v33  ;;  %v3687_v26 = vsub.f32 %v3616_v24, %v756_v22 }
 0x113   :  { %5735 = vst [vmem:[#allocation17_spill] sm:$0xff] %v3618_v15  ;;  %5747 = vst [vmem:[#allocation29_spill] sm:$0xff] %v3673_v3 }
 0x114   :  { %v350_v46 = vpop.f32.mrb[26].mxu0  ;;  %5737 = vst [vmem:[#allocation19_spill] sm:$0xff] %v3630_v8  ;;  %5741 = vst [vmem:[#allocation23_spill] sm:$0xff] %v3645_v11  ;;  %v1210_v33 = vmin.f32 %v3645_v11, %v3648_v57  ;;  %v3695_v57 = vsub.f32 %v3550_v56, %v725_v19  ;;  %v768_v19 = vmul.f32 2.0, %v3605_v31 }
 0x115   :  { %v3632_v15 = vpop.f32.mrb[26].mxu1  ;;  %v3634_v35 = vpop.f32.mrb[27].mxu0  ;;  %5750 = vst [vmem:[#allocation32_spill] sm:$0xff] %v3687_v26  ;;  %v772_v31 = vmul.f32 2.0, %v350_v46 }
 0x116   :  { %5738 = vst [vmem:[#allocation20_spill] sm:$0xff] %v3634_v35  ;;  %v3637_v51 = vpop.f32.mrb[27].mxu1  ;;  %v3651_v35 = vpop.permute.xlu1 %905  ;;  %5751 = vst [vmem:[#allocation33_spill] sm:$0xff] %v3695_v57  ;;  %v1211_v38 = vmin.f32 %v1210_v33, %v3663_v20  ;;  %v729_v33 = vmul.f32 2.0, %v3518_v36  ;;  %v750_v20 = vmul.f32 2.0, %v3552_v58 }
 0x117   :  { %5739 = vst [vmem:[#allocation21_spill] sm:$0xff] %v3637_v51  ;;  %v1140_v51 = vmin.f32 %v1139_v29, %v3630_v8  ;;  %v723_v29 = vmul.f32 2.0, %v3508_v30  ;;  %v760_v8 = vmul.f32 2.0, %v332_v10  ;;  %v727_v30 = vmul.f32 2.0, %v3514_v34 }
 0x118   :  { %v356_v7 = vpop.f32.mrb[28].mxu0  ;;  %v764_v10 = vmul.f32 2.0, %v3586_v18  ;;  %v746_v34 = vmul.f32 2.0, %v3542_v52  ;;  %v1212_v39 = vmin.f32 %v1211_v38, %v3681_v43  ;;  %v3717_v52 = vsub.f32 %v3572_v6, %v742_v27 }
 0x119   :  { %v3657_v62 = vpop.f32.mrb[28].mxu1  ;;  %v3659_v28 = vpop.f32.mrb[29].mxu0  ;;  %v1141_v13 = vmin.f32 %v1140_v51, %v3641_v32  ;;  %v3707_v18 = vsub.f32 %v3538_v49, %v723_v29  ;;  %v3723_v29 = vsub.f32 %v3550_v56, %v727_v30  ;;  %v754_v56 = vmul.f32 2.0, %v3560_v63 }
 0x11a   :  { %5744 = vst [vmem:[#allocation26_spill] sm:$0xff] %v3659_v28  ;;  %v3668_v60 = vpop.f32.mrb[29].mxu1  ;;  %v3676_v28 = vsub.f32 %v3538_v49, %v721_v16  ;;  %5756 = vst [vmem:[#allocation38_spill] sm:$0xff] %v3717_v52  ;;  %v1213_v58 = vmin.f32 %v1212_v39, %v3699_v47  ;;  %v3737_v43 = vsub.f32 %v3576_v9, %v746_v34  ;;  %v758_v63 = vmul.f32 2.0, %v3568_v4 }
 0x11b   :  { %5746 = vst [vmem:[#allocation28_spill] sm:$0xff] %v3668_v60  ;;  %v1142_v51 = vmin.f32 %v1141_v13, %v3655_v2  ;;  %v3702_v13 = vpop.permute.xlu1 %915  ;;  %5754 = vst [vmem:[#allocation36_spill] sm:$0xff] %v3707_v18  ;;  %v3711_v2 = vsub.f32 %v3626_v25, %v760_v8  ;;  %v3752_v34 = vsub.f32 %v3584_v17, %v750_v20  ;;  %v733_v20 = vmul.f32 2.0, %v3524_v40 }
 0x11c   :  { %5748 = vst [vmem:[#allocation30_spill] sm:$0xff] %v3676_v28  ;;  %v362_v60 = vpop.f32.mrb[30].mxu0  ;;  %5757 = vst [vmem:[#allocation39_spill] sm:$0xff] %v3723_v29  ;;  %v1173_v27 = vmin.f32 %v3676_v28, %v3695_v57  ;;  %v1214_v39 = vmin.f32 %v1213_v58, %v3717_v52  ;;  %v3770_v4 = vsub.f32 %v3595_v23, %v754_v56 }
 0x11d   :  { %v3690_v16 = vpop.f32.mrb[30].mxu1  ;;  %v3692_v32 = vpop.f32.mrb[31].mxu0  ;;  %v1143_v11 = vmin.f32 %v1142_v51, %v3673_v3  ;;  %5755 = vst [vmem:[#allocation37_spill] sm:$0xff] %v3711_v2  ;;  %v3727_v51 = vsub.f32 %v3651_v35, %v764_v10  ;;  %5759 = vst [vmem:[#allocation41_spill] sm:$0xff] %v3737_v43  ;;  %v3745_v10 = vsub.f32 %v3666_v42, %v768_v19 }
 0x11e   :  { %v3704_v22 = vpop.f32.mrb[31].mxu1  ;;  %v3748_v3 = vsub.f32 %v3546_v54, %v729_v33  ;;  %5762 = vst [vmem:[#allocation44_spill] sm:$0xff] %v3752_v34  ;;  %v780_v33 = vmul.f32 2.0, %v362_v60  ;;  %v1215_v52 = vmin.f32 %v1214_v39, %v3737_v43  ;;  %5764 = vst [vmem:[#allocation46_spill] sm:$0xff] %v3770_v4  ;;  %v3787_v43 = vsub.f32 %v3616_v24, %v758_v63 }
 0x11f   :  { %5753 = vst [vmem:[#allocation35_spill] sm:$0xff] %v3704_v22  ;;  %v3720_v22 = vpop.permute.xlu0 %920  ;;  %v1144_v8 = vmin.f32 %v1143_v11, %v3687_v26  ;;  %5758 = vst [vmem:[#allocation40_spill] sm:$0xff] %v3727_v51  ;;  %v731_v11 = vmul.f32 2.0, %v3520_v37  ;;  %v776_v26 = vmul.f32 2.0, %v356_v7  ;;  %v3754_v57 = vpop.permute.xlu1 %925  ;;  %v1247_v37 = vmin.f32 %v3707_v18, %v3723_v29 }
 0x120   :  { %v368_v49 = vpop.f32.mrb[32].mxu0  ;;  %5760 = vst [vmem:[#allocation42_spill] sm:$0xff] %v3745_v10  ;;  %5761 = vst [vmem:[#allocation43_spill] sm:$0xff] %v3748_v3  ;;  %v3761_v7 = vsub.f32 %v3702_v13, %v772_v31  ;;  %v762_v29 = vmul.f32 2.0, %v3578_v12  ;;  %v1174_v39 = vmin.f32 %v1173_v27, %v3748_v3  ;;  %v1216_v56 = vmin.f32 %v1215_v52, %v3752_v34 }
 0x121   :  { %v3729_v36 = vpop.f32.mrb[32].mxu1  ;;  %v3731_v38 = vpop.f32.mrb[33].mxu0  ;;  %v1145_v46 = vmin.f32 %v1144_v8, %v3711_v2  ;;  %v3778_v31 = vsub.f32 %v3546_v54, %v731_v11  ;;  %v3782_v18 = vsub.f32 %v3720_v22, %v776_v26  ;;  %v784_v40 = vmul.f32 2.0, %v368_v49  ;;  %5767 = vst [vmem:[#allocation49_spill] sm:$0xff] %v3787_v43 }
 0x122   :  { %v3740_v30 = vpop.f32.mrb[33].mxu1  ;;  %5763 = vst [vmem:[#allocation45_spill] sm:$0xff] %v3761_v7  ;;  %v766_v12 = vmul.f32 2.0, %v3591_v21  ;;  %v735_v2 = vmul.f32 2.0, %v3526_v41  ;;  %v3793_v11 = vsub.f32 %v3754_v57, %v780_v33  ;;  %v3800_v52 = vsub.f32 %v3558_v61, %v733_v20 }
 0x123   :  { %v1146_v19 = vmin.f32 %v1145_v46, %v3727_v51  ;;  %v3772_v47 = vpop.permute.xlu0 %930  ;;  %5765 = vst [vmem:[#allocation47_spill] sm:$0xff] %v3778_v31  ;;  %5766 = vst [vmem:[#allocation48_spill] sm:$0xff] %v3782_v18  ;;  %v1217_v27 = vmin.f32 %v1216_v56, %v3770_v4  ;;  %v3803_v63 = vpop.permute.xlu1 %935  ;;  %v3806_v21 = vsub.f32 %v3626_v25, %v762_v29  ;;  %v770_v41 = vmul.f32 2.0, %v3612_v14 }
 0x124   :  { %v374_v28 = vpop.f32.mrb[34].mxu0  ;;  %5768 = vst [vmem:[#allocation50_spill] sm:$0xff] %v3793_v11  ;;  %5769 = vst [vmem:[#allocation51_spill] sm:$0xff] %v3800_v52  ;;  %v3814_v3 = vsub.f32 %v3772_v47, %v784_v40  ;;  %v739_v34 = vmul.f32 2.0, %v3532_v45  ;;  %v3821_v29 = vsub.f32 %v3651_v35, %v766_v12  ;;  %v774_v14 = vmul.f32 2.0, %v3632_v15 }
 0x125   :  { %v3763_v8 = vpop.f32.mrb[34].mxu1  ;;  %v3765_v58 = vpop.f32.mrb[35].mxu0  ;;  %v1147_v60 = vmin.f32 %v1146_v19, %v3745_v10  ;;  %v788_v26 = vmul.f32 2.0, %v374_v28  ;;  %5770 = vst [vmem:[#allocation52_spill] sm:$0xff] %v3806_v21  ;;  %v737_v28 = vmul.f32 2.0, %v3530_v44  ;;  %v1218_v56 = vmin.f32 %v1217_v27, %v3787_v43 }
 0x126   :  { %v3775_v46 = vpop.f32.mrb[35].mxu1  ;;  %5771 = vst [vmem:[#allocation53_spill] sm:$0xff] %v3814_v3  ;;  %5772 = vst [vmem:[#allocation54_spill] sm:$0xff] %v3821_v29  ;;  %v1248_v44 = vmin.f32 %v1247_v37, %v3778_v31  ;;  %v3832_v27 = vsub.f32 %v3558_v61, %v735_v2  ;;  %v3836_v43 = vsub.f32 %v3666_v42, %v770_v41  ;;  %v778_v15 = vmul.f32 2.0, %v3657_v62 }
 0x127   :  { %v1148_v54 = vmin.f32 %v1147_v60, %v3761_v7  ;;  %v3818_v4 = vpop.permute.xlu0 %940  ;;  %v3827_v40 = vsub.f32 %v3803_v63, %v788_v26  ;;  %v1219_v12 = vmin.f32 %v1218_v56, %v3806_v21  ;;  %v3843_v26 = vsub.f32 %v3564_v1, %v737_v28  ;;  %v3852_v2 = vpop.permute.xlu1 %945 }
 0x128   :  { %v380_v51 = vpop.f32.mrb[36].mxu0  ;;  %5774 = vst [vmem:[#allocation56_spill] sm:$0xff] %v3832_v27  ;;  %5775 = vst [vmem:[#allocation57_spill] sm:$0xff] %v3836_v43  ;;  %v3850_v61 = vsub.f32 %v3564_v1, %v739_v34  ;;  %v3856_v62 = vsub.f32 %v3702_v13, %v774_v14  ;;  %v741_v28 = vmul.f32 2.0, %v3536_v48  ;;  %v743_v21 = vmul.f32 2.0, %v3540_v50 }
 0x129   :  { %v3795_v19 = vpop.f32.mrb[36].mxu1  ;;  %v3797_v49 = vpop.f32.mrb[37].mxu0  ;;  %v1149_v33 = vmin.f32 %v1148_v54, %v3782_v18  ;;  %v792_v20 = vmul.f32 2.0, %v380_v51  ;;  %5773 = vst [vmem:[#allocation55_spill] sm:$0xff] %v3827_v40  ;;  %5776 = vst [vmem:[#allocation58_spill] sm:$0xff] %v3843_v26  ;;  %v1220_v41 = vmin.f32 %v1219_v12, %v3821_v29  ;;  %v786_v48 = vmul.f32 2.0, %v3729_v36 }
 0x12a   :  { %v3809_v60 = vpop.f32.mrb[37].mxu1  ;;  %5778 = vst [vmem:[#allocation60_spill] sm:$0xff] %v3850_v61  ;;  %5779 = vst [vmem:[#allocation61_spill] sm:$0xff] %v3856_v62  ;;  %v745_v50 = vmul.f32 2.0, %v3544_v53  ;;  %v790_v36 = vmul.f32 2.0, %v3763_v8  ;;  %v3898_v53 = vsub.f32 %v3572_v6, %v743_v21 }
 0x12b   :  { %v1150_v54 = vmin.f32 %v1149_v33, %v3793_v11  ;;  %v1175_v33 = vmin.f32 %v1174_v39, %v3800_v52  ;;  %v3847_v31 = vsub.f32 %v3818_v4, %v792_v20  ;;  %v782_v39 = vmul.f32 2.0, %v3690_v16  ;;  %v3867_v12 = vpop.permute.xlu0 %950 }
 0x12c   :  { %v386_v7 = vpop.f32.mrb[38].mxu0  ;;  %v1221_v14 = vmin.f32 %v1220_v41, %v3836_v43  ;;  %v3871_v16 = vsub.f32 %v3720_v22, %v778_v15  ;;  %5785 = vst [vmem:[#allocation67_spill] sm:$0xff] %v3898_v53  ;;  %v3916_v21 = vsub.f32 %v3576_v9, %v745_v50 }
 0x12d   :  { %v796_v51 = vmul.f32 2.0, %v386_v7  ;;  %v643_v18 = vpop.f32.mrb[38].mxu1  ;;  %v3829_v45 = vpop.f32.mrb[39].mxu0  ;;  %v1151_v7 = vmin.f32 %v1150_v54, %v3814_v3  ;;  %5777 = vst [vmem:[#allocation59_spill] sm:$0xff] %v3847_v31  ;;  %v3885_v15 = vsub.f32 %v3754_v57, %v782_v39 }
 0x12e   :  { %v3839_v37 = vpop.f32.mrb[39].mxu1  ;;  %5781 = vst [vmem:[#allocation63_spill] sm:$0xff] %v3871_v16  ;;  %v1222_v41 = vmin.f32 %v1221_v14, %v3856_v62  ;;  %v3900_v39 = vpop.permute.xlu1 %955  ;;  %v3904_v14 = vsub.f32 %v3772_v47, %v786_v48  ;;  %5788 = vst [vmem:[#allocation70_spill] sm:$0xff] %v3916_v21  ;;  %v3920_v48 = vsub.f32 %v3803_v63, %v790_v36 }
 0x12f   :  { %v1152_v54 = vmin.f32 %v1151_v7, %v3827_v40  ;;  %v3862_v20 = vsub.f32 %v3852_v2, %v796_v51  ;;  %v1249_v51 = vmin.f32 %v1248_v44, %v3832_v27  ;;  %v1176_v7 = vmin.f32 %v1175_v33, %v3843_v26  ;;  %5783 = vst [vmem:[#allocation65_spill] sm:$0xff] %v3885_v15 }
 0x130   :  { %v392_v56 = vpop.f32.mrb[40].mxu0  ;;  %v3892_v44 = vsub.f32 %v3572_v6, %v741_v28  ;;  %v1223_v8 = vmin.f32 %v1222_v41, %v3871_v16  ;;  %5786 = vst [vmem:[#allocation68_spill] sm:$0xff] %v3904_v14  ;;  %5789 = vst [vmem:[#allocation71_spill] sm:$0xff] %v3920_v48 }
 0x131   :  { %5780 = vst [vmem:[#allocation62_spill] sm:$0xff] %v3862_v20  ;;  %v800_v52 = vmul.f32 2.0, %v392_v56  ;;  %v649_v1 = vpop.f32.mrb[40].mxu1  ;;  %v3864_v34 = vpop.f32.mrb[41].mxu0  ;;  %v1153_v56 = vmin.f32 %v1152_v54, %v3847_v31  ;;  %v3889_v3 = vmin.f32 %v1249_v51, %v3850_v61  ;;  %v794_v51 = vmul.f32 2.0, %v3795_v19  ;;  %v5797_v31 = vld [vmem:[#allocation8_spill] sm:$0xff] }
 0x132   :  { %v3874_v29 = vpop.f32.mrb[41].mxu1  ;;  %5784 = vst [vmem:[#allocation66_spill] sm:$0xff] %v3892_v44  ;;  %v1224_v41 = vmin.f32 %v1223_v8, %v3885_v15  ;;  %v798_v19 = vmul.f32 2.0, %v643_v18  ;;  %v1177_v16 = vmin.f32 %v1176_v7, %v3892_v44  ;;  %v802_v8 = vmul.f32 2.0, %v649_v1 }
 0x133   :  { %v3880_v40 = vsub.f32 %v3867_v12, %v800_v52  ;;  %v1154_v33 = vmin.f32 %v1153_v56, %v3862_v20  ;;  %v747_v56 = vmul.f32 2.0, %v3548_v55  ;;  %v753_v55 = vmul.f32 2.0, %v3562_v0  ;;  %v3929_v20 = vpop.permute.xlu0 %960 }
 0x134   :  { %v398_v43 = vpop.f32.mrb[42].mxu0  ;;  %v1251_v50 = vmin.f32 %v3889_v3, %v3898_v53  ;;  %v1225_v36 = vmin.f32 %v1224_v41, %v3904_v14  ;;  %v3933_v18 = vsub.f32 %v3818_v4, %v794_v51  ;;  %v1178_v53 = vmin.f32 %v1177_v16, %v3916_v21  ;;  %v5795_v14 = vld [vmem:[#allocation5_spill] sm:$0xff]  ;;  %v3960_v21 = vpop.permute.xlu1 %965 }
 0x135   :  { %5782 = vst [vmem:[#allocation64_spill] sm:$0xff] %v3880_v40  ;;  %v804_v52 = vmul.f32 2.0, %v398_v43  ;;  %v655_v54 = vpop.f32.mrb[42].mxu1  ;;  %v3895_v27 = vpop.f32.mrb[43].mxu0  ;;  %v749_v43 = vmul.f32 2.0, %v3554_v59  ;;  %v1155_v61 = vmin.f32 %v1154_v33, %v3880_v40  ;;  %v3938_v0 = vsub.f32 %v3576_v9, %v747_v56 }
 0x136   :  { %v3907_v28 = vpop.f32.mrb[43].mxu1  ;;  %5790 = vst [vmem:[#allocation72_spill] sm:$0xff] %v3933_v18  ;;  %v1226_v41 = vmin.f32 %v1225_v36, %v3920_v48  ;;  %v3950_v51 = vsub.f32 %v3852_v2, %v798_v19  ;;  %v806_v1 = vmul.f32 2.0, %v655_v54  ;;  %v751_v9 = vmul.f32 2.0, %v5795_v14  ;;  %v5799_v48 = vld [vmem:[#allocation6_spill] sm:$0xff] }
 0x137   :  { %v3913_v6 = vsub.f32 %v3900_v39, %v804_v52  ;;  %5791 = vst [vmem:[#allocation73_spill] sm:$0xff] %v3938_v0  ;;  %v3954_v56 = vsub.f32 %v3595_v23, %v753_v55  ;;  %v761_v16 = vmul.f32 2.0, %v5797_v31  ;;  %v3964_v54 = vsub.f32 %v3867_v12, %v802_v8  ;;  %v5802_v31 = vld [vmem:[#allocation11_spill] sm:$0xff] }
 0x138   :  { %v404_v26 = vpop.f32.mrb[44].mxu0  ;;  %5794 = vst [vmem:[#allocation76_spill] sm:$0xff] %v3950_v51  ;;  %v1227_v19 = vmin.f32 %v1226_v41, %v3933_v18  ;;  %v765_v10 = vmul.f32 2.0, %v5802_v31  ;;  %v3979_v8 = vsub.f32 %v3900_v39, %v806_v1  ;;  %v3989_v31 = vpop.permute.xlu0 %970 }
 0x139   :  { %5787 = vst [vmem:[#allocation69_spill] sm:$0xff] %v3913_v6  ;;  %v1156_v59 = vmin.f32 %v1155_v61, %v3913_v6  ;;  %v808_v33 = vmul.f32 2.0, %v404_v26  ;;  %v661_v62 = vpop.f32.mrb[44].mxu1  ;;  %v3925_v52 = vpop.f32.mrb[45].mxu0  ;;  %v3941_v26 = vsub.f32 %v3584_v17, %v749_v43  ;;  %v757_v61 = vmul.f32 2.0, %v3570_v5  ;;  %5796 = vst [vmem:[#allocation5_spill] sm:$0xff] %v3954_v56 }
 0x13a   :  { %v3935_v7 = vpop.f32.mrb[45].mxu1  ;;  %5798 = vst [vmem:[#allocation8_spill] sm:$0xff] %v3964_v54  ;;  %v810_v36 = vmul.f32 2.0, %v661_v62  ;;  %v1228_v41 = vmin.f32 %v1227_v19, %v3950_v51  ;;  %5803 = vst [vmem:[#allocation11_spill] sm:$0xff] %v3979_v8 }
 0x13b   :  { %5792 = vst [vmem:[#allocation74_spill] sm:$0xff] %v3941_v26  ;;  %v3945_v3 = vsub.f32 %v3929_v20, %v808_v33  ;;  %v1179_v55 = vmin.f32 %v1178_v53, %v3941_v26 }
 0x13c   :  { %v410_v44 = vpop.f32.mrb[46].mxu0  ;;  %v1229_v1 = vmin.f32 %v1228_v41, %v3964_v54  ;;  %v4009_v41 = vsub.f32 %v3651_v35, %v765_v10  ;;  %v4021_v10 = vpop.permute.xlu1 %975 }
 0x13d   :  { %5793 = vst [vmem:[#allocation75_spill] sm:$0xff] %v3945_v3  ;;  %v1157_v43 = vmin.f32 %v1156_v59, %v3945_v3  ;;  %v812_v5 = vmul.f32 2.0, %v410_v44  ;;  %v667_v15 = vpop.f32.mrb[46].mxu1  ;;  %v3957_v33 = vpop.f32.mrb[47].mxu0  ;;  %v755_v59 = vmul.f32 2.0, %v5799_v48  ;;  %v3971_v44 = vsub.f32 %v3616_v24, %v757_v61 }
 0x13e   :  { %v3966_v14 = vpop.f32.mrb[47].mxu1  ;;  %v814_v62 = vmul.f32 2.0, %v667_v15  ;;  %v1252_v3 = vmin.f32 %v1251_v50, %v3938_v0  ;;  %v1180_v53 = vmin.f32 %v1179_v55, %v3954_v56  ;;  %v3993_v15 = vsub.f32 %v3929_v20, %v810_v36  ;;  %5810 = vst [vmem:[#allocation82_spill] sm:$0xff] %v4009_v41 }
 0x13f   :  { %5800 = vst [vmem:[#allocation6_spill] sm:$0xff] %v3971_v44  ;;  %v3974_v11 = vsub.f32 %v3960_v21, %v812_v5  ;;  %v3987_v5 = vsub.f32 %v3626_v25, %v761_v16  ;;  %v3998_v55 = vsub.f32 %v3584_v17, %v751_v9  ;;  %v5812_v9 = vld [vmem:[#allocation7_spill] sm:$0xff] }
 0x140   :  { %v416_v18 = vpop.f32.mrb[48].mxu0  ;;  %5805 = vst [vmem:[#allocation79_spill] sm:$0xff] %v3993_v15  ;;  %v1181_v56 = vmin.f32 %v1180_v53, %v3971_v44  ;;  %v4013_v36 = vsub.f32 %v3960_v21, %v814_v62  ;;  %v759_v54 = vmul.f32 2.0, %v5812_v9 }
 0x141   :  { %5801 = vst [vmem:[#allocation77_spill] sm:$0xff] %v3974_v11  ;;  %v1158_v48 = vmin.f32 %v1157_v43, %v3974_v11  ;;  %v816_v61 = vmul.f32 2.0, %v416_v18  ;;  %v673_v26 = vpop.f32.mrb[48].mxu1  ;;  %v3984_v6 = vpop.f32.mrb[49].mxu0  ;;  %5804 = vst [vmem:[#allocation78_spill] sm:$0xff] %v3987_v5  ;;  %v4001_v18 = vsub.f32 %v3595_v23, %v755_v59  ;;  %v5808_v43 = vld [vmem:[#allocation16_spill] sm:$0xff] }
 0x142   :  { %v818_v19 = vmul.f32 2.0, %v673_v26  ;;  %v3995_v50 = vpop.f32.mrb[49].mxu1  ;;  %5806 = vst [vmem:[#allocation80_spill] sm:$0xff] %v3998_v55  ;;  %v769_v0 = vmul.f32 2.0, %v5808_v43  ;;  %v1230_v26 = vmin.f32 %v1229_v1, %v3979_v8  ;;  %5811 = vst [vmem:[#allocation83_spill] sm:$0xff] %v4013_v36  ;;  %v5813_v23 = vld [vmem:[#allocation20_spill] sm:$0xff]  ;;  %v1182_v53 = vmin.f32 %v1181_v56, %v3987_v5 }
 0x143   :  { %5807 = vst [vmem:[#allocation81_spill] sm:$0xff] %v4001_v18  ;;  %v4005_v16 = vsub.f32 %v3989_v31, %v816_v61  ;;  %v773_v59 = vmul.f32 2.0, %v5813_v23  ;;  %v1253_v56 = vmin.f32 %v1252_v3, %v3998_v55 }
 0x144   :  { %v422_v17 = vpop.f32.mrb[50].mxu0  ;;  %v1231_v1 = vmin.f32 %v1230_v26, %v3993_v15  ;;  %v4025_v62 = vsub.f32 %v3989_v31, %v818_v19  ;;  %v4030_v9 = vsub.f32 %v3666_v42, %v769_v0  ;;  %v1183_v5 = vmin.f32 %v1182_v53, %v4009_v41  ;;  %v5821_v41 = vld [vmem:[#allocation9_spill] sm:$0xff] }
 0x145   :  { %5809 = vst [vmem:[#allocation16_spill] sm:$0xff] %v4005_v16  ;;  %v1159_v43 = vmin.f32 %v1158_v48, %v4005_v16  ;;  %v820_v51 = vmul.f32 2.0, %v422_v17  ;;  %v679_v61 = vpop.f32.mrb[50].mxu1  ;;  %v4018_v11 = vpop.f32.mrb[51].mxu0  ;;  %v5816_v48 = vld [vmem:[#allocation26_spill] sm:$0xff]  ;;  %v4043_v15 = vsub.f32 %v3702_v13, %v773_v59  ;;  %v781_v0 = vmul.f32 2.0, %v3692_v32 }
 0x146   :  { %5814 = vst [vmem:[#allocation7_spill] sm:$0xff] %v4025_v62  ;;  %v822_v44 = vmul.f32 2.0, %v679_v61  ;;  %v4027_v8 = vpop.f32.mrb[51].mxu1  ;;  %5815 = vst [vmem:[#allocation20_spill] sm:$0xff] %v4030_v9  ;;  %v777_v17 = vmul.f32 2.0, %v5816_v48  ;;  %v1232_v26 = vmin.f32 %v1231_v1, %v4013_v36  ;;  %v1254_v3 = vmin.f32 %v1253_v56, %v4001_v18  ;;  %v4053_v1 = vpop.permute.xlu0 %980  ;;  %v5824_v56 = vld [vmem:[#allocation12_spill] sm:$0xff] }
 0x147   :  { %v4034_v23 = vsub.f32 %v4021_v10, %v820_v51  ;;  %5819 = vst [vmem:[#allocation85_spill] sm:$0xff] %v4043_v15  ;;  %v4051_v53 = vsub.f32 %v3616_v24, %v759_v54  ;;  %v763_v32 = vmul.f32 2.0, %v5821_v41  ;;  %v767_v24 = vmul.f32 2.0, %v5824_v56 }
 0x148   :  { %v4040_v19 = vsub.f32 %v4021_v10, %v822_v44  ;;  %v428_v61 = vpop.f32.mrb[52].mxu0  ;;  %v1233_v44 = vmin.f32 %v1232_v26, %v4025_v62  ;;  %v785_v54 = vmul.f32 2.0, %v3731_v38  ;;  %v4080_v38 = vpop.permute.xlu1 %985 }
 0x149   :  { %5817 = vst [vmem:[#allocation26_spill] sm:$0xff] %v4034_v23  ;;  %v1160_v48 = vmin.f32 %v1159_v43, %v4034_v23  ;;  %v824_v16 = vmul.f32 2.0, %v428_v61  ;;  %v685_v51 = vpop.f32.mrb[52].mxu1  ;;  %v4047_v40 = vpop.f32.mrb[53].mxu0  ;;  %5820 = vst [vmem:[#allocation86_spill] sm:$0xff] %v4051_v53  ;;  %v1184_v43 = vmin.f32 %v1183_v5, %v4030_v9  ;;  %v4061_v61 = vsub.f32 %v3720_v22, %v777_v17 }
 0x14a   :  { %5818 = vst [vmem:[#allocation84_spill] sm:$0xff] %v4040_v19  ;;  %v826_v55 = vmul.f32 2.0, %v685_v51  ;;  %v4056_v59 = vpop.f32.mrb[53].mxu1  ;;  %v1234_v18 = vmin.f32 %v1233_v44, %v4040_v19  ;;  %v4074_v5 = vsub.f32 %v3754_v57, %v781_v0  ;;  %v1255_v56 = vmin.f32 %v1254_v3, %v4051_v53 }
 0x14b   :  { %5822 = vst [vmem:[#allocation9_spill] sm:$0xff] %v4061_v61  ;;  %v4064_v36 = vsub.f32 %v4053_v1, %v824_v16  ;;  %v1185_v41 = vmin.f32 %v1184_v43, %v4043_v15  ;;  %v789_v44 = vmul.f32 2.0, %v3765_v58  ;;  %v4087_v0 = vsub.f32 %v3626_v25, %v763_v32  ;;  %v5828_v43 = vld [vmem:[#allocation17_spill] sm:$0xff] }
 0x14c   :  { %v4070_v26 = vsub.f32 %v4053_v1, %v826_v55  ;;  %v434_v51 = vpop.f32.mrb[54].mxu0  ;;  %5826 = vst [vmem:[#allocation88_spill] sm:$0xff] %v4074_v5  ;;  %v4095_v3 = vsub.f32 %v3651_v35, %v767_v24  ;;  %v4098_v58 = vsub.f32 %v3772_v47, %v785_v54  ;;  %v5833_v32 = vld [vmem:[#allocation21_spill] sm:$0xff]  ;;  %v4109_v35 = vpop.permute.xlu0 %990 }
 0x14d   :  { %5823 = vst [vmem:[#allocation87_spill] sm:$0xff] %v4064_v36  ;;  %v1161_v17 = vmin.f32 %v1160_v48, %v4064_v36  ;;  %v828_v9 = vmul.f32 2.0, %v434_v51  ;;  %v691_v16 = vpop.f32.mrb[54].mxu1  ;;  %v4077_v62 = vpop.f32.mrb[55].mxu0  ;;  %5827 = vst [vmem:[#allocation89_spill] sm:$0xff] %v4087_v0  ;;  %v771_v48 = vmul.f32 2.0, %v5828_v43  ;;  %v1186_v51 = vmin.f32 %v1185_v41, %v4061_v61 }
 0x14e   :  { %5825 = vst [vmem:[#allocation12_spill] sm:$0xff] %v4070_v26  ;;  %v1235_v55 = vmin.f32 %v1234_v18, %v4070_v26  ;;  %v830_v19 = vmul.f32 2.0, %v691_v16  ;;  %v4084_v23 = vpop.f32.mrb[55].mxu1  ;;  %5830 = vst [vmem:[#allocation90_spill] sm:$0xff] %v4095_v3  ;;  %v793_v18 = vmul.f32 2.0, %v3797_v49  ;;  %v775_v53 = vmul.f32 2.0, %v5833_v32 }
 0x14f   :  { %v4092_v15 = vsub.f32 %v4080_v38, %v828_v9  ;;  %5831 = vst [vmem:[#allocation91_spill] sm:$0xff] %v4098_v58  ;;  %v1187_v43 = vmin.f32 %v1186_v51, %v4074_v5  ;;  %v4112_v24 = vsub.f32 %v3803_v63, %v789_v44  ;;  %v797_v49 = vmul.f32 2.0, %v3829_v45 }
 0x150   :  { %v4102_v16 = vsub.f32 %v4080_v38, %v830_v19  ;;  %v440_v25 = vpop.f32.mrb[56].mxu0  ;;  %v1256_v51 = vmin.f32 %v1255_v56, %v4087_v0  ;;  %v801_v45 = vmul.f32 2.0, %v3864_v34 }
 0x151   :  { %5829 = vst [vmem:[#allocation17_spill] sm:$0xff] %v4092_v15  ;;  %v1162_v41 = vmin.f32 %v1161_v17, %v4092_v15  ;;  %v832_v9 = vmul.f32 2.0, %v440_v25  ;;  %v697_v61 = vpop.f32.mrb[56].mxu1  ;;  %v4107_v26 = vpop.f32.mrb[57].mxu0  ;;  %5834 = vst [vmem:[#allocation21_spill] sm:$0xff] %v4112_v24  ;;  %v4120_v17 = vsub.f32 %v3666_v42, %v771_v48  ;;  %v5836_v25 = vld [vmem:[#allocation28_spill] sm:$0xff]  ;;  %v1188_v44 = vmin.f32 %v1187_v43, %v4098_v58 }
 0x152   :  { %5832 = vst [vmem:[#allocation92_spill] sm:$0xff] %v4102_v16  ;;  %v1236_v19 = vmin.f32 %v1235_v55, %v4102_v16  ;;  %v834_v54 = vmul.f32 2.0, %v697_v61  ;;  %v4116_v36 = vpop.f32.mrb[57].mxu1  ;;  %v779_v32 = vmul.f32 2.0, %v5836_v25  ;;  %v4128_v15 = vsub.f32 %v3818_v4, %v793_v18  ;;  %v4141_v43 = vpop.permute.xlu1 %995  ;;  %v5908_v16 = vld [vmem:[#allocation27_spill] sm:$0xff] }
 0x153   :  { %5835 = vst [vmem:[#allocation93_spill] sm:$0xff] %v4120_v17  ;;  %v4124_v5 = vsub.f32 %v4109_v35, %v832_v9  ;;  %v1257_v56 = vmin.f32 %v1256_v51, %v4095_v3  ;;  %v4136_v42 = vsub.f32 %v3702_v13, %v775_v53  ;;  %v1189_v18 = vmin.f32 %v1188_v44, %v4112_v24  ;;  %v5842_v3 = vld [vmem:[#allocation35_spill] sm:$0xff] }
 0x154   :  { %5837 = vst [vmem:[#allocation28_spill] sm:$0xff] %v4128_v15  ;;  %v4132_v61 = vsub.f32 %v4109_v35, %v834_v54  ;;  %v446_v55 = vpop.f32.mrb[58].mxu0  ;;  %v4145_v34 = vsub.f32 %v3852_v2, %v797_v49  ;;  %v4152_v53 = vsub.f32 %v3720_v22, %v779_v32  ;;  %v783_v44 = vmul.f32 2.0, %v5842_v3  ;;  %v4171_v3 = vpop.permute.xlu0 %1000 }
 0x155   :  { %5839 = vst [vmem:[#allocation95_spill] sm:$0xff] %v4136_v42  ;;  %v1163_v48 = vmin.f32 %v1162_v41, %v4124_v5  ;;  %v836_v9 = vmul.f32 2.0, %v446_v55  ;;  %v703_v25 = vpop.f32.mrb[58].mxu1  ;;  %v4139_v0 = vpop.f32.mrb[59].mxu0  ;;  %v1258_v13 = vmin.f32 %v1257_v56, %v4120_v17  ;;  %v805_v41 = vmul.f32 2.0, %v3895_v27 }
 0x156   :  { %5838 = vst [vmem:[#allocation94_spill] sm:$0xff] %v4132_v61  ;;  %5840 = vst [vmem:[#allocation96_spill] sm:$0xff] %v4145_v34  ;;  %v1237_v54 = vmin.f32 %v1236_v19, %v4132_v61  ;;  %v838_v58 = vmul.f32 2.0, %v703_v25  ;;  %v4148_v51 = vpop.f32.mrb[59].mxu1  ;;  %v1190_v49 = vmin.f32 %v1189_v18, %v4128_v15  ;;  %v4161_v24 = vsub.f32 %v3867_v12, %v801_v45 }
 0x157   :  { %5841 = vst [vmem:[#allocation97_spill] sm:$0xff] %v4152_v53  ;;  %v4156_v55 = vsub.f32 %v4141_v43, %v836_v9  ;;  %v1259_v56 = vmin.f32 %v1258_v13, %v4136_v42  ;;  %v809_v22 = vmul.f32 2.0, %v3925_v52  ;;  %v787_v18 = vmul.f32 2.0, %v3740_v30 }
 0x158   :  { %5843 = vst [vmem:[#allocation35_spill] sm:$0xff] %v4161_v24  ;;  %v4164_v19 = vsub.f32 %v4141_v43, %v838_v58  ;;  %v452_v25 = vpop.f32.mrb[60].mxu0  ;;  %v1191_v45 = vmin.f32 %v1190_v49, %v4145_v34  ;;  %v4180_v52 = vsub.f32 %v3900_v39, %v805_v41  ;;  %v4187_v42 = vsub.f32 %v3754_v57, %v783_v44 }
 0x159   :  { %v1164_v27 = vmin.f32 %v1163_v48, %v4156_v55  ;;  %v840_v32 = vmul.f32 2.0, %v452_v25  ;;  %v709_v9 = vpop.f32.mrb[60].mxu1  ;;  %v4169_v17 = vpop.f32.mrb[61].mxu0  ;;  %v1260_v13 = vmin.f32 %v1259_v56, %v4152_v53  ;;  %v813_v48 = vmul.f32 2.0, %v3957_v33 }
 0x15a   :  { %5844 = vst [vmem:[#allocation98_spill] sm:$0xff] %v4164_v19  ;;  %v1238_v58 = vmin.f32 %v1237_v54, %v4164_v19  ;;  %v842_v15 = vmul.f32 2.0, %v709_v9  ;;  %v4176_v61 = vpop.f32.mrb[61].mxu1  ;;  %5845 = vst [vmem:[#allocation99_spill] sm:$0xff] %v4180_v52  ;;  %v791_v30 = vmul.f32 2.0, %v3775_v46  ;;  %v1192_v54 = vmin.f32 %v1191_v45, %v4161_v24  ;;  %v4202_v46 = vpop.permute.xlu1 %1005 }
 0x15b   :  { %v4184_v25 = vsub.f32 %v4171_v3, %v840_v32  ;;  %5846 = vst [vmem:[#allocation100_spill] sm:$0xff] %v4187_v42  ;;  %v4195_v56 = vsub.f32 %v3929_v20, %v809_v22  ;;  %v817_v41 = vmul.f32 2.0, %v3984_v6  ;;  %v4200_v57 = vsub.f32 %v3772_v47, %v787_v18 }
 0x15c   :  { %v4192_v49 = vsub.f32 %v4171_v3, %v842_v15  ;;  %v458_v9 = vpop.f32.mrb[62].mxu0  ;;  %v795_v44 = vmul.f32 2.0, %v3809_v60  ;;  %v1193_v22 = vmin.f32 %v1192_v54, %v4180_v52  ;;  %v4210_v6 = vsub.f32 %v3960_v21, %v813_v48 }
 0x15d   :  { %5848 = vst [vmem:[#allocation102_spill] sm:$0xff] %v4195_v56  ;;  %v1165_v33 = vmin.f32 %v1164_v27, %v4184_v25  ;;  %v844_v32 = vmul.f32 2.0, %v458_v9  ;;  %v715_v53 = vpop.f32.mrb[62].mxu1  ;;  %v460_v34 = vpop.f32.mrb[63].mxu0  ;;  %5849 = vst [vmem:[#allocation103_spill] sm:$0xff] %v4200_v57  ;;  %v821_v27 = vmul.f32 2.0, %v4018_v11  ;;  %v1261_v47 = vmin.f32 %v1260_v13, %v4187_v42 }
 0x15e   :  { %5847 = vst [vmem:[#allocation101_spill] sm:$0xff] %v4192_v49  ;;  %v1239_v15 = vmin.f32 %v1238_v58, %v4192_v49  ;;  %v846_v45 = vmul.f32 2.0, %v715_v53  ;;  %v4206_v24 = vpop.f32.mrb[63].mxu1  ;;  %5850 = vst [vmem:[#allocation104_spill] sm:$0xff] %v4210_v6  ;;  %v4218_v18 = vsub.f32 %v3803_v63, %v791_v30  ;;  %v799_v60 = vmul.f32 2.0, %v3839_v37  ;;  %v5901_v49 = vld [vmem:[#allocation24_spill] sm:$0xff] }
 0x15f   :  { %v4214_v9 = vsub.f32 %v4202_v46, %v844_v32  ;;  %v1194_v58 = vmin.f32 %v1193_v22, %v4195_v56  ;;  %v4226_v48 = vsub.f32 %v3989_v31, %v817_v41  ;;  %v825_v11 = vmul.f32 2.0, %v4047_v40 }
 0x160   :  { %5851 = vst [vmem:[#allocation105_spill] sm:$0xff] %v4218_v18  ;;  %v4222_v53 = vsub.f32 %v4202_v46, %v846_v45  ;;  %v1262_v32 = vmin.f32 %v1261_v47, %v4200_v57  ;;  %v4232_v13 = vsub.f32 %v3818_v4, %v795_v44  ;;  %v803_v63 = vmul.f32 2.0, %v3874_v29 }
 0x161   :  { %5853 = vst [vmem:[#allocation107_spill] sm:$0xff] %v4226_v48  ;;  %v1166_v54 = vmin.f32 %v1165_v33, %v4214_v9  ;;  %v1195_v30 = vmin.f32 %v1194_v58, %v4210_v6  ;;  %v4238_v45 = vsub.f32 %v4021_v10, %v821_v27  ;;  %v829_v41 = vmul.f32 2.0, %v4077_v62 }
 0x162   :  { %5852 = vst [vmem:[#allocation106_spill] sm:$0xff] %v4222_v53  ;;  %5854 = vst [vmem:[#allocation108_spill] sm:$0xff] %v4232_v13  ;;  %v1240_v37 = vmin.f32 %v1239_v15, %v4222_v53  ;;  %v1263_v40 = vmin.f32 %v1262_v32, %v4218_v18  ;;  %v4243_v33 = vsub.f32 %v3852_v2, %v799_v60  ;;  %v807_v4 = vmul.f32 2.0, %v3907_v28  ;;  %v5882_v18 = vld [vmem:[#allocation10_spill] sm:$0xff]  ;;  %v5900_v53 = vld [vmem:[#allocation23_spill] sm:$0xff] }
 0x163   :  { %5855 = vst [vmem:[#allocation109_spill] sm:$0xff] %v4238_v45  ;;  %v1167_v22 = vrot.slane %v1166_v54, 4  ;;  %v1196_v44 = vmin.f32 %v1195_v30, %v4226_v48  ;;  %v4248_v29 = vsub.f32 %v4053_v1, %v825_v11  ;;  %v833_v15 = vmul.f32 2.0, %v4107_v26 }
 0x164   :  { %5856 = vst [vmem:[#allocation110_spill] sm:$0xff] %v4243_v33  ;;  %v1264_v27 = vmin.f32 %v1263_v40, %v4232_v13  ;;  %v4253_v62 = vsub.f32 %v3867_v12, %v803_v63  ;;  %v811_v58 = vmul.f32 2.0, %v3935_v7  ;;  %v4258_v60 = vsub.f32 %v4080_v38, %v829_v41  ;;  %v5881_v13 = vld [vmem:[#allocation13_spill] sm:$0xff] }
 0x165   :  { %5857 = vst [vmem:[#allocation111_spill] sm:$0xff] %v4248_v29  ;;  %v1168_v47 = vmin.f32 %v1166_v54, %v1167_v22  ;;  %v1197_v2 = vmin.f32 %v1196_v44, %v4238_v45  ;;  %v837_v28 = vmul.f32 2.0, %v4139_v0  ;;  %v5668_v11 = vlaneseq }
 0x166   :  { %5858 = vst [vmem:[#allocation112_spill] sm:$0xff] %v4253_v62  ;;  %5859 = vst [vmem:[#allocation113_spill] sm:$0xff] %v4258_v60  ;;  %v1265_v30 = vmin.f32 %v1264_v27, %v4243_v33  ;;  %v4263_v26 = vsub.f32 %v3900_v39, %v807_v4  ;;  %v815_v54 = vmul.f32 2.0, %v3966_v14  ;;  %v4268_v7 = vsub.f32 %v4109_v35, %v833_v15 }
 0x167   :  { %v1169_v32 = vrot.slane %v1168_v47, 2  ;;  %v1198_v12 = vmin.f32 %v1197_v2, %v4248_v29  ;;  %v841_v63 = vmul.f32 2.0, %v4169_v17  ;;  %v4273_v0 = vsub.f32 %v3929_v20, %v811_v58 }
 0x168   :  { %5860 = vst [vmem:[#allocation114_spill] sm:$0xff] %v4263_v26  ;;  %5861 = vst [vmem:[#allocation115_spill] sm:$0xff] %v4268_v7  ;;  %v1266_v22 = vmin.f32 %v1265_v30, %v4253_v62  ;;  %v819_v40 = vmul.f32 2.0, %v3995_v50  ;;  %v4278_v4 = vsub.f32 %v4141_v43, %v837_v28  ;;  %v845_v14 = vmul.f32 2.0, %v460_v34 }
 0x169   :  { %v1170_v41 = vmin.f32 %v1168_v47, %v1169_v32  ;;  %5862 = vst [vmem:[#allocation116_spill] sm:$0xff] %v4273_v0  ;;  %v1199_v39 = vmin.f32 %v1198_v12, %v4258_v60  ;;  %v4281_v44 = vshrl.u32 %v5668_v11, 7  ;;  %v4285_v17 = vsub.f32 %v3960_v21, %v815_v54  ;;  %v5873_v11 = vld [vmem:[#allocation69_spill] sm:$0xff] }
 0x16a   :  { %5863 = vst [vmem:[#allocation117_spill] sm:$0xff] %v4278_v4  ;;  %v1267_v15 = vmin.f32 %v1266_v22, %v4263_v26  ;;  %v4289_v27 = vsub.f32 %v4171_v3, %v841_v63  ;;  %v4293_v58 = vsub.f32 %v3989_v31, %v819_v40  ;;  %v823_v34 = vmul.f32 2.0, %v4027_v8 }
 0x16b   :  { %5864 = vst [vmem:[#allocation118_spill] sm:$0xff] %v4281_v44  ;;  %5865 = vst [vmem:[#allocation119_spill] sm:$0xff] %v4285_v17  ;;  %v1171_v47 = vrot.slane %v1170_v41, 1  ;;  %v1200_v20 = vmin.f32 %v1199_v39, %v4268_v7  ;;  %v827_v2 = vmul.f32 2.0, %v4056_v59  ;;  %v1241_v32 = vrot.slane %v1240_v37, 4 }
 0x16c   :  { %5866 = vst [vmem:[#allocation120_spill] sm:$0xff] %v4289_v27  ;;  %v1268_v50 = vmin.f32 %v1267_v15, %v4273_v0  ;;  %5867 = vst [vmem:[#allocation121_spill] sm:$0xff] %v4293_v58  ;;  %v4299_v21 = vsub.f32 %v4202_v46, %v845_v14  ;;  %v4302_v30 = vadd.s32 8, %v4281_v44  ;;  %v4305_v54 = vadd.s32 16, %v4281_v44 }
 0x16d   :  { %v1201_v28 = vmin.f32 %v1200_v20, %v4278_v4  ;;  %v4308_v31 = vmin.f32 %v1170_v41, %v1171_v47  ;;  %v4311_v8 = vadd.s32 24, %v4281_v44  ;;  %v4314_v59 = vadd.s32 32, %v4281_v44 }
 0x16e   :  { %5868 = vst [vmem:[#allocation122_spill] sm:$0xff] %v4299_v21  ;;  %5869 = vst [vmem:[#allocation123_spill] sm:$0xff] %v4302_v30  ;;  %v1269_v12 = vmin.f32 %v1268_v50, %v4285_v17  ;;  %v4317_v63 = vadd.s32 40, %v4281_v44  ;;  %v4321_v40 = vadd.s32 48, %v4281_v44  ;;  %v4325_v14 = vsub.f32 %v4021_v10, %v823_v34  ;;  %v5875_v10 = vld [vmem:[#allocation77_spill] sm:$0xff] }
 0x16f   :  { %v1202_v22 = vmin.f32 %v1201_v28, %v4289_v27  ;;  %v4328_v41 = vsub.f32 %v4053_v1, %v827_v2  ;;  %v831_v15 = vmul.f32 2.0, %v4084_v23  ;;  %v835_v47 = vmul.f32 2.0, %v4116_v36  ;;  %v5872_v28 = vld [vmem:[#allocation64_spill] sm:$0xff]  ;;  %v5877_v36 = vld [vmem:[#allocation26_spill] sm:$0xff]  ;;  %v5878_v23 = vld [vmem:[#allocation87_spill] sm:$0xff] }
 0x170   :  { %v1270_v39 = vmin.f32 %v1269_v12, %v4293_v58  ;;  %5870 = vst [vmem:[#allocation124_spill] sm:$0xff] %v4325_v14  ;;  %v1242_v20 = vmin.f32 %v1240_v37, %v1241_v32  ;;  %vm1397_vm1 = vcmp.eq.f32.partialorder %v5872_v28, %v4308_v31  ;;  %vm1401_vm2 = vcmp.eq.f32.partialorder %v5873_v11, %v4308_v31  ;;  %v5874_v12 = vld [vmem:[#allocation75_spill] sm:$0xff]  ;;  %v5876_v1 = vld [vmem:[#allocation16_spill] sm:$0xff]  ;;  %v5879_v37 = vld [vmem:[#allocation17_spill] sm:$0xff] }
 0x171   :  { %5871 = vst [vmem:[#allocation125_spill] sm:$0xff] %v4328_v41  ;;  %v1203_v50 = vmin.f32 %v1202_v22, %v4299_v21  ;;  %vm1405_vm3 = vcmp.eq.f32.partialorder %v5874_v12, %v4308_v31  ;;  %v4358_v34 = vadd.s32 56, %v4281_v44  ;;  %v4361_v2 = vadd.s32 64, %v4281_v44  ;;  %v5885_v27 = vld [vmem:[#allocation14_spill] sm:$0xff] }
 0x172   :  { %v4364_v32 = vadd.s32 72, %v4281_v44  ;;  %v1243_v22 = vrot.slane %v1242_v20, 2  ;;  %v4367_v58 = vadd.s32 80, %v4281_v44  ;;  %v4370_v17 = vadd.s32 88, %v4281_v44 }
 0x173   :  { %v1271_v0 = vmin.f32 %v1270_v39, %v4325_v14  ;;  %v4374_v26 = vsub.f32 %v4080_v38, %v831_v15  ;;  %v4377_v62 = vadd.s32 96, %v4281_v44  ;;  %v839_v33 = vmul.f32 2.0, %v4148_v51 }
 0x174   :  { %vm1317_vm13 = vcmp.eq.f32.partialorder %v5881_v13, %v4308_v31  ;;  %vm1321_vm14 = vcmp.eq.f32.partialorder %v5882_v18, %v4308_v31  ;;  %v4385_v57 = vadd.s32 104, %v4281_v44  ;;  %v4389_v39 = vsub.f32 %v4109_v35, %v835_v47 }
 0x175   :  { %5880 = vst [vmem:[#allocation64_spill] sm:$0xff] %v4374_v26  ;;  %v1272_v42 = vmin.f32 %v1271_v0, %v4328_v41  ;;  %v1204_v38 = vrot.slane %v1203_v50, 4  ;;  %v4392_v15 = vadd.s32 112, %v4281_v44  ;;  %v4395_v51 = vadd.s32 120, %v4281_v44 }
 0x176   :  { %5883 = vst [vmem:[#allocation69_spill] sm:$0xff] %v4389_v39  ;;  %v843_v13 = vmul.f32 2.0, %v4176_v61  ;;  %v1244_v14 = vmin.f32 %v1242_v20, %v1243_v22  ;;  %v4399_v18 = vadd.s32 128, %v4281_v44  ;;  %v1445_v0 = vsel %vm1317_vm13, %v4281_v44, 256 }
 0x177   :  { %v1273_v21 = vmin.f32 %v1272_v42, %v4374_v26  ;;  %v1449_v35 = vsel %vm1321_vm14, %v4302_v30, 256  ;;  %v4405_v47 = vadd.s32 136, %v4281_v44  ;;  %v4408_v41 = vsub.f32 %v4141_v43, %v839_v33  ;;  %v5887_v43 = vld [vmem:[#allocation15_spill] sm:$0xff] }
 0x178   :  { %vm1325_vm15 = vcmp.eq.f32.partialorder %v5885_v27, %v4308_v31  ;;  %v847_v61 = vmul.f32 2.0, %v4206_v24  ;;  %v4414_v20 = vadd.s32 144, %v4281_v44  ;;  %v4417_v42 = vadd.s32 152, %v4281_v44 }
 0x179   :  { %5884 = vst [vmem:[#allocation75_spill] sm:$0xff] %v4408_v41  ;;  %v1274_v22 = vmin.f32 %v1273_v21, %v4389_v39  ;;  %v1205_v26 = vmin.f32 %v1203_v50, %v1204_v38  ;;  %v4421_v4 = vsub.f32 %v4171_v3, %v843_v13  ;;  %vm1329_vm0 = vcmp.eq.f32.partialorder %v5887_v43, %v4308_v31  ;;  %v5888_v50 = vld [vmem:[#allocation18_spill] sm:$0xff] }
 0x17a   :  { %vm1573_vm13 = vcmp.lt.s32.totalorder %v1445_v0, %v1449_v35  ;;  %v1245_v33 = vrot.slane %v1244_v14, 1  ;;  %v4426_v27 = vadd.s32 160, %v4281_v44  ;;  %v4429_v24 = vadd.s32 168, %v4281_v44 }
 0x17b   :  { %5886 = vst [vmem:[#allocation77_spill] sm:$0xff] %v4421_v4  ;;  %v1453_v7 = vsel %vm1325_vm15, %v4305_v54, 256  ;;  %v1574_v60 = vsel %vm1573_vm13, %v1445_v0, %v1449_v35  ;;  %v1275_v21 = vmin.f32 %v1274_v22, %v4408_v41  ;;  %vm1333_vm14 = vcmp.eq.f32.partialorder %v5888_v50, %v4308_v31  ;;  %v5890_v0 = vld [vmem:[#allocation19_spill] sm:$0xff] }
 0x17c   :  { %vm1575_vm12 = vcmp.lt.s32.totalorder %v1574_v60, %v1453_v7  ;;  %v4436_v3 = vsub.f32 %v4202_v46, %v847_v61  ;;  %v4439_v38 = vadd.s32 176, %v4281_v44  ;;  %v1457_v13 = vsel %vm1329_vm0, %v4311_v8, 256  ;;  %v5891_v46 = vld [vmem:[#allocation22_spill] sm:$0xff] }
 0x17d   :  { %v1576_v43 = vsel %vm1575_vm12, %v1574_v60, %v1453_v7  ;;  %v1206_v39 = vrot.slane %v1205_v26, 2  ;;  %v1276_v29 = vmin.f32 %v1275_v21, %v4421_v4  ;;  %vm1337_vm15 = vcmp.eq.f32.partialorder %v5890_v0, %v4308_v31 }
 0x17e   :  { %5889 = vst [vmem:[#allocation16_spill] sm:$0xff] %v4436_v3  ;;  %vm1577_vm13 = vcmp.lt.s32.totalorder %v1576_v43, %v1457_v13  ;;  %v4445_v35 = vmin.f32 %v1244_v14, %v1245_v33  ;;  %v4448_v22 = vadd.s32 184, %v4281_v44  ;;  %vm1341_vm11 = vcmp.eq.f32.partialorder %v5891_v46, %v4308_v31  ;;  %v5893_v14 = vld [vmem:[#allocation25_spill] sm:$0xff] }
 0x17f   :  { %v1461_v61 = vsel %vm1333_vm14, %v4314_v59, 256  ;;  %v1578_v50 = vsel %vm1577_vm13, %v1576_v43, %v1457_v13  ;;  %v4454_v60 = vadd.s32 192, %v4281_v44  ;;  %v4457_v7 = vadd.s32 200, %v4281_v44  ;;  %v5909_v43 = vld [vmem:[#allocation55_spill] sm:$0xff] }
 0x180   :  { %vm1579_vm12 = vcmp.lt.s32.totalorder %v1578_v50, %v1461_v61  ;;  %v4460_v21 = vmin.f32 %v1276_v29, %v4436_v3  ;;  %vm1345_vm0 = vcmp.eq.f32.partialorder %v5893_v14, %v4308_v31  ;;  %v1465_v33 = vsel %vm1337_vm15, %v4317_v63, 256 }
 0x181   :  { %v1580_v0 = vsel %vm1579_vm12, %v1578_v50, %v1461_v61  ;;  %v1207_v46 = vmin.f32 %v1205_v26, %v1206_v39  ;;  %v1469_v4 = vsel %vm1341_vm11, %v4321_v40, 256  ;;  %v5897_v26 = vld [vmem:[#allocation29_spill] sm:$0xff]  ;;  %v4483_v39 = vadd.s32 208, %v4281_v44 }
 0x182   :  { %5892 = vst [vmem:[#allocation26_spill] sm:$0xff] %v4460_v21  ;;  %vm1581_vm14 = vcmp.lt.s32.totalorder %v1580_v0, %v1465_v33  ;;  %vm1349_vm11 = vcmp.eq.f32.partialorder %v5897_v26, %v4308_v31  ;;  %v4486_v61 = vadd.s32 216, %v4281_v44  ;;  %v1473_v50 = vsel %vm1345_vm0, %v4358_v34, 256  ;;  %v5898_v26 = vld [vmem:[#allocation32_spill] sm:$0xff] }
 0x183   :  { %v1582_v41 = vsel %vm1581_vm14, %v1580_v0, %v1465_v33  ;;  %v4493_v0 = vadd.s32 224, %v4281_v44  ;;  %vm1353_vm14 = vcmp.eq.f32.partialorder %v5898_v26, %v4308_v31  ;;  %v1208_v3 = vrot.slane %v1207_v46, 1 }
 0x184   :  { %vm1583_vm12 = vcmp.lt.s32.totalorder %v1582_v41, %v1469_v4  ;;  %v4498_v45 = vadd.s32 232, %v4281_v44  ;;  %v4501_v48 = vadd.s32 240, %v4281_v44  ;;  %v1477_v6 = vsel %vm1349_vm11, %v4361_v2, 256 }
 0x185   :  { %v1584_v33 = vsel %vm1583_vm12, %v1582_v41, %v1469_v4  ;;  %v4505_v14 = vadd.s32 248, %v4281_v44  ;;  %v5899_v4 = vld [vmem:[#allocation37_spill] sm:$0xff]  ;;  %v1481_v26 = vsel %vm1353_vm14, %v4364_v32, 256  ;;  %vm1319_vm10 = vcmp.eq.f32.partialorder %v5900_v53, %v4445_v35 }
 0x186   :  { %vm1585_vm13 = vcmp.lt.s32.totalorder %v1584_v33, %v1473_v50  ;;  %vm1357_vm0 = vcmp.eq.f32.partialorder %v5899_v4, %v4308_v31  ;;  %vm1323_vm15 = vcmp.eq.f32.partialorder %v5901_v49, %v4445_v35  ;;  %v4519_v4 = vmin.f32 %v1207_v46, %v1208_v3  ;;  %v5904_v41 = vld [vmem:[#allocation45_spill] sm:$0xff]  ;;  %v5906_v49 = vld [vmem:[#allocation50_spill] sm:$0xff] }
 0x187   :  { %v1586_v56 = vsel %vm1585_vm13, %v1584_v33, %v1473_v50  ;;  %v5902_v50 = vld [vmem:[#allocation40_spill] sm:$0xff]  ;;  %v5903_v33 = vld [vmem:[#allocation42_spill] sm:$0xff]  ;;  %vm1369_vm9 = vcmp.eq.f32.partialorder %v5904_v41, %v4308_v31  ;;  %v1451_v19 = vsel %vm1323_vm15, %v4302_v30, 256  ;;  %v5907_v3 = vld [vmem:[#allocation53_spill] sm:$0xff]  ;;  %vm1327_vm5 = vcmp.eq.f32.partialorder %v5908_v16, %v4445_v35 }
 0x188   :  { %vm1587_vm12 = vcmp.lt.s32.totalorder %v1586_v56, %v1477_v6  ;;  %vm1361_vm13 = vcmp.eq.f32.partialorder %v5902_v50, %v4308_v31  ;;  %vm1365_vm11 = vcmp.eq.f32.partialorder %v5903_v33, %v4308_v31  ;;  %v1447_v50 = vsel %vm1319_vm10, %v4281_v44, 256 }
 0x189   :  { %v1588_v52 = vsel %vm1587_vm12, %v1586_v56, %v1477_v6  ;;  %v5905_v56 = vld [vmem:[#allocation48_spill] sm:$0xff]  ;;  %v1485_v6 = vsel %vm1357_vm0, %v4367_v58, 256  ;;  %vm1377_vm12 = vcmp.eq.f32.partialorder %v5906_v49, %v4308_v31  ;;  %vm1381_vm6 = vcmp.eq.f32.partialorder %v5907_v3, %v4308_v31 }
 0x18a   :  { %vm1589_vm8 = vcmp.lt.s32.totalorder %v1588_v52, %v1481_v26  ;;  %vm1373_vm14 = vcmp.eq.f32.partialorder %v5905_v56, %v4308_v31  ;;  %v1489_v46 = vsel %vm1361_vm13, %v4370_v17, 256  ;;  %v1493_v13 = vsel %vm1365_vm11, %v4377_v62, 256 }
 0x18b   :  { %v1590_v53 = vsel %vm1589_vm8, %v1588_v52, %v1481_v26  ;;  %vm1385_vm8 = vcmp.eq.f32.partialorder %v5909_v43, %v4308_v31  ;;  %v5910_v52 = vld [vmem:[#allocation59_spill] sm:$0xff]  ;;  %v5911_v26 = vld [vmem:[#allocation62_spill] sm:$0xff]  ;;  %vm1715_vm15 = vcmp.lt.s32.totalorder %v1447_v50, %v1451_v19  ;;  %v1497_v16 = vsel %vm1369_vm9, %v4385_v57, 256 }
 0x18c   :  { %vm1591_vm7 = vcmp.lt.s32.totalorder %v1590_v53, %v1485_v6  ;;  %vm1389_vm0 = vcmp.eq.f32.partialorder %v5910_v52, %v4308_v31  ;;  %vm1393_vm10 = vcmp.eq.f32.partialorder %v5911_v26, %v4308_v31  ;;  %v1716_v30 = vsel %vm1715_vm15, %v1447_v50, %v1451_v19 }
 0x18d   :  { %v1592_v29 = vsel %vm1591_vm7, %v1590_v53, %v1485_v6  ;;  %v5912_v6 = vld [vmem:[#allocation31_spill] sm:$0xff]  ;;  %v1455_v53 = vsel %vm1327_vm5, %v4305_v54, 256  ;;  %v1501_v33 = vsel %vm1373_vm14, %v4392_v15, 256  ;;  %v1505_v41 = vsel %vm1377_vm12, %v4395_v51, 256 }
 0x18e   :  { %vm1593_vm4 = vcmp.lt.s32.totalorder %v1592_v29, %v1489_v46  ;;  %vm1331_vm7 = vcmp.eq.f32.partialorder %v5912_v6, %v4445_v35  ;;  %vm1717_vm11 = vcmp.lt.s32.totalorder %v1716_v30, %v1455_v53  ;;  %v1509_v19 = vsel %vm1381_vm6, %v4399_v18, 256 }
 0x18f   :  { %v1594_v21 = vsel %vm1593_vm4, %v1592_v29, %v1489_v46  ;;  %v5913_v29 = vld [vmem:[#allocation34_spill] sm:$0xff]  ;;  %v1459_v46 = vsel %vm1331_vm7, %v4311_v8, 256  ;;  %v1718_v6 = vsel %vm1717_vm11, %v1716_v30, %v1455_v53  ;;  %v1517_v30 = vsel %vm1389_vm0, %v4414_v20, 256 }
 0x190   :  { %vm1595_vm13 = vcmp.lt.s32.totalorder %v1594_v21, %v1493_v13  ;;  %vm1335_vm4 = vcmp.eq.f32.partialorder %v5913_v29, %v4445_v35  ;;  %vm1719_vm14 = vcmp.lt.s32.totalorder %v1718_v6, %v1459_v46  ;;  %v1521_v43 = vsel %vm1393_vm10, %v4417_v42, 256 }
 0x191   :  { %v1596_v44 = vsel %vm1595_vm13, %v1594_v21, %v1493_v13  ;;  %v5914_v21 = vld [vmem:[#allocation38_spill] sm:$0xff]  ;;  %v1513_v13 = vsel %vm1385_vm8, %v4405_v47, 256  ;;  %v1463_v49 = vsel %vm1335_vm4, %v4314_v59, 256  ;;  %v1720_v50 = vsel %vm1719_vm14, %v1718_v6, %v1459_v46 }
 0x192   :  { %vm1597_vm9 = vcmp.lt.s32.totalorder %v1596_v44, %v1497_v16  ;;  %vm1339_vm5 = vcmp.eq.f32.partialorder %v5914_v21, %v4445_v35  ;;  %vm1721_vm7 = vcmp.lt.s32.totalorder %v1720_v50, %v1463_v49  ;;  %v1525_v52 = vsel %vm1397_vm1, %v4426_v27, 256 }
 0x193   :  { %v1598_v56 = vsel %vm1597_vm9, %v1596_v44, %v1497_v16  ;;  %v5915_v44 = vld [vmem:[#allocation41_spill] sm:$0xff]  ;;  %v1467_v16 = vsel %vm1339_vm5, %v4317_v63, 256  ;;  %v1722_v53 = vsel %vm1721_vm7, %v1720_v50, %v1463_v49  ;;  %v1529_v26 = vsel %vm1401_vm2, %v4429_v24, 256 }
 0x194   :  { %vm1599_vm12 = vcmp.lt.s32.totalorder %v1598_v56, %v1501_v33  ;;  %vm1343_vm6 = vcmp.eq.f32.partialorder %v5915_v44, %v4445_v35  ;;  %vm1723_vm15 = vcmp.lt.s32.totalorder %v1722_v53, %v1467_v16  ;;  %v1533_v28 = vsel %vm1405_vm3, %v4439_v38, 256 }
 0x195   :  { %v1600_v3 = vsel %vm1599_vm12, %v1598_v56, %v1501_v33  ;;  %v5916_v33 = vld [vmem:[#allocation44_spill] sm:$0xff]  ;;  %v1471_v46 = vsel %vm1343_vm6, %v4321_v40, 256  ;;  %v1724_v6 = vsel %vm1723_vm15, %v1722_v53, %v1467_v16  ;;  %vm5918_vm4 = vcmp.eq.f32.partialorder %v5875_v10, %v4308_v31 }
 0x196   :  { %vm1601_vm8 = vcmp.lt.s32.totalorder %v1600_v3, %v1505_v41  ;;  %vm1347_vm0 = vcmp.eq.f32.partialorder %v5916_v33, %v4445_v35  ;;  %vm1725_vm13 = vcmp.lt.s32.totalorder %v1724_v6, %v1471_v46  ;;  %v1537_v11 = vsel %vm5918_vm4, %v4448_v22, 256  ;;  %v5923_v16 = vld [vmem:[#allocation52_spill] sm:$0xff]  ;;  %v5926_v33 = vld [vmem:[#allocation54_spill] sm:$0xff] }
 0x197   :  { %v1602_v29 = vsel %vm1601_vm8, %v1600_v3, %v1505_v41  ;;  %v5917_v41 = vld [vmem:[#allocation46_spill] sm:$0xff]  ;;  %v1475_v21 = vsel %vm1347_vm0, %v4358_v34, 256  ;;  %v1726_v49 = vsel %vm1725_vm13, %v1724_v6, %v1471_v46  ;;  %vm5919_vm11 = vcmp.eq.f32.partialorder %v5876_v1, %v4308_v31 }
 0x198   :  { %vm1603_vm10 = vcmp.lt.s32.totalorder %v1602_v29, %v1509_v19  ;;  %vm1351_vm1 = vcmp.eq.f32.partialorder %v5917_v41, %v4445_v35  ;;  %v1541_v12 = vsel %vm5919_vm11, %v4454_v60, 256  ;;  %vm1727_vm9 = vcmp.lt.s32.totalorder %v1726_v49, %v1475_v21 }
 0x199   :  { %v1604_v56 = vsel %vm1603_vm10, %v1602_v29, %v1509_v19  ;;  %v5920_v19 = vld [vmem:[#allocation49_spill] sm:$0xff]  ;;  %vm5921_vm5 = vcmp.eq.f32.partialorder %v5877_v36, %v4308_v31  ;;  %v1479_v3 = vsel %vm1351_vm1, %v4361_v2, 256  ;;  %v1728_v44 = vsel %vm1727_vm9, %v1726_v49, %v1475_v21 }
 0x19a   :  { %vm1605_vm2 = vcmp.lt.s32.totalorder %v1604_v56, %v1513_v13  ;;  %vm1355_vm3 = vcmp.eq.f32.partialorder %v5920_v19, %v4445_v35  ;;  %v1545_v10 = vsel %vm5921_vm5, %v4457_v7, 256  ;;  %vm5922_vm12 = vcmp.eq.f32.partialorder %v5878_v23, %v4308_v31 }
 0x19b   :  { %v1606_v50 = vsel %vm1605_vm2, %v1604_v56, %v1513_v13  ;;  %v4622_v1 = vsel %vm5922_vm12, %v4483_v39, 256  ;;  %vm1359_vm6 = vcmp.eq.f32.partialorder %v5923_v16, %v4445_v35  ;;  %vm1729_vm7 = vcmp.lt.s32.totalorder %v1728_v44, %v1479_v3  ;;  %v5929_v56 = vld [vmem:[#allocation57_spill] sm:$0xff] }
 0x19c   :  { %vm1607_vm14 = vcmp.lt.s32.totalorder %v1606_v50, %v1517_v30  ;;  %vm5924_vm8 = vcmp.eq.f32.partialorder %v5879_v37, %v4308_v31  ;;  %v1483_v53 = vsel %vm1355_vm3, %v4364_v32, 256  ;;  %v1730_v29 = vsel %vm1729_vm7, %v1728_v44, %v1479_v3  ;;  %v5934_v3 = vld [vmem:[#allocation68_spill] sm:$0xff] }
 0x19d   :  { %v1608_v13 = vsel %vm1607_vm14, %v1606_v50, %v1517_v30  ;;  %v4630_v36 = vsel %vm5924_vm8, %v4486_v61, 256  ;;  %vm5925_vm15 = vcmp.eq.f32.partialorder %v4124_v5, %v4308_v31  ;;  %vm1363_vm10 = vcmp.eq.f32.partialorder %v5926_v33, %v4445_v35  ;;  %v5933_v50 = vld [vmem:[#allocation65_spill] sm:$0xff]  ;;  %v5936_v44 = vld [vmem:[#allocation72_spill] sm:$0xff] }
 0x19e   :  { %vm1609_vm0 = vcmp.lt.s32.totalorder %v1608_v13, %v1521_v43  ;;  %v4637_v23 = vsel %vm5925_vm15, %v4493_v0, 256  ;;  %vm1731_vm1 = vcmp.lt.s32.totalorder %v1730_v29, %v1483_v53  ;;  %vm5927_vm13 = vcmp.eq.f32.partialorder %v4156_v55, %v4308_v31 }
 0x19f   :  { %v1610_v30 = vsel %vm1609_vm0, %v1608_v13, %v1521_v43  ;;  %v4645_v37 = vsel %vm5927_vm13, %v4498_v45, 256  ;;  %v1487_v46 = vsel %vm1359_vm6, %v4367_v58, 256  ;;  %v1732_v6 = vsel %vm1731_vm1, %v1730_v29, %v1483_v53  ;;  %v5937_v29 = vld [vmem:[#allocation76_spill] sm:$0xff] }
 0x1a0   :  { %vm1611_vm4 = vcmp.lt.s32.totalorder %v1610_v30, %v1525_v52  ;;  %vm5928_vm2 = vcmp.eq.f32.partialorder %v4184_v25, %v4308_v31  ;;  %vm1367_vm11 = vcmp.eq.f32.partialorder %v5929_v56, %v4445_v35  ;;  %vm1733_vm3 = vcmp.lt.s32.totalorder %v1732_v6, %v1487_v46  ;;  %v5931_v25 = vld [vmem:[#allocation61_spill] sm:$0xff] }
 0x1a1   :  { %v4652_v5 = vsel %vm5928_vm2, %v4501_v48, 256  ;;  %v1612_v43 = vsel %vm1611_vm4, %v1610_v30, %v1525_v52  ;;  %vm5930_vm9 = vcmp.eq.f32.partialorder %v4214_v9, %v4308_v31  ;;  %v1491_v41 = vsel %vm1363_vm10, %v4370_v17, 256  ;;  %v5932_v52 = vld [vmem:[#allocation63_spill] sm:$0xff] }
 0x1a2   :  { %v4660_v55 = vsel %vm5930_vm9, %v4505_v14, 256  ;;  %vm1613_vm5 = vcmp.lt.s32.totalorder %v1612_v43, %v1529_v26  ;;  %v1734_v21 = vsel %vm1733_vm3, %v1732_v6, %v1487_v46  ;;  %vm1371_vm14 = vcmp.eq.f32.partialorder %v5931_v25, %v4445_v35  ;;  %v5939_v30 = vld [vmem:[#allocation11_spill] sm:$0xff] }
 0x1a3   :  { %v1614_v49 = vsel %vm1613_vm5, %v1612_v43, %v1529_v26  ;;  %vm1375_vm12 = vcmp.eq.f32.partialorder %v5932_v52, %v4445_v35  ;;  %vm1735_vm6 = vcmp.lt.s32.totalorder %v1734_v21, %v1491_v41  ;;  %vm1379_vm8 = vcmp.eq.f32.partialorder %v5933_v50, %v4445_v35  ;;  %v5935_v26 = vld [vmem:[#allocation71_spill] sm:$0xff]  ;;  %v5941_v43 = vld [vmem:[#allocation33_spill] sm:$0xff]  ;;  %v5942_v50 = vld [vmem:[#allocation118_spill] sm:$0xff] }
 0x1a4   :  { %vm1615_vm7 = vcmp.lt.s32.totalorder %v1614_v49, %v1533_v28  ;;  %v1495_v9 = vsel %vm1367_vm11, %v4377_v62, 256  ;;  %v1736_v31 = vsel %vm1735_vm6, %v1734_v21, %v1491_v41  ;;  %vm1383_vm0 = vcmp.eq.f32.partialorder %v5934_v3, %v4445_v35  ;;  %v5944_v3 = vld [vmem:[#allocation79_spill] sm:$0xff] }
 0x1a5   :  { %v1616_v19 = vsel %vm1615_vm7, %v1614_v49, %v1533_v28  ;;  %vm1387_vm15 = vcmp.eq.f32.partialorder %v5935_v26, %v4445_v35  ;;  %vm1737_vm10 = vcmp.lt.s32.totalorder %v1736_v31, %v1495_v9  ;;  %vm1391_vm13 = vcmp.eq.f32.partialorder %v5936_v44, %v4445_v35  ;;  %v5938_v28 = vld [vmem:[#allocation8_spill] sm:$0xff]  ;;  %v5945_v44 = vld [vmem:[#allocation43_spill] sm:$0xff] }
 0x1a6   :  { %vm1617_vm1 = vcmp.lt.s32.totalorder %v1616_v19, %v1537_v11  ;;  %v1499_v13 = vsel %vm1371_vm14, %v4385_v57, 256  ;;  %v1738_v16 = vsel %vm1737_vm10, %v1736_v31, %v1495_v9  ;;  %vm1395_vm4 = vcmp.eq.f32.partialorder %v5937_v29, %v4445_v35  ;;  %v5943_v31 = vld [vmem:[#allocation123_spill] sm:$0xff] }
 0x1a7   :  { %v1618_v53 = vsel %vm1617_vm1, %v1616_v19, %v1537_v11  ;;  %vm1399_vm2 = vcmp.eq.f32.partialorder %v5938_v28, %v4445_v35  ;;  %vm1739_vm11 = vcmp.lt.s32.totalorder %v1738_v16, %v1499_v13  ;;  %vm1403_vm9 = vcmp.eq.f32.partialorder %v5939_v30, %v4445_v35  ;;  %v5940_v11 = vld [vmem:[#allocation30_spill] sm:$0xff]  ;;  %v5946_v29 = vld [vmem:[#allocation83_spill] sm:$0xff] }
 0x1a8   :  { %vm1619_vm3 = vcmp.lt.s32.totalorder %v1618_v53, %v1541_v12  ;;  %v1503_v33 = vsel %vm1375_vm12, %v4392_v15, 256  ;;  %v1740_v46 = vsel %vm1739_vm11, %v1738_v16, %v1499_v13  ;;  %vm1318_vm14 = vcmp.eq.f32.partialorder %v5940_v11, %v4519_v4  ;;  %v5948_v11 = vld [vmem:[#allocation58_spill] sm:$0xff] }
 0x1a9   :  { %v1620_v6 = vsel %vm1619_vm3, %v1618_v53, %v1541_v12  ;;  %vm1741_vm5 = vcmp.lt.s32.totalorder %v1740_v46, %v1503_v33  ;;  %vm1322_vm6 = vcmp.eq.f32.partialorder %v5941_v43, %v4519_v4  ;;  %v1507_v56 = vsel %vm1379_vm8, %v4395_v51, 256 }
 0x1aa   :  { %vm1621_vm7 = vcmp.lt.s32.totalorder %v1620_v6, %v1545_v10  ;;  %v1511_v41 = vsel %vm1383_vm0, %v4399_v18, 256  ;;  %v1742_v21 = vsel %vm1741_vm5, %v1740_v46, %v1503_v33  ;;  %v1515_v49 = vsel %vm1387_vm15, %v4405_v47, 256  ;;  %v5947_v33 = vld [vmem:[#allocation51_spill] sm:$0xff] }
 0x1ab   :  { %v1622_v12 = vsel %vm1621_vm7, %v1620_v6, %v1545_v10  ;;  %v1519_v25 = vsel %vm1391_vm13, %v4414_v20, 256  ;;  %vm1743_vm12 = vcmp.lt.s32.totalorder %v1742_v21, %v1507_v56  ;;  %v1446_v9 = vsel %vm1318_vm14, %v5942_v50, 256 }
 0x1ac   :  { %vm1623_vm8 = vcmp.lt.s32.totalorder %v1622_v12, %v4622_v1  ;;  %v1744_v52 = vsel %vm1743_vm12, %v1742_v21, %v1507_v56  ;;  %v1450_v19 = vsel %vm1322_vm6, %v5943_v31, 256  ;;  %vm1407_vm0 = vcmp.eq.f32.partialorder %v5944_v3, %v4445_v35  ;;  %v5949_v21 = vld [vmem:[#allocation66_spill] sm:$0xff] }
 0x1ad   :  { %v1624_v10 = vsel %vm1623_vm8, %v1622_v12, %v4622_v1  ;;  %v1523_v26 = vsel %vm1395_vm4, %v4417_v42, 256  ;;  %vm1745_vm15 = vcmp.lt.s32.totalorder %v1744_v52, %v1511_v41  ;;  %vm1326_vm10 = vcmp.eq.f32.partialorder %v5945_v44, %v4519_v4 }
 0x1ae   :  { %vm1625_vm1 = vcmp.lt.s32.totalorder %v1624_v10, %v4630_v36  ;;  %v1527_v13 = vsel %vm1399_vm2, %v4426_v27, 256  ;;  %v1531_v1 = vsel %vm1403_vm9, %v4429_v24, 256  ;;  %v1746_v16 = vsel %vm1745_vm15, %v1744_v52, %v1511_v41 }
 0x1af   :  { %v1626_v53 = vsel %vm1625_vm1, %v1624_v10, %v4630_v36  ;;  %vm1411_vm13 = vcmp.eq.f32.partialorder %v5946_v29, %v4445_v35  ;;  %vm1747_vm4 = vcmp.lt.s32.totalorder %v1746_v16, %v1515_v49  ;;  %vm1330_vm11 = vcmp.eq.f32.partialorder %v5947_v33, %v4519_v4  ;;  %v5956_v29 = vld [vmem:[#allocation26_spill] sm:$0xff] }
 0x1b0   :  { %vm1644_vm3 = vcmp.lt.s32.totalorder %v1446_v9, %v1450_v19  ;;  %vm1627_vm5 = vcmp.lt.s32.totalorder %v1626_v53, %v4637_v23  ;;  %v1748_v28 = vsel %vm1747_vm4, %v1746_v16, %v1515_v49  ;;  %v1454_v46 = vsel %vm1326_vm10, %v4305_v54, 256 }
 0x1b1   :  { %v1645_v6 = vsel %vm1644_vm3, %v1446_v9, %v1450_v19  ;;  %v1628_v30 = vsel %vm1627_vm5, %v1626_v53, %v4637_v23  ;;  %vm1749_vm2 = vcmp.lt.s32.totalorder %v1748_v28, %v1519_v25  ;;  %vm1334_vm9 = vcmp.eq.f32.partialorder %v5948_v11, %v4519_v4  ;;  %v5952_v53 = vld [vmem:[#allocation7_spill] sm:$0xff] }
 0x1b2   :  { %vm1646_vm14 = vcmp.lt.s32.totalorder %v1645_v6, %v1454_v46  ;;  %vm1629_vm6 = vcmp.lt.s32.totalorder %v1628_v30, %v4645_v37  ;;  %v1750_v36 = vsel %vm1749_vm2, %v1748_v28, %v1519_v25  ;;  %v1458_v43 = vsel %vm1330_vm11, %v4311_v8, 256  ;;  %v5950_v25 = vld [vmem:[#allocation70_spill] sm:$0xff] }
 0x1b3   :  { %v1647_v56 = vsel %vm1646_vm14, %v1645_v6, %v1454_v46  ;;  %v1630_v41 = vsel %vm1629_vm6, %v1628_v30, %v4645_v37  ;;  %vm1751_vm7 = vcmp.lt.s32.totalorder %v1750_v36, %v1523_v26  ;;  %vm1338_vm12 = vcmp.eq.f32.partialorder %v5949_v21, %v4519_v4  ;;  %v5954_v46 = vld [vmem:[#allocation6_spill] sm:$0xff]  ;;  %v5958_v21 = vld [vmem:[#allocation84_spill] sm:$0xff] }
 0x1b4   :  { %vm1648_vm8 = vcmp.lt.s32.totalorder %v1647_v56, %v1458_v43  ;;  %vm1631_vm15 = vcmp.lt.s32.totalorder %v1630_v41, %v4652_v5  ;;  %v1752_v23 = vsel %vm1751_vm7, %v1750_v36, %v1523_v26  ;;  %v1462_v12 = vsel %vm1334_vm9, %v4314_v59, 256  ;;  %v5951_v26 = vld [vmem:[#allocation74_spill] sm:$0xff] }
 0x1b5   :  { %v1649_v49 = vsel %vm1648_vm8, %v1647_v56, %v1458_v43  ;;  %v1632_v52 = vsel %vm1631_vm15, %v1630_v41, %v4652_v5  ;;  %vm1753_vm10 = vcmp.lt.s32.totalorder %v1752_v23, %v1527_v13  ;;  %vm1342_vm1 = vcmp.eq.f32.partialorder %v5950_v25, %v4519_v4  ;;  %v5955_v43 = vld [vmem:[#allocation78_spill] sm:$0xff] }
 0x1b6   :  { %vm1650_vm4 = vcmp.lt.s32.totalorder %v1649_v49, %v1462_v12  ;;  %vm1633_vm11 = vcmp.lt.s32.totalorder %v1632_v52, %v4660_v55  ;;  %v1754_v37 = vsel %vm1753_vm10, %v1752_v23, %v1527_v13  ;;  %v1466_v9 = vsel %vm1338_vm12, %v4317_v63, 256  ;;  %v5960_v25 = vld [vmem:[#allocation82_spill] sm:$0xff] }
 0x1b7   :  { %v1651_v19 = vsel %vm1650_vm4, %v1649_v49, %v1462_v12  ;;  %v4751_v10 = vsel %vm1633_vm11, %v1632_v52, %v4660_v55  ;;  %vm1755_vm3 = vcmp.lt.s32.totalorder %v1754_v37, %v1531_v1  ;;  %vm1346_vm5 = vcmp.eq.f32.partialorder %v5951_v26, %v4519_v4  ;;  %v5953_v55 = vld [vmem:[#allocation5_spill] sm:$0xff] }
 0x1b8   :  { %vm1652_vm2 = vcmp.lt.s32.totalorder %v1651_v19, %v1466_v9  ;;  %v1535_v5 = vsel %vm1407_vm0, %v4439_v38, 256  ;;  %v1756_v44 = vsel %vm1755_vm3, %v1754_v37, %v1531_v1  ;;  %v1470_v16 = vsel %vm1342_vm1, %v4321_v40, 256  ;;  %v5961_v37 = vld [vmem:[#allocation12_spill] sm:$0xff] }
 0x1b9   :  { %v1653_v13 = vsel %vm1652_vm2, %v1651_v19, %v1466_v9  ;;  %vm1415_vm9 = vcmp.eq.f32.partialorder %v5952_v53, %v4445_v35  ;;  %vm1757_vm14 = vcmp.lt.s32.totalorder %v1756_v44, %v1535_v5  ;;  %vm1350_vm6 = vcmp.eq.f32.partialorder %v5953_v55, %v4519_v4 }
 0x1ba   :  { %vm1654_vm7 = vcmp.lt.s32.totalorder %v1653_v13, %v1470_v16  ;;  %v1539_v33 = vsel %vm1411_vm13, %v4448_v22, 256  ;;  %v1758_v28 = vsel %vm1757_vm14, %v1756_v44, %v1535_v5  ;;  %v1474_v3 = vsel %vm1346_vm5, %v4358_v34, 256  ;;  %v5963_v44 = vld [vmem:[#allocation20_spill] sm:$0xff] }
 0x1bb   :  { %v1655_v1 = vsel %vm1654_vm7, %v1653_v13, %v1470_v16  ;;  %vm1759_vm0 = vcmp.lt.s32.totalorder %v1758_v28, %v1539_v33  ;;  %vm1354_vm12 = vcmp.eq.f32.partialorder %v5954_v46, %v4519_v4  ;;  %v1543_v6 = vsel %vm1415_vm9, %v4454_v60, 256  ;;  %v5964_v13 = vld [vmem:[#allocation92_spill] sm:$0xff] }
 0x1bc   :  { %vm1656_vm8 = vcmp.lt.s32.totalorder %v1655_v1, %v1474_v3  ;;  %v1760_v30 = vsel %vm1759_vm0, %v1758_v28, %v1539_v33  ;;  %v1478_v11 = vsel %vm1350_vm6, %v4361_v2, 256  ;;  %vm1358_vm10 = vcmp.eq.f32.partialorder %v5955_v43, %v4519_v4 }
 0x1bd   :  { %v1657_v36 = vsel %vm1656_vm8, %v1655_v1, %v1474_v3  ;;  %vm1761_vm15 = vcmp.lt.s32.totalorder %v1760_v30, %v1543_v6  ;;  %v5957_v56 = vrot.slane %v5956_v29, 4  ;;  %vm5959_vm1 = vcmp.eq.f32.partialorder %v5958_v21, %v4445_v35  ;;  %v5966_v3 = vld [vmem:[#allocation85_spill] sm:$0xff]  ;;  %v5967_v1 = vld [vmem:[#allocation94_spill] sm:$0xff] }
 0x1be   :  { %vm1658_vm13 = vcmp.lt.s32.totalorder %v1657_v36, %v1478_v11  ;;  %v1547_v23 = vsel %vm5959_vm1, %v4457_v7, 256  ;;  %v1762_v12 = vsel %vm1761_vm15, %v1760_v30, %v1543_v6  ;;  %v1482_v49 = vsel %vm1354_vm12, %v4364_v32, 256 }
 0x1bf   :  { %v1279_v41 = vmin.f32 %v5956_v29, %v5957_v56  ;;  %v1659_v52 = vsel %vm1658_vm13, %v1657_v36, %v1478_v11  ;;  %vm1763_vm4 = vcmp.lt.s32.totalorder %v1762_v12, %v1547_v23  ;;  %vm1362_vm11 = vcmp.eq.f32.partialorder %v5960_v25, %v4519_v4  ;;  %v5969_v36 = vld [vmem:[#allocation9_spill] sm:$0xff]  ;;  %v5970_v29 = vld [vmem:[#allocation98_spill] sm:$0xff] }
 0x1c0   :  { %vm1660_vm3 = vcmp.lt.s32.totalorder %v1659_v52, %v1482_v49  ;;  %vm5962_vm5 = vcmp.eq.f32.partialorder %v5961_v37, %v4445_v35  ;;  %v1764_v19 = vsel %vm1763_vm4, %v1762_v12, %v1547_v23  ;;  %v1486_v26 = vsel %vm1358_vm10, %v4367_v58, 256 }
 0x1c1   :  { %v1551_v9 = vsel %vm5962_vm5, %v4483_v39, 256  ;;  %v1661_v5 = vsel %vm1660_vm3, %v1659_v52, %v1482_v49  ;;  %vm1366_vm9 = vcmp.eq.f32.partialorder %v5963_v44, %v4519_v4  ;;  %v1280_v16 = vrot.slane %v1279_v41, 2  ;;  %v5972_v49 = vld [vmem:[#allocation88_spill] sm:$0xff]  ;;  %v5973_v52 = vld [vmem:[#allocation101_spill] sm:$0xff] }
 0x1c2   :  { %vm1765_vm2 = vcmp.lt.s32.totalorder %v1764_v19, %v1551_v9  ;;  %vm1662_vm14 = vcmp.lt.s32.totalorder %v1661_v5, %v1486_v26  ;;  %vm5965_vm6 = vcmp.eq.f32.partialorder %v5964_v13, %v4445_v35  ;;  %v1490_v33 = vsel %vm1362_vm11, %v4370_v17, 256 }
 0x1c3   :  { %v1555_v53 = vsel %vm5965_vm6, %v4486_v61, 256  ;;  %v1766_v55 = vsel %vm1765_vm2, %v1764_v19, %v1551_v9  ;;  %v1663_v28 = vsel %vm1662_vm14, %v1661_v5, %v1486_v26  ;;  %vm1370_vm0 = vcmp.eq.f32.partialorder %v5966_v3, %v4519_v4  ;;  %v5975_v19 = vld [vmem:[#allocation91_spill] sm:$0xff]  ;;  %v5976_v5 = vld [vmem:[#allocation106_spill] sm:$0xff] }
 0x1c4   :  { %vm1767_vm7 = vcmp.lt.s32.totalorder %v1766_v55, %v1555_v53  ;;  %vm1664_vm12 = vcmp.lt.s32.totalorder %v1663_v28, %v1490_v33  ;;  %vm5968_vm8 = vcmp.eq.f32.partialorder %v5967_v1, %v4445_v35  ;;  %v1494_v30 = vsel %vm1366_vm9, %v4377_v62, 256  ;;  %v5979_v1 = vld [vmem:[#allocation28_spill] sm:$0xff] }
 0x1c5   :  { %v1559_v46 = vsel %vm5968_vm8, %v4493_v0, 256  ;;  %v1768_v6 = vsel %vm1767_vm7, %v1766_v55, %v1555_v53  ;;  %v1665_v11 = vsel %vm1664_vm12, %v1663_v28, %v1490_v33  ;;  %vm1374_vm10 = vcmp.eq.f32.partialorder %v5969_v36, %v4519_v4  ;;  %v5978_v55 = vld [vmem:[#allocation21_spill] sm:$0xff] }
 0x1c6   :  { %vm1769_vm15 = vcmp.lt.s32.totalorder %v1768_v6, %v1559_v46  ;;  %vm1666_vm13 = vcmp.lt.s32.totalorder %v1665_v11, %v1494_v30  ;;  %v1281_v43 = vmin.f32 %v1279_v41, %v1280_v16  ;;  %vm5971_vm1 = vcmp.eq.f32.partialorder %v5970_v29, %v4445_v35  ;;  %v5981_v29 = vld [vmem:[#allocation35_spill] sm:$0xff] }
 0x1c7   :  { %v1563_v56 = vsel %vm5971_vm1, %v4498_v45, 256  ;;  %v1770_v21 = vsel %vm1769_vm15, %v1768_v6, %v1559_v46  ;;  %v1498_v23 = vsel %vm1370_vm0, %v4385_v57, 256  ;;  %v1667_v12 = vsel %vm1666_vm13, %v1665_v11, %v1494_v30  ;;  %v5980_v30 = vld [vmem:[#allocation96_spill] sm:$0xff] }
 0x1c8   :  { %vm1771_vm4 = vcmp.lt.s32.totalorder %v1770_v21, %v1563_v56  ;;  %vm1378_vm11 = vcmp.eq.f32.partialorder %v5972_v49, %v4519_v4  ;;  %vm1668_vm3 = vcmp.lt.s32.totalorder %v1667_v12, %v1498_v23  ;;  %vm5974_vm5 = vcmp.eq.f32.partialorder %v5973_v52, %v4445_v35  ;;  %v5985_v49 = vld [vmem:[#allocation102_spill] sm:$0xff] }
 0x1c9   :  { %v1567_v25 = vsel %vm5974_vm5, %v4501_v48, 256  ;;  %v1772_v41 = vsel %vm1771_vm4, %v1770_v21, %v1563_v56  ;;  %v1502_v37 = vsel %vm1374_vm10, %v4392_v15, 256  ;;  %v1669_v9 = vsel %vm1668_vm3, %v1667_v12, %v1498_v23  ;;  %v5982_v23 = vld [vmem:[#allocation36_spill] sm:$0xff]  ;;  %v5984_v12 = vld [vmem:[#allocation99_spill] sm:$0xff] }
 0x1ca   :  { %vm1773_vm2 = vcmp.lt.s32.totalorder %v1772_v41, %v1567_v25  ;;  %vm1382_vm9 = vcmp.eq.f32.partialorder %v5975_v19, %v4519_v4  ;;  %vm1670_vm14 = vcmp.lt.s32.totalorder %v1669_v9, %v1502_v37  ;;  %v1282_v26 = vrot.slane %v1281_v43, 1  ;;  %v5987_v19 = vld [vmem:[#allocation107_spill] sm:$0xff] }
 0x1cb   :  { %vm5977_vm6 = vcmp.eq.f32.partialorder %v5976_v5, %v4445_v35  ;;  %v1774_v16 = vsel %vm1773_vm2, %v1772_v41, %v1567_v25  ;;  %v1506_v13 = vsel %vm1378_vm11, %v4395_v51, 256  ;;  %v1671_v53 = vsel %vm1670_vm14, %v1669_v9, %v1502_v37  ;;  %v5986_v41 = vld [vmem:[#allocation104_spill] sm:$0xff] }
 0x1cc   :  { %v1571_v44 = vsel %vm5977_vm6, %v4505_v14, 256  ;;  %vm1386_vm0 = vcmp.eq.f32.partialorder %v5978_v55, %v4519_v4  ;;  %vm1672_vm12 = vcmp.lt.s32.totalorder %v1671_v53, %v1506_v13  ;;  %v1510_v28 = vsel %vm1382_vm9, %v4399_v18, 256  ;;  %v5992_v55 = vld [vmem:[#allocation115_spill] sm:$0xff] }
 0x1cd   :  { %vm1775_vm7 = vcmp.lt.s32.totalorder %v1774_v16, %v1571_v44  ;;  %v1673_v3 = vsel %vm1672_vm12, %v1671_v53, %v1506_v13  ;;  %vm1390_vm8 = vcmp.eq.f32.partialorder %v5979_v1, %v4519_v4  ;;  %v1514_v35 = vsel %vm1386_vm0, %v4405_v47, 256  ;;  %v5990_v13 = vld [vmem:[#allocation111_spill] sm:$0xff]  ;;  %v5991_v53 = vld [vmem:[#allocation113_spill] sm:$0xff]  ;;  %v5993_v1 = vld [vmem:[#allocation56_spill] sm:$0xff] }
 0x1ce   :  { %v4827_v33 = vsel %vm1775_vm7, %v1774_v16, %v1571_v44  ;;  %vm1674_vm15 = vcmp.lt.s32.totalorder %v1673_v3, %v1510_v28  ;;  %v4833_v6 = vmin.f32 %v1281_v43, %v1282_v26  ;;  %vm1394_vm10 = vcmp.eq.f32.partialorder %v5980_v30, %v4519_v4  ;;  %v5983_v43 = vld [vmem:[#allocation39_spill] sm:$0xff]  ;;  %v5989_v16 = vld [vmem:[#allocation109_spill] sm:$0xff] }
 0x1cf   :  { %v1675_v46 = vsel %vm1674_vm15, %v1673_v3, %v1510_v28  ;;  %v1518_v11 = vsel %vm1390_vm8, %v4414_v20, 256  ;;  %vm1398_vm1 = vcmp.eq.f32.partialorder %v5981_v29, %v4519_v4  ;;  %v1522_v56 = vsel %vm1394_vm10, %v4417_v42, 256  ;;  %v5988_v44 = vld [vmem:[#allocation47_spill] sm:$0xff]  ;;  %v5994_v29 = vld [vmem:[#allocation60_spill] sm:$0xff] }
 0x1d0   :  { %vm1676_vm13 = vcmp.lt.s32.totalorder %v1675_v46, %v1514_v35  ;;  %vm1320_vm11 = vcmp.eq.f32.partialorder %v5982_v23, %v4833_v6  ;;  %vm1324_vm3 = vcmp.eq.f32.partialorder %v5983_v43, %v4833_v6  ;;  %vm1402_vm5 = vcmp.eq.f32.partialorder %v5984_v12, %v4519_v4 }
 0x1d1   :  { %v1677_v36 = vsel %vm1676_vm13, %v1675_v46, %v1514_v35  ;;  %vm1406_vm9 = vcmp.eq.f32.partialorder %v5985_v49, %v4519_v4  ;;  %v1526_v52 = vsel %vm1398_vm1, %v4426_v27, 256  ;;  %vm1410_vm14 = vcmp.eq.f32.partialorder %v5986_v41, %v4519_v4  ;;  %v5996_v49 = vld [vmem:[#allocation67_spill] sm:$0xff] }
 0x1d2   :  { %vm1678_vm4 = vcmp.lt.s32.totalorder %v1677_v36, %v1518_v11  ;;  %v1448_v37 = vsel %vm1320_vm11, %v5942_v50, 256  ;;  %v1452_v9 = vsel %vm1324_vm3, %v5943_v31, 256  ;;  %vm1414_vm7 = vcmp.eq.f32.partialorder %v5987_v19, %v4519_v4  ;;  %v5998_v19 = vld [vmem:[#allocation120_spill] sm:$0xff] }
 0x1d3   :  { %v1679_v21 = vsel %vm1678_vm4, %v1677_v36, %v1518_v11  ;;  %v1530_v26 = vsel %vm1402_vm5, %v4429_v24, 256  ;;  %vm1328_vm0 = vcmp.eq.f32.partialorder %v5988_v44, %v4833_v6  ;;  %vm1418_vm12 = vcmp.eq.f32.partialorder %v5989_v16, %v4519_v4 }
 0x1d4   :  { %vm1680_vm2 = vcmp.lt.s32.totalorder %v1679_v21, %v1522_v56  ;;  %vm1422_vm8 = vcmp.eq.f32.partialorder %v5990_v13, %v4519_v4  ;;  %vm1426_vm15 = vcmp.eq.f32.partialorder %v5991_v53, %v4519_v4  ;;  %vm1430_vm13 = vcmp.eq.f32.partialorder %v5992_v55, %v4519_v4  ;;  %v6001_v53 = vld [vmem:[#allocation86_spill] sm:$0xff] }
 0x1d5   :  { %v1681_v25 = vsel %vm1680_vm2, %v1679_v21, %v1522_v56  ;;  %v1534_v28 = vsel %vm1406_vm9, %v4439_v38, 256  ;;  %vm1332_vm1 = vcmp.eq.f32.partialorder %v5993_v1, %v4833_v6  ;;  %vm1786_vm4 = vcmp.lt.s32.totalorder %v1448_v37, %v1452_v9  ;;  %v5995_v56 = vld [vmem:[#allocation117_spill] sm:$0xff] }
 0x1d6   :  { %vm1682_vm6 = vcmp.lt.s32.totalorder %v1681_v25, %v1526_v52  ;;  %v1538_v35 = vsel %vm1410_vm14, %v4448_v22, 256  ;;  %v1456_v46 = vsel %vm1328_vm0, %v4305_v54, 256  ;;  %v1787_v30 = vsel %vm1786_vm4, %v1448_v37, %v1452_v9  ;;  %v5997_v9 = vld [vmem:[#allocation73_spill] sm:$0xff] }
 0x1d7   :  { %v1683_v5 = vsel %vm1682_vm6, %v1681_v25, %v1526_v52  ;;  %v1635_v11 = vrot.slane %v4751_v10, 4  ;;  %vm1336_vm3 = vcmp.eq.f32.partialorder %v5994_v29, %v4833_v6  ;;  %vm1788_vm5 = vcmp.lt.s32.totalorder %v1787_v30, %v1456_v46 }
 0x1d8   :  { %vm1684_vm10 = vcmp.lt.s32.totalorder %v1683_v5, %v1530_v26  ;;  %vm1434_vm2 = vcmp.eq.f32.partialorder %v5995_v56, %v4519_v4  ;;  %v1460_v21 = vsel %vm1332_vm1, %v4311_v8, 256  ;;  %v1789_v23 = vsel %vm1788_vm5, %v1787_v30, %v1456_v46  ;;  %v70_v46 = vld [vmem:[%s5541_s2 + $0x8] sm:$0xff] }
 0x1d9   :  { %v1685_v3 = vsel %vm1684_vm10, %v1683_v5, %v1530_v26  ;;  %v1542_v43 = vsel %vm1414_vm7, %v4454_v60, 256  ;;  %vm1340_vm14 = vcmp.eq.f32.partialorder %v5996_v49, %v4833_v6  ;;  %vm1790_vm6 = vcmp.lt.s32.totalorder %v1789_v23, %v1460_v21  ;;  %2305 = vmatprep.mubr.f32.mxu0 %v70_v46  ;;  %2394 = vmatprep.mubr.f32.mxu1 %v70_v46 }
 0x1da   :  { %vm1686_vm11 = vcmp.lt.s32.totalorder %v1685_v3, %v1534_v28  ;;  %v1546_v52 = vsel %vm1418_vm12, %v4457_v7, 256  ;;  %v1464_v25 = vsel %vm1336_vm3, %v4314_v59, 256  ;;  %v1791_v41 = vsel %vm1790_vm6, %v1789_v23, %v1460_v21 }
 0x1db   :  { %v1687_v36 = vsel %vm1686_vm11, %v1685_v3, %v1534_v28  ;;  %vm1636_vm10 = vcmp.lt.s32.totalorder %v4751_v10, %v1635_v11  ;;  %vm1344_vm7 = vcmp.eq.f32.partialorder %v5997_v9, %v4833_v6  ;;  %vm1792_vm1 = vcmp.lt.s32.totalorder %v1791_v41, %v1464_v25  ;;  %v5999_v28 = vld [vmem:[#allocation80_spill] sm:$0xff] }
 0x1dc   :  { %vm1688_vm9 = vcmp.lt.s32.totalorder %v1687_v36, %v1538_v35  ;;  %vm1438_vm4 = vcmp.eq.f32.partialorder %v5998_v19, %v4519_v4  ;;  %v1468_v26 = vsel %vm1340_vm14, %v4317_v63, 256  ;;  %v1793_v5 = vsel %vm1792_vm1, %v1791_v41, %v1464_v25  ;;  %v6003_v25 = vld [vmem:[#allocation89_spill] sm:$0xff] }
 0x1dd   :  { %v1689_v12 = vsel %vm1688_vm9, %v1687_v36, %v1538_v35  ;;  %v1550_v44 = vsel %vm1422_vm8, %v4483_v39, 256  ;;  %vm1348_vm12 = vcmp.eq.f32.partialorder %v5999_v28, %v4833_v6  ;;  %vm1794_vm3 = vcmp.lt.s32.totalorder %v1793_v5, %v1468_v26  ;;  %v6000_v36 = vld [vmem:[#allocation81_spill] sm:$0xff] }
 0x1de   :  { %vm1690_vm0 = vcmp.lt.s32.totalorder %v1689_v12, %v1542_v43  ;;  %v1637_v3 = vsel %vm1636_vm10, %v4751_v10, %v1635_v11  ;;  %v1472_v1 = vsel %vm1344_vm7, %v4321_v40, 256  ;;  %v1795_v35 = vsel %vm1794_vm3, %v1793_v5, %v1468_v26  ;;  %v6004_v5 = vld [vmem:[#allocation90_spill] sm:$0xff]  ;;  %v6005_v28 = vld [vmem:[#allocation93_spill] sm:$0xff] }
 0x1df   :  { %v1691_v37 = vsel %vm1690_vm0, %v1689_v12, %v1542_v43  ;;  %v1554_v13 = vsel %vm1426_vm15, %v4486_v61, 256  ;;  %vm1352_vm8 = vcmp.eq.f32.partialorder %v6000_v36, %v4833_v6  ;;  %vm1796_vm9 = vcmp.lt.s32.totalorder %v1795_v35, %v1472_v1  ;;  %v6002_v43 = vld [vmem:[#allocation122_spill] sm:$0xff] }
 0x1e0   :  { %vm1692_vm11 = vcmp.lt.s32.totalorder %v1691_v37, %v1546_v52  ;;  %v1558_v10 = vsel %vm1430_vm13, %v4493_v0, 256  ;;  %v1476_v11 = vsel %vm1348_vm12, %v4358_v34, 256  ;;  %v1797_v29 = vsel %vm1796_vm9, %v1795_v35, %v1472_v1 }
 0x1e1   :  { %v1693_v16 = vsel %vm1692_vm11, %v1691_v37, %v1546_v52  ;;  %v1638_v21 = vrot.slane %v1637_v3, 2  ;;  %vm1356_vm15 = vcmp.eq.f32.partialorder %v6001_v53, %v4833_v6  ;;  %vm1798_vm6 = vcmp.lt.s32.totalorder %v1797_v29, %v1476_v11  ;;  %v6008_v53 = vld [vmem:[#allocation100_spill] sm:$0xff] }
 0x1e2   :  { %vm1694_vm5 = vcmp.lt.s32.totalorder %v1693_v16, %v1550_v44  ;;  %vm1442_vm0 = vcmp.eq.f32.partialorder %v6002_v43, %v4519_v4  ;;  %v1480_v12 = vsel %vm1352_vm8, %v4361_v2, 256  ;;  %v1799_v49 = vsel %vm1798_vm6, %v1797_v29, %v1476_v11  ;;  %v6007_v29 = vld [vmem:[#allocation97_spill] sm:$0xff] }
 0x1e3   :  { %v1695_v30 = vsel %vm1694_vm5, %v1693_v16, %v1550_v44  ;;  %v1562_v55 = vsel %vm1434_vm2, %v4498_v45, 256  ;;  %vm1360_vm13 = vcmp.eq.f32.partialorder %v6003_v25, %v4833_v6  ;;  %vm1800_vm7 = vcmp.lt.s32.totalorder %v1799_v49, %v1480_v12 }
 0x1e4   :  { %vm1696_vm14 = vcmp.lt.s32.totalorder %v1695_v30, %v1554_v13  ;;  %v1566_v41 = vsel %vm1438_vm4, %v4501_v48, 256  ;;  %v1484_v37 = vsel %vm1356_vm15, %v4364_v32, 256  ;;  %v1801_v9 = vsel %vm1800_vm7, %v1799_v49, %v1480_v12 }
 0x1e5   :  { %v1697_v23 = vsel %vm1696_vm14, %v1695_v30, %v1554_v13  ;;  %vm1639_vm11 = vcmp.lt.s32.totalorder %v1637_v3, %v1638_v21  ;;  %vm1364_vm12 = vcmp.eq.f32.partialorder %v6004_v5, %v4833_v6  ;;  %vm1802_vm2 = vcmp.lt.s32.totalorder %v1801_v9, %v1484_v37  ;;  %v6006_v30 = vld [vmem:[#allocation95_spill] sm:$0xff] }
 0x1e6   :  { %vm1698_vm10 = vcmp.lt.s32.totalorder %v1697_v23, %v1558_v10  ;;  %v1488_v56 = vsel %vm1360_vm13, %v4367_v58, 256  ;;  %v1803_v44 = vsel %vm1802_vm2, %v1801_v9, %v1484_v37  ;;  %v1570_v19 = vsel %vm1442_vm0, %v4505_v14, 256  ;;  %v6010_v37 = vld [vmem:[#allocation105_spill] sm:$0xff]  ;;  %v6011_v9 = vld [vmem:[#allocation108_spill] sm:$0xff] }
 0x1e7   :  { %v1699_v52 = vsel %vm1698_vm10, %v1697_v23, %v1558_v10  ;;  %vm1368_vm4 = vcmp.eq.f32.partialorder %v6005_v28, %v4833_v6  ;;  %vm1804_vm5 = vcmp.lt.s32.totalorder %v1803_v44, %v1488_v56  ;;  %v1640_v1 = vsel %vm1639_vm11, %v1637_v3, %v1638_v21 }
 0x1e8   :  { %vm1700_vm1 = vcmp.lt.s32.totalorder %v1699_v52, %v1562_v55  ;;  %v1492_v35 = vsel %vm1364_vm12, %v4370_v17, 256  ;;  %v1805_v46 = vsel %vm1804_vm5, %v1803_v44, %v1488_v56  ;;  %vm1372_vm9 = vcmp.eq.f32.partialorder %v6006_v30, %v4833_v6 }
 0x1e9   :  { %v1701_v26 = vsel %vm1700_vm1, %v1699_v52, %v1562_v55  ;;  %vm1806_vm14 = vcmp.lt.s32.totalorder %v1805_v46, %v1492_v35  ;;  %v1496_v10 = vsel %vm1368_vm4, %v4377_v62, 256  ;;  %v1641_v11 = vrot.slane %v1640_v1, 1  ;;  %v6009_v55 = vld [vmem:[#allocation103_spill] sm:$0xff] }
 0x1ea   :  { %vm1702_vm3 = vcmp.lt.s32.totalorder %v1701_v26, %v1566_v41  ;;  %v1807_v4 = vsel %vm1806_vm14, %v1805_v46, %v1492_v35  ;;  %vm1376_vm15 = vcmp.eq.f32.partialorder %v6007_v29, %v4833_v6  ;;  %v1500_v3 = vsel %vm1372_vm9, %v4385_v57, 256 }
 0x1eb   :  { %v1703_v16 = vsel %vm1702_vm3, %v1701_v26, %v1566_v41  ;;  %vm1808_vm6 = vcmp.lt.s32.totalorder %v1807_v4, %v1496_v10  ;;  %vm1380_vm10 = vcmp.eq.f32.partialorder %v6008_v53, %v4833_v6  ;;  %v1504_v12 = vsel %vm1376_vm15, %v4392_v15, 256 }
 0x1ec   :  { %vm1704_vm8 = vcmp.lt.s32.totalorder %v1703_v16, %v1570_v19  ;;  %v1809_v21 = vsel %vm1808_vm6, %v1807_v4, %v1496_v10  ;;  %vm1642_vm7 = vcmp.lt.s32.totalorder %v1640_v1, %v1641_v11  ;;  %vm1384_vm1 = vcmp.eq.f32.partialorder %v6009_v55, %v4833_v6  ;;  %v6014_v4 = vld [vmem:[#allocation114_spill] sm:$0xff]  ;;  %v6017_v55 = vld [vmem:[#allocation121_spill] sm:$0xff] }
 0x1ed   :  { %v1705_v13 = vsel %vm1704_vm8, %v1703_v16, %v1570_v19  ;;  %vm1810_vm13 = vcmp.lt.s32.totalorder %v1809_v21, %v1500_v3  ;;  %v1508_v52 = vsel %vm1380_vm10, %v4395_v51, 256  ;;  %vm1388_vm2 = vcmp.eq.f32.partialorder %v6010_v37, %v4833_v6  ;;  %v6012_v19 = vld [vmem:[#allocation110_spill] sm:$0xff] }
 0x1ee   :  { %v1706_v36 = vrot.slane %v1705_v13, 4  ;;  %v1811_v49 = vsel %vm1810_vm13, %v1809_v21, %v1500_v3  ;;  %vm1392_vm3 = vcmp.eq.f32.partialorder %v6011_v9, %v4833_v6  ;;  %v4965_v26 = vsel %vm1642_vm7, %v1640_v1, %v1641_v11  ;;  %v6015_v3 = vld [vmem:[#allocation116_spill] sm:$0xff]  ;;  %v6016_v21 = vld [vmem:[#allocation119_spill] sm:$0xff] }
 0x1ef   :  { %vm1812_vm11 = vcmp.lt.s32.totalorder %v1811_v49, %v1504_v12  ;;  %v1512_v56 = vsel %vm1384_vm1, %v4399_v18, 256  ;;  %vm1396_vm5 = vcmp.eq.f32.partialorder %v6012_v19, %v4833_v6  ;;  %v1516_v16 = vsel %vm1388_vm2, %v4405_v47, 256 }
 0x1f0   :  { %vm1707_vm0 = vcmp.lt.s32.totalorder %v1705_v13, %v1706_v36  ;;  %v1813_v25 = vsel %vm1812_vm11, %v1811_v49, %v1504_v12  ;;  %v1520_v28 = vsel %vm1392_vm3, %v4414_v20, 256  ;;  %vm1857_vm15 = vcmp.eq.s32.totalorder %v5942_v50, %v4965_v26 }
 0x1f1   :  { %v1708_v23 = vsel %vm1707_vm0, %v1705_v13, %v1706_v36  ;;  %vm1814_vm4 = vcmp.lt.s32.totalorder %v1813_v25, %v1508_v52  ;;  %vm1861_vm6 = vcmp.eq.s32.totalorder %v5943_v31, %v4965_v26  ;;  %v6013_v13 = vld [vmem:[#allocation112_spill] sm:$0xff]  ;;  %v1524_v30 = vsel %vm1396_vm5, %v4417_v42, 256 }
 0x1f2   :  { %v1709_v43 = vrot.slane %v1708_v23, 2  ;;  %v1815_v44 = vsel %vm1814_vm4, %v1813_v25, %v1508_v52  ;;  %vm1400_vm7 = vcmp.eq.f32.partialorder %v6013_v13, %v4833_v6  ;;  %v3098_v10 = vmov 1.0|1.0   ;;  %vm2921_vm2 = vmpackc.low %vm1861_vm6, %vm1857_vm15  ;;  %v6018_v52 = vld [vmem:[#allocation124_spill] sm:$0xff]  ;;  %v6024_v13 = vld [vmem:[#allocation75_spill] sm:$0xff] }
 0x1f3   :  { %vm1816_vm8 = vcmp.lt.s32.totalorder %v1815_v44, %v1512_v56  ;;  %vm1404_vm3 = vcmp.eq.f32.partialorder %v6014_v4, %v4833_v6  ;;  %v1528_v11 = vsel %vm1400_vm7, %v4426_v27, 256  ;;  %vm1408_vm6 = vcmp.eq.f32.partialorder %v6015_v3, %v4833_v6  ;;  %v6025_v3 = vld [vmem:[#allocation77_spill] sm:$0xff] }
 0x1f4   :  { %vm1710_vm12 = vcmp.lt.s32.totalorder %v1708_v23, %v1709_v43  ;;  %v1817_v35 = vsel %vm1816_vm8, %v1815_v44, %v1512_v56  ;;  %v1536_v12 = vsel %vm1408_vm6, %v4439_v38, 256  ;;  %v6021_v56 = vld [vmem:[#allocation125_spill] sm:$0xff]  ;;  %v6022_v44 = vld [vmem:[#allocation64_spill] sm:$0xff] }
 0x1f5   :  { %v1711_v41 = vsel %vm1710_vm12, %v1708_v23, %v1709_v43  ;;  %vm1818_vm14 = vcmp.lt.s32.totalorder %v1817_v35, %v1516_v16  ;;  %v1532_v23 = vsel %vm1404_vm3, %v4429_v24, 256  ;;  %v1777_v43 = vrot.slane %v4827_v33, 4 }
 0x1f6   :  { %v1712_v5 = vrot.slane %v1711_v41, 1  ;;  %v1819_v1 = vsel %vm1818_vm14, %v1817_v35, %v1516_v16  ;;  %vm1869_vm14 = vcmp.eq.s32.totalorder %v4311_v8, %v4965_v26 }
 0x1f7   :  { %vm1820_vm1 = vcmp.lt.s32.totalorder %v1819_v1, %v1520_v28 }
 0x1f8   :  { %vm1713_vm9 = vcmp.lt.s32.totalorder %v1711_v41, %v1712_v5  ;;  %v1821_v36 = vsel %vm1820_vm1, %v1819_v1, %v1520_v28 }
 0x1f9   :  { %v4972_v46 = vsel %vm1713_vm9, %v1711_v41, %v1712_v5  ;;  %vm1822_vm4 = vcmp.lt.s32.totalorder %v1821_v36, %v1524_v30  ;;  %vm1865_vm9 = vcmp.eq.s32.totalorder %v4305_v54, %v4965_v26 }
 0x1fa   :  { %vm1858_vm0 = vcmp.eq.s32.totalorder %v5942_v50, %v4972_v46  ;;  %vm1862_vm10 = vcmp.eq.s32.totalorder %v5943_v31, %v4972_v46  ;;  %vm1866_vm13 = vcmp.eq.s32.totalorder %v4305_v54, %v4972_v46  ;;  %vm1870_vm12 = vcmp.eq.s32.totalorder %v4311_v8, %v4972_v46 }
 0x1fb   :  { %vm2919_vm11 = vmpackc.low %vm1862_vm10, %vm1858_vm0  ;;  %v1823_v29 = vsel %vm1822_vm4, %v1821_v36, %v1524_v30  ;;  %vm1874_vm5 = vcmp.eq.s32.totalorder %v4314_v59, %v4972_v46  ;;  %vm1878_vm15 = vcmp.eq.s32.totalorder %v4317_v63, %v4972_v46  ;;  %vm1412_vm10 = vcmp.eq.f32.partialorder %v6016_v21, %v4833_v6  ;;  %v6026_v21 = vld [vmem:[#allocation16_spill] sm:$0xff] }
 0x1fc   :  { %2920 = vmatprep.subr.msk.bf16.mxu0 %vm2919_vm11, %v3098_v10  ;;  %vm2923_vm8 = vmpackc.low %vm1870_vm12, %vm1866_vm13  ;;  %vm1824_vm0 = vcmp.lt.s32.totalorder %v1823_v29, %v1528_v11  ;;  %vm1873_vm11 = vcmp.eq.s32.totalorder %v4314_v59, %v4965_v26  ;;  %vm1877_vm12 = vcmp.eq.s32.totalorder %v4317_v63, %v4965_v26  ;;  %vm1886_vm3 = vcmp.eq.s32.totalorder %v4358_v34, %v4972_v46 }
 0x1fd   :  { %2922 = vmatpush1.bf16.msk.msra.mxu0 %vm2921_vm2, %v3098_v10  ;;  %v1825_v53 = vsel %vm1824_vm0, %v1823_v29, %v1528_v11  ;;  %vm2925_vm13 = vmpackc.low %vm1869_vm14, %vm1865_vm9  ;;  %vm1882_vm2 = vcmp.eq.s32.totalorder %v4321_v40, %v4972_v46  ;;  %vm1416_vm4 = vcmp.eq.f32.partialorder %v6017_v55, %v4833_v6  ;;  %vm1420_vm9 = vcmp.eq.f32.partialorder %v6018_v52, %v4833_v6 }
 0x1fe   :  { %2924 = vmatprep.subr.msk.bf16.mxu0 %vm2923_vm8, %v3098_v10  ;;  %vm1826_vm7 = vcmp.lt.s32.totalorder %v1825_v53, %v1532_v23  ;;  %vm2927_vm1 = vmpackc.low %vm1878_vm15, %vm1874_vm5  ;;  %v1540_v25 = vsel %vm1412_vm10, %v4448_v22, 256  ;;  %vm5032_vm5 = vcmp.lt.s32.totalorder %v4827_v33, %v1777_v43  ;;  %vm1881_vm0 = vcmp.eq.s32.totalorder %v4321_v40, %v4965_v26 }
 0x1ff   :  { %v1827_v49 = vsel %vm1826_vm7, %v1825_v53, %v1532_v23  ;;  %vm2929_vm14 = vmpackc.low %vm1877_vm12, %vm1873_vm11  ;;  %v1544_v9 = vsel %vm1416_vm4, %v4454_v60, 256  ;;  %vm1890_vm10 = vcmp.eq.s32.totalorder %v4361_v2, %v4972_v46  ;;  %vm1894_vm7 = vcmp.eq.s32.totalorder %v4364_v32, %v4972_v46 }
 0x200   :  { %vm1828_vm8 = vcmp.lt.s32.totalorder %v1827_v49, %v1536_v12  ;;  %vm2931_vm6 = vmpackc.low %vm1886_vm3, %vm1882_vm2  ;;  %vm1428_vm12 = vcmp.eq.f32.partialorder %v6022_v44, %v4833_v6  ;;  %v1548_v19 = vsel %vm1420_vm9, %v4457_v7, 256  ;;  %v1779_v28 = vsel %vm5032_vm5, %v4827_v33, %v1777_v43  ;;  %v6023_v33 = vld [vmem:[#allocation69_spill] sm:$0xff] }
 0x201   :  { %2926 = vmatpush1.bf16.msk.msra.mxu0 %vm2925_vm13, %v3098_v10  ;;  %v1829_v41 = vsel %vm1828_vm8, %v1827_v49, %v1536_v12  ;;  %vm1885_vm13 = vcmp.eq.s32.totalorder %v4358_v34, %v4965_v26  ;;  %vm2935_vm4 = vmpackc.low %vm1894_vm7, %vm1890_vm10  ;;  %vm1889_vm8 = vcmp.eq.s32.totalorder %v4361_v2, %v4965_v26  ;;  %vm1898_vm9 = vcmp.eq.s32.totalorder %v4367_v58, %v4972_v46 }
 0x202   :  { %2928 = vmatprep.subr.msk.bf16.mxu0 %vm2927_vm1, %v3098_v10  ;;  %vm1830_vm15 = vcmp.lt.s32.totalorder %v1829_v41, %v1540_v25  ;;  %vm1424_vm1 = vcmp.eq.f32.partialorder %v6021_v56, %v4833_v6  ;;  %vm2933_vm2 = vmpackc.low %vm1885_vm13, %vm1881_vm0  ;;  %vm1902_vm5 = vcmp.eq.s32.totalorder %v4370_v17, %v4972_v46  ;;  %vm1436_vm0 = vcmp.eq.f32.partialorder %v6024_v13, %v4833_v6  ;;  %v3060_v13 = vld [vmem:[%s5539_s0 + $0x18] sm:$0xff] }
 0x203   :  { %v1831_v5 = vsel %vm1830_vm15, %v1829_v41, %v1540_v25  ;;  %v1552_v35 = vsel %vm1424_vm1, %v4483_v39, 256  ;;  %vm1432_vm15 = vcmp.eq.f32.partialorder %v6023_v33, %v4833_v6  ;;  %v1556_v30 = vsel %vm1428_vm12, %v4486_v61, 256  ;;  %vm2939_vm7 = vmpackc.low %vm1902_vm5, %vm1898_vm9 }
 0x204   :  { %vm1832_vm11 = vcmp.lt.s32.totalorder %v1831_v5, %v1544_v9  ;;  %v1780_v4 = vrot.slane %v1779_v28, 2  ;;  %vm1897_vm1 = vcmp.eq.s32.totalorder %v4367_v58, %v4965_v26  ;;  %v1560_v11 = vsel %vm1432_vm15, %v4493_v0, 256 }
 0x205   :  { %2930 = vmatpush1.bf16.msk.msra.mxu0 %vm2929_vm14, %v3098_v10  ;;  %v1833_v16 = vsel %vm1832_vm11, %v1831_v5, %v1544_v9  ;;  %vm1893_vm14 = vcmp.eq.s32.totalorder %v4364_v32, %v4965_v26  ;;  %vm1901_vm11 = vcmp.eq.s32.totalorder %v4370_v17, %v4965_v26  ;;  %vm1906_vm12 = vcmp.eq.s32.totalorder %v4377_v62, %v4972_v46 }
 0x206   :  { %2932 = vmatprep.subr.msk.bf16.mxu0 %vm2931_vm6, %v3098_v10  ;;  %vm1834_vm3 = vcmp.lt.s32.totalorder %v1833_v16, %v1548_v19  ;;  %vm2937_vm13 = vmpackc.low %vm1893_vm14, %vm1889_vm8  ;;  %vm1444_vm8 = vcmp.eq.f32.partialorder %v6026_v21, %v4833_v6  ;;  %v1564_v23 = vsel %vm1436_vm0, %v4498_v45, 256  ;;  %vm5096_vm9 = vcmp.lt.s32.totalorder %v1779_v28, %v1780_v4 }
 0x207   :  { %v1835_v1 = vsel %vm1834_vm3, %v1833_v16, %v1548_v19  ;;  %vm1440_vm3 = vcmp.eq.f32.partialorder %v6025_v3, %v4833_v6  ;;  %vm2941_vm14 = vmpackc.low %vm1901_vm11, %vm1897_vm1  ;;  %vm1914_vm0 = vcmp.eq.s32.totalorder %v4392_v15, %v4972_v46  ;;  %v1572_v55 = vsel %vm1444_vm8, %v4505_v14, 256 }
 0x208   :  { %vm1836_vm6 = vcmp.lt.s32.totalorder %v1835_v1, %v1552_v35  ;;  %v1568_v12 = vsel %vm1440_vm3, %v4501_v48, 256  ;;  %v1782_v25 = vsel %vm5096_vm9, %v1779_v28, %v1780_v4  ;;  %vm1917_vm3 = vcmp.eq.s32.totalorder %v4395_v51, %v4965_v26  ;;  %v3061_v4 = vld [vmem:[%s5539_s0 + $0x28] sm:$0xff] }
 0x209   :  { %2934 = vmatpush1.bf16.msk.msra.mxu0 %vm2933_vm2, %v3098_v10  ;;  %v1837_v36 = vsel %vm1836_vm6, %v1835_v1, %v1552_v35  ;;  %vm1910_vm2 = vcmp.eq.s32.totalorder %v4385_v57, %v4972_v46  ;;  %vm1905_vm6 = vcmp.eq.s32.totalorder %v4377_v62, %v4965_v26  ;;  %vm1926_vm8 = vcmp.eq.s32.totalorder %v4405_v47, %v4972_v46 }
 0x20a   :  { %2936 = vmatprep.subr.msk.bf16.mxu0 %vm2935_vm4, %v3098_v10  ;;  %vm1838_vm10 = vcmp.lt.s32.totalorder %v1837_v36, %v1556_v30  ;;  %vm2943_vm15 = vmpackc.low %vm1910_vm2, %vm1906_vm12  ;;  %vm1913_vm2 = vcmp.eq.s32.totalorder %v4392_v15, %v4965_v26  ;;  %v1783_v37 = vrot.slane %v1782_v25, 1  ;;  %v3099_v44 = vmov 1966171168  }
 0x20b   :  { %v1839_v29 = vsel %vm1838_vm10, %v1837_v36, %v1556_v30  ;;  %vm1918_vm10 = vcmp.eq.s32.totalorder %v4395_v51, %v4972_v46  ;;  %v2438_v19 = vunpack.c.l.s4 %v3099_v44 }
 0x20c   :  { %vm1840_vm4 = vcmp.lt.s32.totalorder %v1839_v29, %v1560_v11  ;;  %vm2947_vm12 = vmpackc.low %vm1918_vm10, %vm1914_vm0  ;;  %vm1934_vm0 = vcmp.eq.s32.totalorder %v4417_v42, %v4972_v46  ;;  %vm1784_vm10 = vcmp.lt.s32.totalorder %v1782_v25, %v1783_v37 }
 0x20d   :  { %2938 = vmatpush1.bf16.msk.msra.mxu0 %vm2937_vm13, %v3098_v10  ;;  %v1841_v53 = vsel %vm1840_vm4, %v1839_v29, %v1560_v11  ;;  %vm1909_vm13 = vcmp.eq.s32.totalorder %v4385_v57, %v4965_v26  ;;  %vm1922_vm4 = vcmp.eq.s32.totalorder %v4399_v18, %v4972_v46  ;;  %v5147_v16 = vsel %vm1784_vm10, %v1782_v25, %v1783_v37 }
 0x20e   :  { %2940 = vmatprep.subr.msk.bf16.mxu0 %vm2939_vm7, %v3098_v10  ;;  %vm1842_vm5 = vcmp.lt.s32.totalorder %v1841_v53, %v1564_v23  ;;  %vm2945_vm1 = vmpackc.low %vm1909_vm13, %vm1905_vm6  ;;  %vm1925_vm6 = vcmp.eq.s32.totalorder %v4405_v47, %v4965_v26  ;;  %vm1930_vm13 = vcmp.eq.s32.totalorder %v4414_v20, %v4972_v46  ;;  %v2439_v1 = vunpack.c.0.s8 %v2438_v19  ;;  %v3065_v19 = vld [vmem:[%s5539_s0 + $0x48] sm:$0xff] }
 0x20f   :  { %v1843_v49 = vsel %vm1842_vm5, %v1841_v53, %v1564_v23  ;;  %vm2951_vm5 = vmpackc.low %vm1926_vm8, %vm1922_vm4  ;;  %vm1942_vm4 = vcmp.eq.s32.totalorder %v4429_v24, %v4972_v46  ;;  %v3062_v53 = vld [vmem:[%s5539_s0 + $0x30] sm:$0xff] }
 0x210   :  { %vm1844_vm7 = vcmp.lt.s32.totalorder %v1843_v49, %v1568_v12  ;;  %v2442_v33 = vsub.s32 %v2439_v1, %v5942_v50 }
 0x211   :  { %2942 = vmatpush1.bf16.msk.msra.mxu0 %vm2941_vm14, %v3098_v10  ;;  %v1845_v52 = vsel %vm1844_vm7, %v1843_v49, %v1568_v12  ;;  %vm2949_vm14 = vmpackc.low %vm1917_vm3, %vm1913_vm2  ;;  %vm1933_vm2 = vcmp.eq.s32.totalorder %v4417_v42, %v4965_v26  ;;  %vm1938_vm3 = vcmp.eq.s32.totalorder %v4426_v27, %v4972_v46 }
 0x212   :  { %2944 = vmatprep.subr.msk.bf16.mxu0 %vm2943_vm15, %v3098_v10  ;;  %vm1846_vm11 = vcmp.lt.s32.totalorder %v1845_v52, %v1572_v55  ;;  %vm1921_vm15 = vcmp.eq.s32.totalorder %v4399_v18, %v4965_v26 }
 0x213   :  { %v1847_v41 = vsel %vm1846_vm11, %v1845_v52, %v1572_v55  ;;  %vm2953_vm7 = vmpackc.low %vm1925_vm6, %vm1921_vm15  ;;  %vm1863_vm15 = vcmp.eq.s32.totalorder %v5943_v31, %v5147_v16 }
 0x214   :  { %v1848_v6 = vrot.slane %v1847_v41, 4  ;;  %vm2955_vm11 = vmpackc.low %vm1934_vm0, %vm1930_vm13 }
 0x215   :  { %2946 = vmatpush1.bf16.msk.msra.mxu0 %vm2945_vm1, %v3098_v10 }
 0x216   :  { %2948 = vmatprep.subr.msk.bf16.mxu0 %vm2947_vm12, %v3098_v10  ;;  %vm1849_vm9 = vcmp.lt.s32.totalorder %v1847_v41, %v1848_v6  ;;  %vm1929_vm12 = vcmp.eq.s32.totalorder %v4414_v20, %v4965_v26 }
 0x217   :  { %v1850_v9 = vsel %vm1849_vm9, %v1847_v41, %v1848_v6  ;;  %vm2957_vm8 = vmpackc.low %vm1933_vm2, %vm1929_vm12  ;;  %vm1946_vm2 = vcmp.eq.s32.totalorder %v4439_v38, %v4972_v46  ;;  %v3063_v6 = vld [vmem:[%s5539_s0 + $0x38] sm:$0xff] }
 0x218   :  { %v1851_v5 = vrot.slane %v1850_v9, 2  ;;  %vm2959_vm9 = vmpackc.low %vm1942_vm4, %vm1938_vm3  ;;  %vm1950_vm3 = vcmp.eq.s32.totalorder %v4448_v22, %v4972_v46 }
 0x219   :  { %2950 = vmatpush1.bf16.msk.msra.mxu0 %vm2949_vm14, %v3098_v10 }
 0x21a   :  { %2952 = vmatprep.subr.msk.bf16.mxu0 %vm2951_vm5, %v3098_v10  ;;  %vm1852_vm1 = vcmp.lt.s32.totalorder %v1850_v9, %v1851_v5  ;;  %vm1859_vm5 = vcmp.eq.s32.totalorder %v5942_v50, %v5147_v16 }
 0x21b   :  { %v1853_v56 = vsel %vm1852_vm1, %v1850_v9, %v1851_v5  ;;  %vm1937_vm1 = vcmp.eq.s32.totalorder %v4426_v27, %v4965_v26  ;;  %vm2985_vm12 = vmpackc.low %vm1863_vm15, %vm1859_vm5  ;;  %v3064_v9 = vld [vmem:[%s5539_s0 + $0x40] sm:$0xff] }
 0x21c   :  { %v1854_v28 = vrot.slane %v1853_v56, 1 }
 0x21d   :  { %2954 = vmatpush1.bf16.msk.msra.mxu0 %vm2953_vm7, %v3098_v10 }
 0x21e   :  { %2956 = vmatprep.subr.msk.bf16.mxu0 %vm2955_vm11, %v3098_v10  ;;  %vm1855_vm14 = vcmp.lt.s32.totalorder %v1853_v56, %v1854_v28  ;;  %vm1941_vm11 = vcmp.eq.s32.totalorder %v4429_v24, %v4965_v26 }
 0x21f   :  { %v5150_v35 = vsel %vm1855_vm14, %v1853_v56, %v1854_v28  ;;  %vm1871_vm14 = vcmp.eq.s32.totalorder %v4311_v8, %v5147_v16  ;;  %vm2961_vm15 = vmpackc.low %vm1941_vm11, %vm1937_vm1  ;;  %vm1958_vm1 = vcmp.eq.s32.totalorder %v4457_v7, %v4972_v46 }
 0x220   :  { %vm1860_vm6 = vcmp.eq.s32.totalorder %v5942_v50, %v5150_v35  ;;  %vm1864_vm13 = vcmp.eq.s32.totalorder %v5943_v31, %v5150_v35  ;;  %vm1868_vm0 = vcmp.eq.s32.totalorder %v4305_v54, %v5150_v35  ;;  %vm1872_vm10 = vcmp.eq.s32.totalorder %v4311_v8, %v5150_v35 }
 0x221   :  { %2958 = vmatpush1.bf16.msk.msra.mxu0 %vm2957_vm8, %v3098_v10  ;;  %vm2983_vm7 = vmpackc.low %vm1864_vm13, %vm1860_vm6  ;;  %vm1867_vm8 = vcmp.eq.s32.totalorder %v4305_v54, %v5147_v16  ;;  %vm1880_vm5 = vcmp.eq.s32.totalorder %v4317_v63, %v5150_v35  ;;  %v2435_v31 = vcombine.low %v4965_v26, %v4972_v46  ;;  %vm1945_vm13 = vcmp.eq.s32.totalorder %v4439_v38, %v4965_v26 }
 0x222   :  { %2960 = vmatprep.subr.msk.bf16.mxu0 %vm2959_vm9, %v3098_v10  ;;  %2984 = vmatprep.subr.msk.bf16.mxu1 %vm2983_vm7, %v3098_v10  ;;  %vm2987_vm4 = vmpackc.low %vm1872_vm10, %vm1868_vm0  ;;  %vm1876_vm9 = vcmp.eq.s32.totalorder %v4314_v59, %v5150_v35  ;;  %vm1949_vm0 = vcmp.eq.s32.totalorder %v4448_v22, %v4965_v26  ;;  %vm1954_vm7 = vcmp.eq.s32.totalorder %v4454_v60, %v4972_v46 }
 0x223   :  { %2986 = vmatpush1.bf16.msk.msra.mxu1 %vm2985_vm12, %v3098_v10  ;;  %vm2963_vm6 = vmpackc.low %vm1950_vm3, %vm1946_vm2  ;;  %vm1875_vm12 = vcmp.eq.s32.totalorder %v4314_v59, %v5147_v16  ;;  %vm1879_vm2 = vcmp.eq.s32.totalorder %v4317_v63, %v5147_v16  ;;  %vm1884_vm3 = vcmp.eq.s32.totalorder %v4321_v40, %v5150_v35  ;;  %v2436_v54 = vcombine.low %v5147_v16, %v5150_v35 }
 0x224   :  { %2988 = vmatprep.subr.msk.bf16.mxu1 %vm2987_vm4, %v3098_v10  ;;  %vm2989_vm10 = vmpackc.low %vm1871_vm14, %vm1867_vm8  ;;  %vm1888_vm4 = vcmp.eq.s32.totalorder %v4358_v34, %v5150_v35  ;;  %v2443_v8 = vrot.slane %v2435_v31, %v2442_v33 }
 0x225   :  { %2962 = vmatpush1.bf16.msk.msra.mxu0 %vm2961_vm15, %v3098_v10  ;;  %vm2991_vm11 = vmpackc.low %vm1880_vm5, %vm1876_vm9  ;;  %vm1953_vm9 = vcmp.eq.s32.totalorder %v4454_v60, %v4965_v26  ;;  %vm1957_vm5 = vcmp.eq.s32.totalorder %v4457_v7, %v4965_v26  ;;  %v2450_v59 = vrot.slane %v2436_v54, %v2442_v33 }
 0x226   :  { %2964 = vmatprep.subr.msk.bf16.mxu0 %vm2963_vm6, %v3098_v10  ;;  %vm2965_vm8 = vmpackc.low %vm1949_vm0, %vm1945_vm13  ;;  %vm1962_vm6 = vcmp.eq.s32.totalorder %v4483_v39, %v4972_v46  ;;  %vm1966_vm13 = vcmp.eq.s32.totalorder %v4486_v61, %v4972_v46 }
 0x227   :  { %2990 = vmatpush1.bf16.msk.msra.mxu1 %vm2989_vm10, %v3098_v10  ;;  %vm2967_vm14 = vmpackc.low %vm1958_vm1, %vm1954_vm7  ;;  %vm1883_vm10 = vcmp.eq.s32.totalorder %v4321_v40, %v5147_v16  ;;  %vm1887_vm7 = vcmp.eq.s32.totalorder %v4358_v34, %v5147_v16  ;;  %vm1892_vm1 = vcmp.eq.s32.totalorder %v4361_v2, %v5150_v35  ;;  %v2451_v63 = vcombine.low %v2443_v8, %v2450_v59 }
 0x228   :  { %2992 = vmatprep.subr.msk.bf16.mxu1 %vm2991_vm11, %v3098_v10  ;;  %vm2993_vm15 = vmpackc.low %vm1879_vm2, %vm1875_vm12  ;;  %vm1896_vm11 = vcmp.eq.s32.totalorder %v4364_v32, %v5150_v35  ;;  %v6029_v40 = vlaneseq }
 0x229   :  { %2966 = vmatpush1.bf16.msk.msra.mxu0 %vm2965_vm8, %v3098_v10  ;;  %vm2995_vm0 = vmpackc.low %vm1888_vm4, %vm1884_vm3  ;;  %vm1961_vm3 = vcmp.eq.s32.totalorder %v4483_v39, %v4965_v26  ;;  %vm1965_vm4 = vcmp.eq.s32.totalorder %v4486_v61, %v4965_v26  ;;  %v2458_v34 = vrot.slane %v2451_v63, %v2442_v33  ;;  %v3066_v33 = vld [vmem:[%s5539_s0 + $0x50] sm:$0xff] }
 0x22a   :  { %2968 = vmatprep.subr.msk.bf16.mxu0 %vm2967_vm14, %v3098_v10  ;;  %vm2969_vm12 = vmpackc.low %vm1957_vm5, %vm1953_vm9  ;;  %vm2461_vm8 = vcmp.lt.s32.totalorder %v6029_v40, 512  ;;  %vm1974_vm9 = vcmp.eq.s32.totalorder %v4498_v45, %v4972_v46 }
 0x22b   :  { %2994 = vmatpush1.bf16.msk.msra.mxu1 %vm2993_vm15, %v3098_v10  ;;  %vm2971_vm2 = vmpackc.low %vm1966_vm13, %vm1962_vm6  ;;  %vm1970_vm15 = vcmp.eq.s32.totalorder %v4493_v0, %v4972_v46  ;;  %vm1891_vm6 = vcmp.eq.s32.totalorder %v4361_v2, %v5147_v16  ;;  %vm1895_vm13 = vcmp.eq.s32.totalorder %v4364_v32, %v5147_v16  ;;  %2463 = vst.msk [vmem:[#allocation2] sm:$0xf] %vm2461_vm8, %v2458_v34  ;;  %v5343_v2 = vld [vmem:[%s5541_s2 + $0x20] sm:$0xff]  ;;  %v5348_v32 = vld [vmem:[%s5541_s2 + $0x38] sm:$0xff] }
 0x22c   :  { %2996 = vmatprep.subr.msk.bf16.mxu1 %vm2995_vm0, %v3098_v10  ;;  %vm2997_vm14 = vmpackc.low %vm1887_vm7, %vm1883_vm10  ;;  %vm1900_vm0 = vcmp.eq.s32.totalorder %v4367_v58, %v5150_v35  ;;  %vm1904_vm10 = vcmp.eq.s32.totalorder %v4370_v17, %v5150_v35  ;;  %vm1903_vm8 = vcmp.eq.s32.totalorder %v4370_v17, %v5147_v16  ;;  %v5299_v17 = vld [vmem:[%s5541_s2] sm:$0xff] }
 0x22d   :  { %2970 = vmatpush1.bf16.msk.msra.mxu0 %vm2969_vm12, %v3098_v10  ;;  %vm2999_vm5 = vmpackc.low %vm1896_vm11, %vm1892_vm1  ;;  %vm1969_vm11 = vcmp.eq.s32.totalorder %v4493_v0, %v4965_v26  ;;  %vm1973_vm12 = vcmp.eq.s32.totalorder %v4498_v45, %v4965_v26 }
 0x22e   :  { %2972 = vmatprep.subr.msk.bf16.mxu0 %vm2971_vm2, %v3098_v10  ;;  %vm2973_vm7 = vmpackc.low %vm1965_vm4, %vm1961_vm3  ;;  %vm1899_vm4 = vcmp.eq.s32.totalorder %v4367_v58, %v5147_v16  ;;  %v5326_v58 = vld [vmem:[%s5541_s2 + $0x28] sm:$0xff] }
 0x22f   :  { %2998 = vmatpush1.bf16.msk.msra.mxu1 %vm2997_vm14, %v3098_v10  ;;  %vm2975_vm1 = vmpackc.low %vm1974_vm9, %vm1970_vm15  ;;  %vm1978_vm14 = vcmp.eq.s32.totalorder %v4501_v48, %v4972_v46  ;;  %vm1908_vm15 = vcmp.eq.s32.totalorder %v4377_v62, %v5150_v35  ;;  %vm1912_vm9 = vcmp.eq.s32.totalorder %v4385_v57, %v5150_v35 }
 0x230   :  { %3000 = vmatprep.subr.msk.bf16.mxu1 %vm2999_vm5, %v3098_v10  ;;  %vm3001_vm2 = vmpackc.low %vm1895_vm13, %vm1891_vm6  ;;  %vm1982_vm5 = vcmp.eq.s32.totalorder %v4505_v14, %v4972_v46  ;;  %v3059_v46 = vld [vmem:[%s5539_s0 + $0x20] sm:$0xff] }
 0x231   :  { %2974 = vmatpush1.bf16.msk.msra.mxu0 %vm2973_vm7, %v3098_v10  ;;  %vm3003_vm3 = vmpackc.low %vm1904_vm10, %vm1900_vm0  ;;  %vm1977_vm0 = vcmp.eq.s32.totalorder %v4501_v48, %v4965_v26  ;;  %vm1981_vm10 = vcmp.eq.s32.totalorder %v4505_v14, %v4965_v26 }
 0x232   :  { %2976 = vmatprep.subr.msk.bf16.mxu0 %vm2975_vm1, %v3098_v10  ;;  %vm2977_vm6 = vmpackc.low %vm1973_vm12, %vm1969_vm11  ;;  %vm1911_vm11 = vcmp.eq.s32.totalorder %v4385_v57, %v5147_v16  ;;  %vm1916_vm12 = vcmp.eq.s32.totalorder %v4392_v15, %v5150_v35  ;;  %v5304_v57 = vld [vmem:[%s5541_s2 + $0x18] sm:$0xff] }
 0x233   :  { %3002 = vmatpush1.bf16.msk.msra.mxu1 %vm3001_vm2, %v3098_v10  ;;  %vm2979_vm13 = vmpackc.low %vm1982_vm5, %vm1978_vm14  ;;  %vm1907_vm2 = vcmp.eq.s32.totalorder %v4377_v62, %v5147_v16  ;;  %vm1920_vm14 = vcmp.eq.s32.totalorder %v4395_v51, %v5150_v35  ;;  %v5321_v62 = vld [vmem:[%s5541_s2 + $0x10] sm:$0xff] }
 0x234   :  { %3004 = vmatprep.subr.msk.bf16.mxu1 %vm3003_vm3, %v3098_v10  ;;  %vm3005_vm7 = vmpackc.low %vm1903_vm8, %vm1899_vm4  ;;  %vm1915_vm8 = vcmp.eq.s32.totalorder %v4392_v15, %v5147_v16  ;;  %v75_v15 = vld [vmem:[%s5541_s2 + $0x30] sm:$0xff] }
 0x235   :  { %2978 = vmatpush1.bf16.msk.msra.mxu0 %vm2977_vm6, %v3098_v10  ;;  %vm3007_vm1 = vmpackc.low %vm1912_vm9, %vm1908_vm15  ;;  %vm1919_vm15 = vcmp.eq.s32.totalorder %v4395_v51, %v5147_v16  ;;  %vm1924_vm9 = vcmp.eq.s32.totalorder %v4399_v18, %v5150_v35  ;;  %vm1928_vm6 = vcmp.eq.s32.totalorder %v4405_v47, %v5150_v35 }
 0x236   :  { %2980 = vmatprep.subr.msk.bf16.mxu0 %vm2979_vm13, %v3098_v10  ;;  %vm2981_vm5 = vmpackc.low %vm1981_vm10, %vm1977_vm0  ;;  %vm1923_vm10 = vcmp.eq.s32.totalorder %v4399_v18, %v5147_v16 }
 0x237   :  { %3006 = vmatpush1.bf16.msk.msra.mxu1 %vm3005_vm7, %v3098_v10  ;;  %vm3009_vm3 = vmpackc.low %vm1911_vm11, %vm1907_vm2  ;;  %vm1927_vm7 = vcmp.eq.s32.totalorder %v4405_v47, %v5147_v16  ;;  %vm1936_vm2 = vcmp.eq.s32.totalorder %v4417_v42, %v5150_v35  ;;  %v3057_v47 = vld [vmem:[%s5539_s0 + $0x8] sm:$0xff] }
 0x238   :  { %3008 = vmatprep.subr.msk.bf16.mxu1 %vm3007_vm1, %v3098_v10  ;;  %vm3011_vm4 = vmpackc.low %vm1920_vm14, %vm1916_vm12  ;;  %vm1932_vm1 = vcmp.eq.s32.totalorder %v4414_v20, %v5150_v35  ;;  %vm1931_vm14 = vcmp.eq.s32.totalorder %v4414_v20, %v5147_v16 }
 0x239   :  { %2982 = vmatpush1.bf16.msk.msra.mxu0 %vm2981_vm5, %v3098_v10  ;;  %vm3013_vm13 = vmpackc.low %vm1919_vm15, %vm1915_vm8  ;;  %vm1935_vm5 = vcmp.eq.s32.totalorder %v4417_v42, %v5147_v16 }
 0x23a   :  { %vm3015_vm0 = vmpackc.low %vm1928_vm6, %vm1924_vm9  ;;  %vm1939_vm9 = vcmp.eq.s32.totalorder %v4426_v27, %v5147_v16  ;;  %vm1943_vm6 = vcmp.eq.s32.totalorder %v4429_v24, %v5147_v16 }
 0x23b   :  { %3010 = vmatpush1.bf16.msk.msra.mxu1 %vm3009_vm3, %v3098_v10  ;;  %vm3017_vm11 = vmpackc.low %vm1927_vm7, %vm1923_vm10  ;;  %vm1940_vm3 = vcmp.eq.s32.totalorder %v4426_v27, %v5150_v35 }
 0x23c   :  { %3012 = vmatprep.subr.msk.bf16.mxu1 %vm3011_vm4, %v3098_v10  ;;  %2306 = vmatmul.mubr.f32.vlgmr.msra.gmra.mrb[64].mxu0 %v5299_v17  ;;  %vm3019_vm12 = vmpackc.low %vm1936_vm2, %vm1932_vm1  ;;  %vm1944_vm4 = vcmp.eq.s32.totalorder %v4429_v24, %v5150_v35  ;;  %vm1947_vm1 = vcmp.eq.s32.totalorder %v4439_v38, %v5147_v16  ;;  %vm1951_vm2 = vcmp.eq.s32.totalorder %v4448_v22, %v5147_v16 }
 0x23d   :  { %2311 = vmatprep.mubr.f32.mxu0 %v5304_v57  ;;  %vm3021_vm8 = vmpackc.low %vm1935_vm5, %vm1931_vm14 }
 0x23e   :  { %vm3023_vm15 = vmpackc.low %vm1944_vm4, %vm1940_vm3  ;;  %vm1955_vm3 = vcmp.eq.s32.totalorder %v4454_v60, %v5147_v16  ;;  %vm1959_vm4 = vcmp.eq.s32.totalorder %v4457_v7, %v5147_v16 }
 0x23f   :  { %3014 = vmatpush1.bf16.msk.msra.mxu1 %vm3013_vm13, %v3098_v10  ;;  %vm1948_vm13 = vcmp.eq.s32.totalorder %v4439_v38, %v5150_v35  ;;  %vm3025_vm10 = vmpackc.low %vm1943_vm6, %vm1939_vm9 }
 0x240   :  { %3016 = vmatprep.subr.msk.bf16.mxu1 %vm3015_vm0, %v3098_v10  ;;  %2312 = vmatmul.mubr.f32.gmra.mrb[66].mxu0 %v5321_v62  ;;  %vm1952_vm0 = vcmp.eq.s32.totalorder %v4448_v22, %v5150_v35  ;;  %vm3029_vm14 = vmpackc.low %vm1951_vm2, %vm1947_vm1 }
 0x241   :  { %2317 = vmatprep.mubr.f32.mxu0 %v5326_v58  ;;  %vm3027_vm7 = vmpackc.low %vm1952_vm0, %vm1948_vm13  ;;  %vm1963_vm13 = vcmp.eq.s32.totalorder %v4483_v39, %v5147_v16  ;;  %vm1967_vm0 = vcmp.eq.s32.totalorder %v4486_v61, %v5147_v16 }
 0x242   :  { %vm3033_vm9 = vmpackc.low %vm1959_vm4, %vm1955_vm3 }
 0x243   :  { %3018 = vmatpush1.bf16.msk.msra.mxu1 %vm3017_vm11, %v3098_v10  ;;  %vm1956_vm11 = vcmp.eq.s32.totalorder %v4454_v60, %v5150_v35  ;;  %vm3037_vm1 = vmpackc.low %vm1967_vm0, %vm1963_vm13 }
 0x244   :  { %3020 = vmatprep.subr.msk.bf16.mxu1 %vm3019_vm12, %v3098_v10  ;;  %2318 = vmatmul.mubr.f32.gmra.mrb[68].mxu0 %v5343_v2  ;;  %vm1960_vm12 = vcmp.eq.s32.totalorder %v4457_v7, %v5150_v35 }
 0x245   :  { %2323 = vmatprep.mubr.f32.mxu0 %v5348_v32  ;;  %vm3031_vm5 = vmpackc.low %vm1960_vm12, %vm1956_vm11  ;;  %vm1971_vm11 = vcmp.eq.s32.totalorder %v4493_v0, %v5147_v16  ;;  %vm1975_vm12 = vcmp.eq.s32.totalorder %v4498_v45, %v5147_v16 }
 0x246   :  { %vm3041_vm3 = vmpackc.low %vm1975_vm12, %vm1971_vm11 }
 0x247   :  { %3022 = vmatpush1.bf16.msk.msra.mxu1 %vm3021_vm8, %v3098_v10  ;;  %vm1964_vm8 = vcmp.eq.s32.totalorder %v4483_v39, %v5150_v35 }
 0x248   :  { %3024 = vmatprep.subr.msk.bf16.mxu1 %vm3023_vm15, %v3098_v10  ;;  %2324 = vmatmul.mubr.f32.gmra.mrb[70].mxu0 %v75_v15  ;;  %vm1968_vm15 = vcmp.eq.s32.totalorder %v4486_v61, %v5150_v35 }
 0x249   :  { %vm3035_vm6 = vmpackc.low %vm1968_vm15, %vm1964_vm8  ;;  %vm1979_vm8 = vcmp.eq.s32.totalorder %v4501_v48, %v5147_v16  ;;  %vm1983_vm15 = vcmp.eq.s32.totalorder %v4505_v14, %v5147_v16 }
 0x24b   :  { %3026 = vmatpush1.bf16.msk.msra.mxu1 %vm3025_vm10, %v3098_v10  ;;  %vm1972_vm10 = vcmp.eq.s32.totalorder %v4493_v0, %v5150_v35 }
 0x24c   :  { %3028 = vmatprep.subr.msk.bf16.mxu1 %vm3027_vm7, %v3098_v10  ;;  %vm1976_vm7 = vcmp.eq.s32.totalorder %v4498_v45, %v5150_v35  ;;  %v3056_v45 = vld [vmem:[%s5539_s0] sm:$0xff] }
 0x24d   :  { %vm3039_vm2 = vmpackc.low %vm1976_vm7, %vm1972_vm10 }
 0x24f   :  { %3030 = vmatpush1.bf16.msk.msra.mxu1 %vm3029_vm14, %v3098_v10  ;;  %vm1980_vm14 = vcmp.eq.s32.totalorder %v4501_v48, %v5150_v35 }
 0x250   :  { %3032 = vmatprep.subr.msk.bf16.mxu1 %vm3031_vm5, %v3098_v10  ;;  %vm1984_vm5 = vcmp.eq.s32.totalorder %v4505_v14, %v5150_v35  ;;  %v3058_v14 = vld [vmem:[%s5539_s0 + $0x10] sm:$0xff] }
 0x251   :  { %vm3043_vm4 = vmpackc.low %vm1984_vm5, %vm1980_vm14 }
 0x253   :  { %3034 = vmatpush1.bf16.msk.msra.mxu1 %vm3033_vm9, %v3098_v10  ;;  %vm3045_vm9 = vmpackc.low %vm1983_vm15, %vm1979_vm8 }
 0x254   :  { %3036 = vmatprep.subr.msk.bf16.mxu1 %vm3035_vm6, %v3098_v10 }
 0x257   :  { %3038 = vmatpush1.bf16.msk.msra.mxu1 %vm3037_vm1, %v3098_v10 }
 0x258   :  { %3040 = vmatprep.subr.msk.bf16.mxu1 %vm3039_vm2, %v3098_v10 }
 0x25b   :  { %3042 = vmatpush1.bf16.msk.msra.mxu1 %vm3041_vm3, %v3098_v10 }
 0x25c   :  { %3044 = vmatprep.subr.msk.bf16.mxu1 %vm3043_vm4, %v3098_v10 }
 0x25f   :  { %3046 = vmatpush1.bf16.msk.msra.mxu1 %vm3045_vm9, %v3098_v10 }
 0x262   :  { %2395 = vmatmul.mubr.f32.vlgmr.msra.gmra.mrb[64].mxu1 %v5299_v17  ;;  %v3067_v17 = vld [vmem:[%s5539_s0 + $0x58] sm:$0xff] }
 0x263   :  { %2400 = vmatprep.mubr.f32.mxu1 %v5304_v57 }
 0x266   :  { %2401 = vmatmul.mubr.f32.gmra.mrb[66].mxu1 %v5321_v62  ;;  %v3068_v62 = vld [vmem:[%s5539_s0 + $0x60] sm:$0xff] }
 0x267   :  { %2406 = vmatprep.mubr.f32.mxu1 %v5326_v58 }
 0x26a   :  { %2407 = vmatmul.mubr.f32.gmra.mrb[68].mxu1 %v5343_v2 }
 0x26b   :  { %2412 = vmatprep.mubr.f32.mxu1 %v5348_v32  ;;  %v3069_v32 = vld [vmem:[%s5539_s0 + $0x68] sm:$0xff] }
 0x26e   :  { %2413 = vmatmul.mubr.f32.gmra.mrb[70].mxu1 %v75_v15 }
 0x30f   :  { %v2307_v48 = vpop.f32.mrb[64].mxu0 }
 0x310   :  { %2419 = vst [vmem:[%s5543_s4] sm:$0xff] %v2307_v48  ;;  %v2479_v51 = vsub.f32 %v2307_v48, %v3056_v45  ;;  %v2309_v18 = vpop.f32.mrb[65].mxu0 }
 0x311   :  { %2420 = vst [vmem:[%s5543_s4 + $0x8] sm:$0xff] %v2309_v18  ;;  %v2480_v20 = vsub.f32 %v2309_v18, %v3057_v47  ;;  %v3070_v18 = vld [vmem:[%s5539_s0 + $0x70] sm:$0xff] }
 0x312   :  { %v2495_v42 = vmul.f32 %v2479_v51, %v2479_v51 }
 0x313   :  { %v2496_v27 = vmul.f32 %v2480_v20, %v2480_v20  ;;  %v2313_v24 = vpop.f32.mrb[66].mxu0 }
 0x314   :  { %2423 = vst [vmem:[%s5543_s4 + $0x20] sm:$0xff] %v2313_v24  ;;  %v2315_v38 = vpop.f32.mrb[67].mxu0  ;;  %v2483_v10 = vsub.f32 %v2313_v24, %v3059_v46 }
 0x315   :  { %v2535_v22 = vadd.f32 %v2496_v27, %v2495_v42  ;;  %2424 = vst [vmem:[%s5543_s4 + $0x28] sm:$0xff] %v2315_v38  ;;  %v2484_v11 = vsub.f32 %v2315_v38, %v3061_v4  ;;  %v3071_v38 = vld [vmem:[%s5539_s0 + $0x78] sm:$0xff] }
 0x316   :  { %v2499_v23 = vmul.f32 %v2483_v10, %v2483_v10 }
 0x317   :  { %v2319_v60 = vpop.f32.mrb[68].mxu0  ;;  %v2500_v55 = vmul.f32 %v2484_v11, %v2484_v11 }
 0x318   :  { %2427 = vst [vmem:[%s5543_s4 + $0x40] sm:$0xff] %v2319_v60  ;;  %v2321_v7 = vpop.f32.mrb[69].mxu0  ;;  %v2487_v5 = vsub.f32 %v2319_v60, %v3064_v9 }
 0x319   :  { %2428 = vst [vmem:[%s5543_s4 + $0x48] sm:$0xff] %v2321_v7  ;;  %v2488_v16 = vsub.f32 %v2321_v7, %v3065_v19 }
 0x31a   :  { %v2503_v31 = vmul.f32 %v2487_v5, %v2487_v5 }
 0x31b   :  { %v2325_v39 = vpop.f32.mrb[70].mxu0  ;;  %v2504_v63 = vmul.f32 %v2488_v16, %v2488_v16 }
 0x31c   :  { %2431 = vst [vmem:[%s5543_s4 + $0x60] sm:$0xff] %v2325_v39  ;;  %v2327_v61 = vpop.f32.mrb[71].mxu0  ;;  %v2491_v58 = vsub.f32 %v2325_v39, %v3068_v62 }
 0x31d   :  { %2432 = vst [vmem:[%s5543_s4 + $0x68] sm:$0xff] %v2327_v61  ;;  %v2492_v15 = vsub.f32 %v2327_v61, %v3069_v32 }
 0x31e   :  { %v2507_v51 = vmul.f32 %v2491_v58, %v2491_v58 }
 0x31f   :  { %v2508_v27 = vmul.f32 %v2492_v15, %v2492_v15 }
 0x335   :  { %v2396_v0 = vpop.f32.mrb[64].mxu1 }
 0x336   :  { %2421 = vst [vmem:[%s5543_s4 + $0x10] sm:$0xff] %v2396_v0  ;;  %v2481_v50 = vsub.f32 %v2396_v0, %v3058_v14  ;;  %v2398_v26 = vpop.f32.mrb[65].mxu1 }
 0x337   :  { %2422 = vst [vmem:[%s5543_s4 + $0x18] sm:$0xff] %v2398_v26  ;;  %v2482_v30 = vsub.f32 %v2398_v26, %v3060_v13 }
 0x338   :  { %v2497_v36 = vmul.f32 %v2481_v50, %v2481_v50 }
 0x339   :  { %v2402_v29 = vpop.f32.mrb[66].mxu1  ;;  %v2498_v21 = vmul.f32 %v2482_v30, %v2482_v30 }
 0x33a   :  { %v2536_v3 = vadd.f32 %v2535_v22, %v2497_v36  ;;  %2425 = vst [vmem:[%s5543_s4 + $0x30] sm:$0xff] %v2402_v29  ;;  %v2485_v43 = vsub.f32 %v2402_v29, %v3062_v53  ;;  %v2404_v12 = vpop.f32.mrb[67].mxu1 }
 0x33b   :  { %2426 = vst [vmem:[%s5543_s4 + $0x38] sm:$0xff] %v2404_v12  ;;  %v2486_v37 = vsub.f32 %v2404_v12, %v3063_v6 }
 0x33c   :  { %v2537_v49 = vadd.f32 %v2536_v3, %v2498_v21  ;;  %v2501_v41 = vmul.f32 %v2485_v43, %v2485_v43 }
 0x33d   :  { %v2408_v52 = vpop.f32.mrb[68].mxu1  ;;  %v2502_v1 = vmul.f32 %v2486_v37, %v2486_v37 }
 0x33e   :  { %v2538_v25 = vadd.f32 %v2537_v49, %v2499_v23  ;;  %2429 = vst [vmem:[%s5543_s4 + $0x50] sm:$0xff] %v2408_v52  ;;  %v2410_v56 = vpop.f32.mrb[69].mxu1  ;;  %v2489_v54 = vsub.f32 %v2408_v52, %v3066_v33 }
 0x33f   :  { %2430 = vst [vmem:[%s5543_s4 + $0x58] sm:$0xff] %v2410_v56  ;;  %v2490_v57 = vsub.f32 %v2410_v56, %v3067_v17 }
 0x340   :  { %v2539_v44 = vadd.f32 %v2538_v25, %v2500_v55  ;;  %v2505_v34 = vmul.f32 %v2489_v54, %v2489_v54 }
 0x341   :  { %v2414_v28 = vpop.f32.mrb[70].mxu1  ;;  %v2506_v45 = vmul.f32 %v2490_v57, %v2490_v57 }
 0x342   :  { %v2540_v35 = vadd.f32 %v2539_v44, %v2501_v41  ;;  %2433 = vst [vmem:[%s5543_s4 + $0x70] sm:$0xff] %v2414_v28  ;;  %v2416_v8 = vpop.f32.mrb[71].mxu1  ;;  %v2493_v47 = vsub.f32 %v2414_v28, %v3070_v18 }
 0x343   :  { %2434 = vst [vmem:[%s5543_s4 + $0x78] sm:$0xff] %v2416_v8  ;;  %v2494_v22 = vsub.f32 %v2416_v8, %v3071_v38 }
 0x344   :  { %v2541_v59 = vadd.f32 %v2540_v35, %v2502_v1  ;;  %v2509_v24 = vmul.f32 %v2493_v47, %v2493_v47 }
 0x345   :  { %v2510_v7 = vmul.f32 %v2494_v22, %v2494_v22 }
 0x346   :  { %v2542_v40 = vadd.f32 %v2541_v59, %v2503_v31 }
 0x348   :  { %v2543_v2 = vadd.f32 %v2542_v40, %v2504_v63 }
 0x34a   :  { %v2544_v48 = vadd.f32 %v2543_v2, %v2505_v34 }
 0x34c   :  { %v2545_v20 = vadd.f32 %v2544_v48, %v2506_v45 }
 0x34e   :  { %v2546_v42 = vadd.f32 %v2545_v20, %v2507_v51 }
 0x350   :  { %v2547_v60 = vadd.f32 %v2546_v42, %v2508_v27 }
 0x352   :  { %v2548_v39 = vadd.f32 %v2547_v60, %v2509_v24 }
 0x354   :  { %v2549_v61 = vadd.f32 %v2548_v39, %v2510_v7 }
 0x356   :  { %2550 = vadd.xlane.f32.xlu0 %v2549_v61 }
 0x357   :  { %3083 = shalt.err (!%p3080_p4)
}
 0x358   :  { %s3084_s0 = scalar_lea.hbm %s5544_s5, 64 }
 0x359   :  { %p3085_p5 = scmp.ne.s32.totalorder %s5544_s5, %s3084_s0  ;;  %p3088_p6 = scmp.lt.u32.totalorder %s3084_s0, %s5544_s5 }
 0x35b   :  { %p3090_p7 = pnand %p3088_p6, %p3085_p5 }
 0x35d   :  { %3093 = shalt.err (!%p3090_p7)
}
 0x35e   :  { %2572 = dma.vmem_to_hbm [thread:$0]  %s2570_s10, 64, %s5544_s5, [#allocation3]  }
 0x3e3   :  { %v2551_v0 = vpop.xlane.xlu0 %2550 }
 0x3e4   :  { %v2552_v14 = vrot.slane %v2551_v0, 4 }
 0x3e6   :  { %v2553_v50 = vadd.f32 %v2552_v14, %v2551_v0 }
 0x3e8   :  { %v2554_v26 = vrot.slane %v2553_v50, 2 }
 0x3ea   :  { %v2555_v46 = vadd.f32 %v2554_v26, %v2553_v50 }
 0x3ec   :  { %v2556_v10 = vrot.slane %v2555_v46, 1 }
 0x3ee   :  { %v2557_v13 = vadd.f32 %v2556_v10, %v2555_v46 }
 0x3f0   :  { %3047 = vpush %v2557_v13 }
 0x421   :  { %s3048_s19 = spop %3047 }
 0x422   :  { %v2559_v30 = vstv %s3048_s19 }
 0x423   :  { %2560 = vst [vmem:[%s5545_s6] sm:$0x1] %v2559_v30 }
 0x424   :  { %3094 = dma.done.wait [#allocation3], 64  }
 0x425   :  { %3095 = vsyncadd [#allocation3], 4294967232 }
 0x426   :  { %2582 = vsyncpa [#allocation3], 1 }

</bundles_post_ra>
